<compile_context>
chip_gen: v6e
topology: v6e:2x2x1
jax: 0.10.0
libtpu: 0.0.40
codegen_flags: <defaults>
</compile_context>

<pallas_src>
import functools

import jax
import jax.numpy as jnp
from jax.experimental import pallas as pl
from jax.experimental.pallas import tpu as pltpu


def encoder_kernel(xcol_ref, w1_ref, b1_ref, gamma_ref, beta_ref, gmask_ref,
                   w2_ref, b2_ref, o_ref, *, H, W, C, C_out_pad, groups, eps):
    """One batch element per grid step.

    xcol_ref : (1, H*W, 9*C_in)   im2col'ed input (mxu dtype)
    w1_ref   : (9*C_in, C)        conv_in weights, taps folded into K (mxu dtype)
    b1_ref   : (1, C)             f32
    gamma_ref, beta_ref : (1, C)  GroupNorm affine params, f32
    gmask_ref: (C, C)             group-membership matrix (only used if cg > 1)
    w2_ref   : (9*C, C_out_pad)   conv_out weights, taps folded, lane-padded (mxu dtype)
    b2_ref   : (1, C_out_pad)     f32 (zero in padded lanes)
    o_ref    : (1, H*W, C_out_pad) f32, lane-dense output slab
    """
    HW = H * W

    # ---------------- conv_in: single im2col matmul (K = 9*C_in) --------------
    h = jnp.dot(xcol_ref[0], w1_ref[...],
                preferred_element_type=jnp.float32) + b1_ref[...]      # (HW, C) f32

    # ---------------- GroupNorm(groups, C, eps), per batch element ------------
    cg = C // groups
    cnt = float(HW * cg)
    s = jnp.sum(h, axis=0, keepdims=True)                              # (1, C)
    ss = jnp.sum(h * h, axis=0, keepdims=True)                         # (1, C)
    if cg == 1:
        # groups == C: group statistics are per-channel statistics.
        mean_c = s / cnt
        ex2_c = ss / cnt
    else:
        # Aggregate channel sums within each group via the precomputed mask.
        mean_c = jnp.dot(s, gmask_ref[...],
                         preferred_element_type=jnp.float32) / cnt
        ex2_c = jnp.dot(ss, gmask_ref[...],
                        preferred_element_type=jnp.float32) / cnt
    var_c = jnp.maximum(ex2_c - mean_c * mean_c, 0.0)
    inv_std = jax.lax.rsqrt(var_c + eps)
    hn = (h - mean_c) * inv_std * gamma_ref[...] + beta_ref[...]

    # ---------------- swish: x * sigmoid(x) (f32, VPU + EUP) -------------------
    ha = hn * jax.nn.sigmoid(hn)                                       # (HW, C)

    # ---------------- conv_out: im2col via flat row shifts, ONE matmul ---------
    # Output pixel r = y*W + x needs ha[r + dy*W + dx] for dy,dx in {-1,0,1},
    # zero outside the image.  The flat shift + zero fill handles the y border;
    # the column mask handles x wrap-around between adjacent rows.
    col = jax.lax.broadcasted_iota(jnp.int32, (HW, C), 0) % W
    not_left = col >= 1                  # x-1 exists
    not_right = col <= (W - 2)           # x+1 exists

    def shifted(a, off):
        # b[r, :] = a[r + off, :] for in-range rows, zero otherwise.
        if off == 0:
            return a
        pad = jnp.zeros((abs(off), a.shape[1]), a.dtype)
        if off > 0:
            return jnp.concatenate([a[off:, :], pad], axis=0)
        return jnp.concatenate([pad, a[: a.shape[0] + off, :]], axis=0)

    pieces = []
    for ky in range(3):
        for kx in range(3):
            dy, dx = ky - 1, kx - 1
            p = shifted(ha, dy * W + dx)
            if dx == -1:
                p = jnp.where(not_left, p, 0.0)
            elif dx == 1:
                p = jnp.where(not_right, p, 0.0)
            pieces.append(p)
    patches = jnp.concatenate(pieces, axis=1).astype(w2_ref.dtype)     # (HW, 9*C)

    out = jnp.dot(patches, w2_ref[...],
                  preferred_element_type=jnp.float32) + b2_ref[...]    # (HW, C_out_pad)
    o_ref[...] = out.reshape(1, HW, C_out_pad)


def encoder_forward(x_nchw, params, *, groups=32, eps=1e-6,
                    mxu_dtype=jnp.bfloat16):
    """Pallas Encoder forward.  x_nchw: (N, C_in, H, W) like PyTorch.

    mxu_dtype: dtype fed to the MXU matmuls (accumulation is always f32).
    """
    w1, b1, gamma, beta, w2, b2 = params                    # PyTorch layouts
    N, C_in, H, W = x_nchw.shape
    C = w1.shape[0]                                          # conv_in out-channels
    C_out = w2.shape[0]                                      # conv_out out-channels
    HW = H * W
    KC1 = 9 * C_in
    KC2 = 9 * C
    C_out_pad = ((C_out + 127) // 128) * 128                 # lane-dense output

    assert C % groups == 0
    assert HW % 8 == 0, "H*W must be a multiple of 8 for the (HW, ...) blocks"

    # ---- glue (pure XLA, not the hot path) ------------------------------------
    # NCHW -> NHWC, pad, and im2col the 3x3 taps of conv_in into the K dim.
    x = jnp.transpose(x_nchw, (0, 2, 3, 1)).astype(jnp.float32)
    x_pad = jnp.pad(x, ((0, 0), (1, 1), (1, 1), (0, 0)))
    tap_patches = [x_pad[:, dy:dy + H, dx:dx + W, :]
                   for dy in range(3) for dx in range(3)]
    x_col = jnp.concatenate(tap_patches, axis=-1).reshape(N, HW, KC1)
    x_col = x_col.astype(mxu_dtype)

    # Weights: (Cout, Cin, 3, 3) -> (ky, kx, Cin, Cout) -> (9*Cin, Cout)
    w1_k = jnp.transpose(w1, (2, 3, 1, 0)).reshape(KC1, C).astype(mxu_dtype)
    w2_k = jnp.transpose(w2, (2, 3, 1, 0)).reshape(KC2, C_out).astype(jnp.float32)
    w2_k = jnp.pad(w2_k, ((0, 0), (0, C_out_pad - C_out))).astype(mxu_dtype)
    b1_k = b1.reshape(1, C).astype(jnp.float32)
    b2_k = jnp.pad(b2.astype(jnp.float32), (0, C_out_pad - C_out)).reshape(1, C_out_pad)
    gamma_k = gamma.reshape(1, C).astype(jnp.float32)
    beta_k = beta.reshape(1, C).astype(jnp.float32)

    # Group-membership matrix, hoisted out of the kernel (used only if cg > 1).
    cg = C // groups
    g_ids = jnp.arange(C, dtype=jnp.int32) // cg
    gmask = (g_ids[:, None] == g_ids[None, :]).astype(jnp.float32)     # (C, C)

    kernel = functools.partial(encoder_kernel, H=H, W=W, C=C,
                               C_out_pad=C_out_pad, groups=groups, eps=eps)

    itemsize = jnp.dtype(mxu_dtype).itemsize
    flops = 2 * N * HW * (KC1 * C + KC2 * C_out_pad)
    transcendentals = N * HW * C                       # sigmoid
    bytes_accessed = (N * HW * KC1 * itemsize          # x_col
                      + (KC1 * C + KC2 * C_out_pad) * itemsize
                      + 4 * (3 * C + C * C + C_out_pad)
                      + N * HW * C_out_pad * 4)        # output slab

    out_slab = pl.pallas_call(
        kernel,
        out_shape=jax.ShapeDtypeStruct((N, HW, C_out_pad), jnp.float32),
        grid_spec=pltpu.PrefetchScalarGridSpec(
            num_scalar_prefetch=0,
            grid=(N,),
            in_specs=[
                pl.BlockSpec((1, HW, KC1), lambda n: (n, 0, 0)),
                pl.BlockSpec((KC1, C), lambda n: (0, 0)),
                pl.BlockSpec((1, C), lambda n: (0, 0)),
                pl.BlockSpec((1, C), lambda n: (0, 0)),
                pl.BlockSpec((1, C), lambda n: (0, 0)),
                pl.BlockSpec((C, C), lambda n: (0, 0)),
                pl.BlockSpec((KC2, C_out_pad), lambda n: (0, 0)),
                pl.BlockSpec((1, C_out_pad), lambda n: (0, 0)),
            ],
            out_specs=pl.BlockSpec((1, HW, C_out_pad), lambda n: (n, 0, 0)),
        ),
        compiler_params=pltpu.CompilerParams(
            dimension_semantics=("parallel",),
            vmem_limit_bytes=32 * 1024 * 1024),
        cost_estimate=pl.CostEstimate(flops=flops,
                                      transcendentals=transcendentals,
                                      bytes_accessed=bytes_accessed),
    )(x_col, w1_k, b1_k, gamma_k, beta_k, gmask, w2_k, b2_k)

    # Slice off the lane padding, NHWC -> NCHW to match PyTorch.
    out = out_slab[:, :, :C_out].reshape(N, H, W, C_out)
    return jnp.transpose(out, (0, 3, 1, 2))


def encoder_reference(x, params, *, groups=32, eps=1e-6, conv_dtype=jnp.float32):
    """Pure-JAX reference (NCHW), mirrors the PyTorch forward.

    conv_dtype lets us build a mixed-precision reference that matches the
    bf16-MXU kernel path (f32 accumulation, f32 elementwise everywhere).
    """
    w1, b1, gamma, beta, w2, b2 = params
    dn = ('NCHW', 'OIHW', 'NCHW')
    h = jax.lax.conv_general_dilated(
        x.astype(conv_dtype), w1.astype(conv_dtype), (1, 1), ((1, 1), (1, 1)),
        dimension_numbers=dn,
        preferred_element_type=jnp.float32) + b1[None, :, None, None]
    N, C, H, W = h.shape
    hg = h.reshape(N, groups, (C // groups) * H * W)
    mean = hg.mean(-1, keepdims=True)
    var = hg.var(-1, keepdims=True)
    hn = ((hg - mean) / jnp.sqrt(var + eps)).reshape(N, C, H, W)
    hn = hn * gamma[None, :, None, None] + beta[None, :, None, None]
    ha = hn * jax.nn.sigmoid(hn)
    out = jax.lax.conv_general_dilated(
        ha.astype(conv_dtype), w2.astype(conv_dtype), (1, 1), ((1, 1), (1, 1)),
        dimension_numbers=dn,
        preferred_element_type=jnp.float32) + b2[None, :, None, None]
    return out


if __name__ == "__main__":
    # Module config (small, consistent with the forward): GroupNorm needs
    # ch % 32 == 0 (Normalize uses 32 groups), so ch = 32.
    in_channels, ch, z_channels, double_z = 4, 32, 4, True
    out_channels = 2 * z_channels if double_z else z_channels
    N, H, W = 2, 16, 16

    key = jax.random.PRNGKey(0)
    kx, k1, kb1, kg, kb, k2, kb2 = jax.random.split(key, 7)

    x = jax.random.normal(kx, (N, in_channels, H, W), jnp.float32)

    # Deterministic synthetic parameters (PyTorch layouts: OIHW weights, (C,) biases).
    w1 = 0.1 * jax.random.normal(k1, (ch, in_channels, 3, 3), jnp.float32)
    b1 = 0.05 * jax.random.normal(kb1, (ch,), jnp.float32)
    gamma = 1.0 + 0.1 * jax.random.normal(kg, (ch,), jnp.float32)
    beta = 0.1 * jax.random.normal(kb, (ch,), jnp.float32)
    w2 = 0.1 * jax.random.normal(k2, (out_channels, ch, 3, 3), jnp.float32)
    b2 = 0.05 * jax.random.normal(kb2, (out_channels,), jnp.float32)
    params = (w1, b1, gamma, beta, w2, b2)

    # 1) Exact-precision path (f32 MXU inputs): tight check vs. f32 reference —
    #    proves the kernel preserves the module's forward semantics.
    out_f32 = jax.block_until_ready(
        encoder_forward(x, params, groups=32, eps=1e-6, mxu_dtype=jnp.float32))
    ref_f32 = jax.block_until_ready(
        encoder_reference(x, params, groups=32, eps=1e-6, conv_dtype=jnp.float32))
    assert out_f32.shape == (N, out_channels, H, W), out_f32.shape
    assert jnp.allclose(out_f32, ref_f32, rtol=1e-4, atol=1e-4), (
        float(jnp.max(jnp.abs(out_f32 - ref_f32))))

    # 2) Fast path (bf16 MXU inputs, f32 accumulation/elementwise): check against
    #    the matching mixed-precision reference.
    out_bf16 = jax.block_until_ready(
        encoder_forward(x, params, groups=32, eps=1e-6, mxu_dtype=jnp.bfloat16))
    ref_bf16 = jax.block_until_ready(
        encoder_reference(x, params, groups=32, eps=1e-6, conv_dtype=jnp.bfloat16))
    assert out_bf16.shape == (N, out_channels, H, W), out_bf16.shape
    assert jnp.allclose(out_bf16, ref_bf16, rtol=2e-3, atol=2e-3), (
        float(jnp.max(jnp.abs(out_bf16 - ref_bf16))))

    print("KERNEL_OK")
</pallas_src>

<mosaic_0001>
module attributes {stable_mosaic.version = 11 : i64} {
  func.func @encoder_kernel(%arg0: i32, %arg1: memref<1x256x36xf32, #tpu.memory_space<vmem>>, %arg2: memref<36x32xf32, #tpu.memory_space<vmem>>, %arg3: memref<1x32xf32, #tpu.memory_space<vmem>>, %arg4: memref<1x32xf32, #tpu.memory_space<vmem>>, %arg5: memref<1x32xf32, #tpu.memory_space<vmem>>, %arg6: memref<32x32xf32, #tpu.memory_space<vmem>>, %arg7: memref<288x128xf32, #tpu.memory_space<vmem>>, %arg8: memref<1x128xf32, #tpu.memory_space<vmem>>, %arg9: memref<1x256x128xf32, #tpu.memory_space<vmem>>) attributes {dimension_semantics = [#tpu.dimension_semantics<parallel>], iteration_bounds = array<i64: 2>, scalar_prefetch = 0 : i64, scratch_operands = 0 : i64, tpu.core_type = #tpu.core_type<tc>, window_params = [{transform_indices = @transform_0, window_bounds = array<i64: 1, 256, 36>}, {pipeline_mode = #tpu.pipeline_mode<synchronous>, transform_indices = @transform_1, window_bounds = array<i64: 36, 32>}, {pipeline_mode = #tpu.pipeline_mode<synchronous>, transform_indices = @transform_2, window_bounds = array<i64: 1, 32>}, {pipeline_mode = #tpu.pipeline_mode<synchronous>, transform_indices = @transform_3, window_bounds = array<i64: 1, 32>}, {pipeline_mode = #tpu.pipeline_mode<synchronous>, transform_indices = @transform_4, window_bounds = array<i64: 1, 32>}, {pipeline_mode = #tpu.pipeline_mode<synchronous>, transform_indices = @transform_5, window_bounds = array<i64: 32, 32>}, {pipeline_mode = #tpu.pipeline_mode<synchronous>, transform_indices = @transform_6, window_bounds = array<i64: 288, 128>}, {pipeline_mode = #tpu.pipeline_mode<synchronous>, transform_indices = @transform_7, window_bounds = array<i64: 1, 128>}, {transform_indices = @transform_8, window_bounds = array<i64: 1, 256, 128>}]} {
    %c0 = arith.constant 0 : index
    %c0_0 = arith.constant 0 : index
    %c0_1 = arith.constant 0 : index
    %0 = vector.load %arg1[%c0, %c0_0, %c0_1] : memref<1x256x36xf32, #tpu.memory_space<vmem>>, vector<1x256x36xf32>
    %1 = vector.shape_cast %0 : vector<1x256x36xf32> to vector<256x36xf32>
    %c0_2 = arith.constant 0 : index
    %c0_3 = arith.constant 0 : index
    %2 = vector.load %arg2[%c0_2, %c0_3] : memref<36x32xf32, #tpu.memory_space<vmem>>, vector<36x32xf32>
    %cst = arith.constant dense<0.000000e+00> : vector<256x32xf32>
    %3 = tpu.matmul %1, %2, %cst {dimension_numbers = #tpu.dot_dimension_numbers<[1], [0], [0], [1], [0, 0, 1, 1], [], []>} : vector<256x36xf32>, vector<36x32xf32>, vector<256x32xf32> -> vector<256x32xf32>
    %c0_4 = arith.constant 0 : index
    %c0_5 = arith.constant 0 : index
    %4 = vector.load %arg3[%c0_4, %c0_5] : memref<1x32xf32, #tpu.memory_space<vmem>>, vector<1x32xf32>
    %5 = vector.broadcast %4 : vector<1x32xf32> to vector<256x32xf32>
    %6 = arith.addf %3, %5 : vector<256x32xf32>
    %cst_6 = arith.constant dense<0.000000e+00> : vector<32xf32>
    %7 = vector.multi_reduction <add>, %6, %cst_6 [0] : vector<256x32xf32> to vector<32xf32>
    %8 = vector.shape_cast %7 : vector<32xf32> to vector<1x32xf32>
    %9 = arith.mulf %6, %6 : vector<256x32xf32>
    %cst_7 = arith.constant dense<0.000000e+00> : vector<32xf32>
    %10 = vector.multi_reduction <add>, %9, %cst_7 [0] : vector<256x32xf32> to vector<32xf32>
    %11 = vector.shape_cast %10 : vector<32xf32> to vector<1x32xf32>
    %cst_8 = arith.constant 2.560000e+02 : f32
    %12 = vector.broadcast %cst_8 : f32 to vector<1x32xf32>
    %13 = arith.divf %8, %12 : vector<1x32xf32>
    %cst_9 = arith.constant 2.560000e+02 : f32
    %14 = vector.broadcast %cst_9 : f32 to vector<1x32xf32>
    %15 = arith.divf %11, %14 : vector<1x32xf32>
    %16 = arith.mulf %13, %13 : vector<1x32xf32>
    %17 = arith.subf %15, %16 : vector<1x32xf32>
    %cst_10 = arith.constant 0.000000e+00 : f32
    %18 = vector.broadcast %cst_10 : f32 to vector<1x32xf32>
    %19 = arith.maximumf %17, %18 : vector<1x32xf32>
    %cst_11 = arith.constant 9.99999997E-7 : f32
    %20 = vector.broadcast %cst_11 : f32 to vector<1x32xf32>
    %21 = arith.addf %19, %20 : vector<1x32xf32>
    %22 = math.rsqrt %21 : vector<1x32xf32>
    %23 = vector.broadcast %13 : vector<1x32xf32> to vector<256x32xf32>
    %24 = arith.subf %6, %23 : vector<256x32xf32>
    %25 = vector.broadcast %22 : vector<1x32xf32> to vector<256x32xf32>
    %26 = arith.mulf %24, %25 : vector<256x32xf32>
    %c0_12 = arith.constant 0 : index
    %c0_13 = arith.constant 0 : index
    %27 = vector.load %arg4[%c0_12, %c0_13] : memref<1x32xf32, #tpu.memory_space<vmem>>, vector<1x32xf32>
    %28 = vector.broadcast %27 : vector<1x32xf32> to vector<256x32xf32>
    %29 = arith.mulf %26, %28 : vector<256x32xf32>
    %c0_14 = arith.constant 0 : index
    %c0_15 = arith.constant 0 : index
    %30 = vector.load %arg5[%c0_14, %c0_15] : memref<1x32xf32, #tpu.memory_space<vmem>>, vector<1x32xf32>
    %31 = vector.broadcast %30 : vector<1x32xf32> to vector<256x32xf32>
    %32 = arith.addf %29, %31 : vector<256x32xf32>
    %33 = arith.negf %32 : vector<256x32xf32>
    %34 = math.exp %33 : vector<256x32xf32>
    %cst_16 = arith.constant 1.000000e+00 : f32
    %35 = vector.broadcast %cst_16 : f32 to vector<256x32xf32>
    %36 = arith.addf %35, %34 : vector<256x32xf32>
    %37 = arith.divf %35, %36 : vector<256x32xf32>
    %38 = arith.mulf %32, %37 : vector<256x32xf32>
    %39 = tpu.iota {dimensions = array<i32: 0>} : vector<256x32xi32>
    %c16_i32 = arith.constant 16 : i32
    %c0_i32 = arith.constant 0 : i32
    %40 = arith.cmpi eq, %c16_i32, %c0_i32 : i32
    %c1_i32 = arith.constant 1 : i32
    %41 = arith.select %40, %c1_i32, %c16_i32 : i32
    %42 = vector.broadcast %41 : i32 to vector<256x32xi32>
    %43 = arith.remsi %39, %42 : vector<256x32xi32>
    %c0_i32_17 = arith.constant 0 : i32
    %44 = vector.broadcast %c0_i32_17 : i32 to vector<256x32xi32>
    %45 = arith.cmpi ne, %43, %44 : vector<256x32xi32>
    %c0_i32_18 = arith.constant 0 : i32
    %46 = vector.broadcast %c0_i32_18 : i32 to vector<256x32xi32>
    %47 = arith.cmpi slt, %43, %46 : vector<256x32xi32>
    %c0_i32_19 = arith.constant 0 : i32
    %48 = arith.cmpi slt, %41, %c0_i32_19 : i32
    %49 = vector.broadcast %48 : i1 to vector<256x32xi1>
    %50 = vector.broadcast %49 : vector<256x32xi1> to vector<256x32xi1>
    %51 = arith.xori %47, %50 : vector<256x32xi1>
    %52 = arith.andi %51, %45 : vector<256x32xi1>
    %53 = vector.broadcast %41 : i32 to vector<256x32xi32>
    %54 = arith.addi %43, %53 : vector<256x32xi32>
    %55 = arith.select %52, %54, %43 : vector<256x32xi1>, vector<256x32xi32>
    %c1_i32_20 = arith.constant 1 : i32
    %56 = vector.broadcast %c1_i32_20 : i32 to vector<256x32xi32>
    %57 = arith.cmpi sge, %55, %56 : vector<256x32xi32>
    %c14_i32 = arith.constant 14 : i32
    %58 = vector.broadcast %c14_i32 : i32 to vector<256x32xi32>
    %59 = arith.cmpi sle, %55, %58 : vector<256x32xi32>
    %cst_21 = arith.constant 0.000000e+00 : f32
    %60 = vector.broadcast %cst_21 : f32 to vector<17x32xf32>
    %61 = vector.extract_strided_slice %38 {offsets = [0, 0], sizes = [239, 32], strides = [1, 1]} : vector<256x32xf32> to vector<239x32xf32>
    %62 = tpu.concatenate %60, %61 in 0 : vector<17x32xf32>, vector<239x32xf32> -> vector<256x32xf32>
    %cst_22 = arith.constant 0.000000e+00 : f32
    %63 = vector.broadcast %cst_22 : f32 to vector<256x32xf32>
    %64 = arith.select %57, %62, %63 : vector<256x32xi1>, vector<256x32xf32>
    %cst_23 = arith.constant 0.000000e+00 : f32
    %65 = vector.broadcast %cst_23 : f32 to vector<16x32xf32>
    %66 = vector.extract_strided_slice %38 {offsets = [0, 0], sizes = [240, 32], strides = [1, 1]} : vector<256x32xf32> to vector<240x32xf32>
    %67 = tpu.concatenate %65, %66 in 0 : vector<16x32xf32>, vector<240x32xf32> -> vector<256x32xf32>
    %cst_24 = arith.constant 0.000000e+00 : f32
    %68 = vector.broadcast %cst_24 : f32 to vector<15x32xf32>
    %69 = vector.extract_strided_slice %38 {offsets = [0, 0], sizes = [241, 32], strides = [1, 1]} : vector<256x32xf32> to vector<241x32xf32>
    %70 = tpu.concatenate %68, %69 in 0 : vector<15x32xf32>, vector<241x32xf32> -> vector<256x32xf32>
    %cst_25 = arith.constant 0.000000e+00 : f32
    %71 = vector.broadcast %cst_25 : f32 to vector<256x32xf32>
    %72 = arith.select %59, %70, %71 : vector<256x32xi1>, vector<256x32xf32>
    %cst_26 = arith.constant 0.000000e+00 : f32
    %73 = vector.broadcast %cst_26 : f32 to vector<1x32xf32>
    %74 = vector.extract_strided_slice %38 {offsets = [0, 0], sizes = [255, 32], strides = [1, 1]} : vector<256x32xf32> to vector<255x32xf32>
    %75 = tpu.concatenate %73, %74 in 0 : vector<1x32xf32>, vector<255x32xf32> -> vector<256x32xf32>
    %cst_27 = arith.constant 0.000000e+00 : f32
    %76 = vector.broadcast %cst_27 : f32 to vector<256x32xf32>
    %77 = arith.select %57, %75, %76 : vector<256x32xi1>, vector<256x32xf32>
    %cst_28 = arith.constant 0.000000e+00 : f32
    %78 = vector.broadcast %cst_28 : f32 to vector<1x32xf32>
    %79 = vector.extract_strided_slice %38 {offsets = [1, 0], sizes = [255, 32], strides = [1, 1]} : vector<256x32xf32> to vector<255x32xf32>
    %80 = tpu.concatenate %79, %78 in 0 : vector<255x32xf32>, vector<1x32xf32> -> vector<256x32xf32>
    %cst_29 = arith.constant 0.000000e+00 : f32
    %81 = vector.broadcast %cst_29 : f32 to vector<256x32xf32>
    %82 = arith.select %59, %80, %81 : vector<256x32xi1>, vector<256x32xf32>
    %cst_30 = arith.constant 0.000000e+00 : f32
    %83 = vector.broadcast %cst_30 : f32 to vector<15x32xf32>
    %84 = vector.extract_strided_slice %38 {offsets = [15, 0], sizes = [241, 32], strides = [1, 1]} : vector<256x32xf32> to vector<241x32xf32>
    %85 = tpu.concatenate %84, %83 in 0 : vector<241x32xf32>, vector<15x32xf32> -> vector<256x32xf32>
    %cst_31 = arith.constant 0.000000e+00 : f32
    %86 = vector.broadcast %cst_31 : f32 to vector<256x32xf32>
    %87 = arith.select %57, %85, %86 : vector<256x32xi1>, vector<256x32xf32>
    %cst_32 = arith.constant 0.000000e+00 : f32
    %88 = vector.broadcast %cst_32 : f32 to vector<16x32xf32>
    %89 = vector.extract_strided_slice %38 {offsets = [16, 0], sizes = [240, 32], strides = [1, 1]} : vector<256x32xf32> to vector<240x32xf32>
    %90 = tpu.concatenate %89, %88 in 0 : vector<240x32xf32>, vector<16x32xf32> -> vector<256x32xf32>
    %cst_33 = arith.constant 0.000000e+00 : f32
    %91 = vector.broadcast %cst_33 : f32 to vector<17x32xf32>
    %92 = vector.extract_strided_slice %38 {offsets = [17, 0], sizes = [239, 32], strides = [1, 1]} : vector<256x32xf32> to vector<239x32xf32>
    %93 = tpu.concatenate %92, %91 in 0 : vector<239x32xf32>, vector<17x32xf32> -> vector<256x32xf32>
    %cst_34 = arith.constant 0.000000e+00 : f32
    %94 = vector.broadcast %cst_34 : f32 to vector<256x32xf32>
    %95 = arith.select %59, %93, %94 : vector<256x32xi1>, vector<256x32xf32>
    %96 = tpu.concatenate %64, %67, %72, %77, %38, %82, %87, %90, %95 in 1 : vector<256x32xf32>, vector<256x32xf32>, vector<256x32xf32>, vector<256x32xf32>, vector<256x32xf32>, vector<256x32xf32>, vector<256x32xf32>, vector<256x32xf32>, vector<256x32xf32> -> vector<256x288xf32>
    %c0_35 = arith.constant 0 : index
    %c0_36 = arith.constant 0 : index
    %97 = vector.load %arg7[%c0_35, %c0_36] : memref<288x128xf32, #tpu.memory_space<vmem>>, vector<288x128xf32>
    %cst_37 = arith.constant dense<0.000000e+00> : vector<256x128xf32>
    %98 = tpu.matmul %96, %97, %cst_37 {dimension_numbers = #tpu.dot_dimension_numbers<[1], [0], [0], [1], [0, 0, 1, 1], [], []>} : vector<256x288xf32>, vector<288x128xf32>, vector<256x128xf32> -> vector<256x128xf32>
    %c0_38 = arith.constant 0 : index
    %c0_39 = arith.constant 0 : index
    %99 = vector.load %arg8[%c0_38, %c0_39] : memref<1x128xf32, #tpu.memory_space<vmem>>, vector<1x128xf32>
    %100 = vector.broadcast %99 : vector<1x128xf32> to vector<256x128xf32>
    %101 = arith.addf %98, %100 : vector<256x128xf32>
    %102 = vector.shape_cast %101 : vector<256x128xf32> to vector<1x256x128xf32>
    %c0_40 = arith.constant 0 : index
    %c0_41 = arith.constant 0 : index
    %c0_42 = arith.constant 0 : index
    %103 = vector.load %arg9[%c0_40, %c0_41, %c0_42] : memref<1x256x128xf32, #tpu.memory_space<vmem>>, vector<1x256x128xf32>
    tpu.vector_store %arg9[%c0_40, %c0_41, %c0_42], %102 {strides = array<i32>} : memref<1x256x128xf32, #tpu.memory_space<vmem>>, vector<1x256x128xf32>,
    return
  }
  func.func @transform_0(%arg0: i32) -> (i32, i32, i32) {
    %c0_i32 = arith.constant 0 : i32
    %c0_i32_0 = arith.constant 0 : i32
    %c0_i32_1 = arith.constant 0 : i32
    return %arg0, %c0_i32, %c0_i32_0 : i32, i32, i32
  }
  func.func @transform_1(%arg0: i32) -> (i32, i32) {
    %c0_i32 = arith.constant 0 : i32
    %c0_i32_0 = arith.constant 0 : i32
    %c0_i32_1 = arith.constant 0 : i32
    return %c0_i32, %c0_i32_0 : i32, i32
  }
  func.func @transform_2(%arg0: i32) -> (i32, i32) {
    %c0_i32 = arith.constant 0 : i32
    %c0_i32_0 = arith.constant 0 : i32
    %c0_i32_1 = arith.constant 0 : i32
    return %c0_i32, %c0_i32_0 : i32, i32
  }
  func.func @transform_3(%arg0: i32) -> (i32, i32) {
    %c0_i32 = arith.constant 0 : i32
    %c0_i32_0 = arith.constant 0 : i32
    %c0_i32_1 = arith.constant 0 : i32
    return %c0_i32, %c0_i32_0 : i32, i32
  }
  func.func @transform_4(%arg0: i32) -> (i32, i32) {
    %c0_i32 = arith.constant 0 : i32
    %c0_i32_0 = arith.constant 0 : i32
    %c0_i32_1 = arith.constant 0 : i32
    return %c0_i32, %c0_i32_0 : i32, i32
  }
  func.func @transform_5(%arg0: i32) -> (i32, i32) {
    %c0_i32 = arith.constant 0 : i32
    %c0_i32_0 = arith.constant 0 : i32
    %c0_i32_1 = arith.constant 0 : i32
    return %c0_i32, %c0_i32_0 : i32, i32
  }
  func.func @transform_6(%arg0: i32) -> (i32, i32) {
    %c0_i32 = arith.constant 0 : i32
    %c0_i32_0 = arith.constant 0 : i32
    %c0_i32_1 = arith.constant 0 : i32
    return %c0_i32, %c0_i32_0 : i32, i32
  }
  func.func @transform_7(%arg0: i32) -> (i32, i32) {
    %c0_i32 = arith.constant 0 : i32
    %c0_i32_0 = arith.constant 0 : i32
    %c0_i32_1 = arith.constant 0 : i32
    return %c0_i32, %c0_i32_0 : i32, i32
  }
  func.func @transform_8(%arg0: i32) -> (i32, i32, i32) {
    %c0_i32 = arith.constant 0 : i32
    %c0_i32_0 = arith.constant 0 : i32
    %c0_i32_1 = arith.constant 0 : i32
    return %arg0, %c0_i32, %c0_i32_0 : i32, i32, i32
  }
}

</mosaic_0001>

<bundles_post_ra>
// kernel: tpu_custom_call.1
= control target key start
LH: loop header
LB: loop body
LE: loop exit
PB: predicated region body
PF: predicated region fallthrough
CT: control target
= control target key end

     0   :  { %13 = vsyncpa [#allocation3], 0  ;;  %s8022_s0 = inlined_call_operand.vmem [shape: f32[2,256,36], index: 0, kind: input, shape index: {}]   ;;  %s8023_s1 = inlined_call_operand.vmem [shape: f32[36,32], index: 1, kind: input, shape index: {}]   ;;  %s8024_s2 = inlined_call_operand.vmem [shape: f32[1,32], index: 2, kind: input, shape index: {}]   ;;  %s8025_s3 = inlined_call_operand.vmem [shape: f32[1,32], index: 3, kind: input, shape index: {}]   ;;  %s8026_s4 = inlined_call_operand.vmem [shape: f32[1,32], index: 4, kind: input, shape index: {}]   ;;  %s8027_s5 = inlined_call_operand.vmem [shape: f32[32,32], index: 5, kind: input, shape index: {}]   ;;  %s8028_s6 = inlined_call_operand.vmem [shape: f32[288,128], index: 6, kind: input, shape index: {}]   ;;  %s8029_s7 = inlined_call_operand.vmem [shape: f32[1,128], index: 7, kind: input, shape index: {}]   ;;  %s8030_s8 = inlined_call_operand.hbm [shape: f32[2,256,128], index: 8, kind: output, shape index: {}]  }
   0x1   :  { %15 = vsyncpa [#allocation3 + $0x1], 0  ;;  %s4814_s27 = smov 0   ;;  %s4816_s28 = smov 0  }
   0x2   :  { %s4818_s29 = smov 0   ;;  %s4820_s30 = smov 0  }
   0x3 LB: > { %s4835_s5 = sadd.s32 4294967295, %s4760_s30   ;;  %s3696_s9 = sadd.s32 4294967294, %s4760_s30   ;;  %s4760_s30 = sphi %s4820_s30, %s9168_s30   ;;  %s4756_s29 = sphi %s4818_s29, %s9167_s29   ;;  %s4752_s28 = sphi %s4816_s28, %s9166_s28   ;;  %s4748_s27 = sphi %s4814_s27, %s9165_s27  }
   0x4   : > { %s4839_s10 = sadd.s32 1, %s4760_s30   ;;  %s201_s11 = sadd.s32 1, %s4756_s29 }
   0x5   : > { %s198_s12 = ssub.s32 %s4760_s30, %s4839_s10  ;;  %p211_p0 = scmp.ne.s32.totalorder %s4756_s29, %s4752_s28 }
   0x6   : > { %p199_p1 = scmp.eq.s32.totalorder %s198_s12, 0  ;;  %p212_p2 = scmp.eq.s32.totalorder %s4835_s5, 1 }
   0x7   : > { %p217_p3 = scmp.ne.s32.totalorder %s4752_s28, %s4748_s27  ;;  %p218_p4 = scmp.eq.s32.totalorder %s3696_s9, 1 }
   0x8   : > { %s4850_s13 = scalar_select %p199_p1, %s4756_s29, %s201_s11  }
   0x9   : > { %p4852_p5 = por %p212_p2, %p211_p0  ;;  %p4856_p6 = por %p218_p4, %p217_p3 }
   0xa   : > { %p3699_p7 = scmp.ge.s32.totalorder %s4760_s30, 1  ;;  %p265_p8 = scmp.lt.s32.totalorder %s4760_s30, 3 }
   0xc   : > { %p266_p9 = pnand %p3699_p7, %p265_p8 }
   0xe   : > { %269 = sbr.rel (%p266_p9) target bundleno = 1009 (0x3f1), region = 52 }
  0x13   : > { %v340_v0 = vld [vmem:[%s8023_s1 + $0x20] sm:$0xf]  ;;  %vm445_vm0 = vcmask 1043456   ;;  %v339_v1 = vld [vmem:[%s8023_s1 + $0x18] sm:$0xff]  ;;  %p299_p10 = scmp.lt.s32.totalorder %s4835_s5, 1  ;;  %v338_v2 = vld [vmem:[%s8023_s1 + $0x10] sm:$0xff] }
  0x14   : > { %3882 = vmatprep.subr.msk.mxu0 %vm445_vm0, %v340_v0  ;;  %v337_v3 = vld [vmem:[%s8023_s1 + $0x8] sm:$0xff]  ;;  %vm348_vm1 = vcmask 293888   ;;  %v336_v4 = vld [vmem:[%s8023_s1] sm:$0xff]  ;;  %vm8117_vm2 = vcmask 261120   ;;  %vm8119_vm3 = vcmask 1040384   ;;  %s4763_s23 = smov 32  }
  0x15   : > { %3883 = vmatpush3.msk.msra.mxu0 %vm445_vm0, %v340_v0  ;;  %s300_s22 = scalar_select %p299_p10, %s4835_s5, 1  ;;  %v4951_v37 = vld [vmem:[%s8024_s2] ss:$0 sm:$0xff]  ;;  %vm8118_vm5 = vcmask 1046528  }
  0x16   : > { %3884 = vmatprep.subr.mxu0 %v339_v1  ;;  %s4764_s24 = smov 96   ;;  %s4765_s17 = smov 64  }
  0x17   : > { %3885 = vmatpush3.msra.mxu0 %v339_v1  ;;  %s3807_s25 = sshll.u32 %s300_s22, 8  ;;  %s3808_s20 = sshll.u32 %s4835_s5, 12 }
  0x18   : > { %3886 = vmatprep.subr.mxu0 %v338_v2  ;;  %s4879_s11 = scalar_lea.vmem %s8022_s0, %s3807_s25  ;;  %s4766_s25 = smov [#allocation2]  }
  0x19   : > { %3887 = vmatpush3.msra.mxu0 %v338_v2  ;;  %v304_v5 = vld [vmem:[%s4879_s11] sm:$0xff]  ;;  %v305_v6 = vld [vmem:[%s4879_s11 + $0x8] sm:$0xff]  ;;  %v306_v7 = vld [vmem:[%s4879_s11 + $0x10] sm:$0xff]  ;;  %s4704_s26 = sshll.u32 %s4766_s25, 4  ;;  %s4705_s26 = int_to_ptr.vmem [resolvable:$false] %s4704_s26 }
  0x1a   : > { %3888 = vmatprep.subr.mxu0 %v337_v3  ;;  %3892 = vmatprep.mubr.msk.f32.mxu0 %vm348_vm1, %v304_v5  ;;  %v307_v8 = vld [vmem:[%s4879_s11 + $0x18] sm:$0xff]  ;;  %v308_v9 = vld [vmem:[%s4879_s11 + $0x20] sm:$0xff]  ;;  %v309_v10 = vld [vmem:[%s4879_s11 + $0x28] sm:$0xff]  ;;  %s4706_s9 = scalar_lea.vmem %s4705_s26, 8192 }
  0x1b   : > { %3889 = vmatpush3.msra.mxu0 %v337_v3  ;;  %v310_v11 = vld [vmem:[%s4879_s11 + $0x30] sm:$0xff]  ;;  %v311_v12 = vld [vmem:[%s4879_s11 + $0x38] sm:$0xff]  ;;  %v312_v13 = vld [vmem:[%s4879_s11 + $0x40] sm:$0xff] }
  0x1c   : > { %3890 = vmatprep.subr.mxu0 %v336_v4  ;;  %v313_v14 = vld [vmem:[%s4879_s11 + $0x48] sm:$0xff]  ;;  %v314_v15 = vld [vmem:[%s4879_s11 + $0x50] sm:$0xff]  ;;  %v315_v16 = vld [vmem:[%s4879_s11 + $0x58] sm:$0xff] }
  0x1d   : > { %3891 = vmatpush3.msra.mxu0 %v336_v4  ;;  %v316_v17 = vld [vmem:[%s4879_s11 + $0x60] sm:$0xff]  ;;  %v317_v18 = vld [vmem:[%s4879_s11 + $0x68] sm:$0xff]  ;;  %v318_v19 = vld [vmem:[%s4879_s11 + $0x70] sm:$0xff] }
  0x1e   : > { %3893 = vmatmul.mubr.msk.f32.vlgmr.msra.gmra.mxu0 %vm348_vm1, %v305_v6  ;;  %v319_v20 = vld [vmem:[%s4879_s11 + $0x78] sm:$0xff]  ;;  %v320_v21 = vld [vmem:[%s4879_s11 + $0x80] sm:$0xff]  ;;  %v321_v22 = vld [vmem:[%s4879_s11 + $0x88] sm:$0xff] }
  0x1f   : > { %3895 = vmatprep.mubr.msk.f32.mxu0 %vm348_vm1, %v306_v7  ;;  %v322_v23 = vld [vmem:[%s4879_s11 + $0x90] sm:$0xff]  ;;  %v323_v24 = vld [vmem:[%s4879_s11 + $0x98] sm:$0xff]  ;;  %v324_v25 = vld [vmem:[%s4879_s11 + $0xa0] sm:$0xff] }
  0x20   : > { %v325_v26 = vld [vmem:[%s4879_s11 + $0xa8] sm:$0xff]  ;;  %v326_v27 = vld [vmem:[%s4879_s11 + $0xb0] sm:$0xff]  ;;  %v327_v28 = vld [vmem:[%s4879_s11 + $0xb8] sm:$0xff] }
  0x21   : > { %v328_v29 = vld [vmem:[%s4879_s11 + $0xc0] sm:$0xff]  ;;  %v329_v30 = vld [vmem:[%s4879_s11 + $0xc8] sm:$0xff]  ;;  %v330_v31 = vld [vmem:[%s4879_s11 + $0xd0] sm:$0xff] }
  0x22   : > { %3896 = vmatmul.mubr.msk.f32.gmra.mxu0 %vm348_vm1, %v307_v8  ;;  %v331_v32 = vld [vmem:[%s4879_s11 + $0xd8] sm:$0xff]  ;;  %v332_v33 = vld [vmem:[%s4879_s11 + $0xe0] sm:$0xff]  ;;  %v333_v34 = vld [vmem:[%s4879_s11 + $0xe8] sm:$0xff] }
  0x23   : > { %3898 = vmatprep.mubr.msk.f32.mxu0 %vm348_vm1, %v308_v9  ;;  %v334_v35 = vld [vmem:[%s4879_s11 + $0xf0] sm:$0xff]  ;;  %v335_v36 = vld [vmem:[%s4879_s11 + $0xf8] sm:$0xff]  ;;  %s296_s11 = sand.u32 1, %s4752_s28  }
  0x24   : > { %s3700_s12 = sshll.u32 %s296_s11, 8  ;;  %s7982_s5 = scalar_lea.sflag [#allocation3], %s296_s11 }
  0x25   : > { %s7892_s19 = scalar_lea.vmem [#allocation2], %s3700_s12 }
  0x26   : > { %3899 = vmatmul.mubr.msk.f32.gmra.mxu0 %vm348_vm1, %v309_v10  ;;  %s3634_s21 = sshll.u32 %s7892_s19, 4  ;;  %s7977_s21 = int_to_ptr.vmem [resolvable:$true] %s3634_s21 }
  0x27   : > { %3901 = vmatprep.mubr.msk.f32.mxu0 %vm348_vm1, %v310_v11  ;;  %p4707_p0 = scmp.lt.s32.totalorder %s7977_s21, %s4705_s26 }
  0x2a   : > { %3902 = vmatmul.mubr.msk.f32.gmra.mxu0 %vm348_vm1, %v311_v12 }
  0x2b   : > { %3904 = vmatprep.mubr.msk.f32.mxu0 %vm348_vm1, %v312_v13 }
  0x2e   : > { %3905 = vmatmul.mubr.msk.f32.gmra.mxu0 %vm348_vm1, %v313_v14 }
  0x2f   : > { %3907 = vmatprep.mubr.msk.f32.mxu0 %vm348_vm1, %v314_v15 }
  0x32   : > { %3908 = vmatmul.mubr.msk.f32.gmra.mxu0 %vm348_vm1, %v315_v16 }
  0x33   : > { %3910 = vmatprep.mubr.msk.f32.mxu0 %vm348_vm1, %v316_v17 }
  0x36   : > { %3911 = vmatmul.mubr.msk.f32.gmra.mxu0 %vm348_vm1, %v317_v18 }
  0x37   : > { %3913 = vmatprep.mubr.msk.f32.mxu0 %vm348_vm1, %v318_v19 }
  0x3a   : > { %3914 = vmatmul.mubr.msk.f32.gmra.mxu0 %vm348_vm1, %v319_v20 }
  0x3b   : > { %3916 = vmatprep.mubr.msk.f32.mxu0 %vm348_vm1, %v320_v21 }
  0x3e   : > { %3917 = vmatmul.mubr.msk.f32.gmra.mxu0 %vm348_vm1, %v321_v22 }
  0x3f   : > { %3919 = vmatprep.mubr.msk.f32.mxu0 %vm348_vm1, %v322_v23 }
  0x42   : > { %3920 = vmatmul.mubr.msk.f32.gmra.mxu0 %vm348_vm1, %v323_v24 }
  0x43   : > { %3922 = vmatprep.mubr.msk.f32.mxu0 %vm348_vm1, %v324_v25 }
  0x46   : > { %3923 = vmatmul.mubr.msk.f32.gmra.mxu0 %vm348_vm1, %v325_v26 }
  0x47   : > { %3925 = vmatprep.mubr.msk.f32.mxu0 %vm348_vm1, %v326_v27 }
  0x4a   : > { %3926 = vmatmul.mubr.msk.f32.gmra.mxu0 %vm348_vm1, %v327_v28 }
  0x4b   : > { %3928 = vmatprep.mubr.msk.f32.mxu0 %vm348_vm1, %v328_v29 }
  0x4e   : > { %3929 = vmatmul.mubr.msk.f32.gmra.mxu0 %vm348_vm1, %v329_v30 }
  0x4f   : > { %3931 = vmatprep.mubr.msk.f32.mxu0 %vm348_vm1, %v330_v31 }
  0x52   : > { %3932 = vmatmul.mubr.msk.f32.gmra.mxu0 %vm348_vm1, %v331_v32 }
  0x53   : > { %3934 = vmatprep.mubr.msk.f32.mxu0 %vm348_vm1, %v332_v33 }
  0x56   : > { %3935 = vmatmul.mubr.msk.f32.gmra.mxu0 %vm348_vm1, %v333_v34 }
  0x57   : > { %3937 = vmatprep.mubr.msk.f32.mxu0 %vm348_vm1, %v334_v35 }
  0x5a   : > { %3938 = vmatmul.mubr.msk.f32.gmra.mxu0 %vm348_vm1, %v335_v36 }
  0xde   : > { %v3894_v38 = vpop.f32.mrf.mxu0 }
  0xdf   : > { %v4954_v39 = vadd.f32 %v3894_v38, %v4951_v37 }
  0xe0   : > { %v515_v40 = vpop.f32.mrf.mxu0 }
  0xe1   : > { %v4957_v41 = vadd.f32 %v4951_v37, %v515_v40  ;;  %v745_v43 = vmul.f32 %v4954_v39, %v4954_v39  ;;  %v676_v48 = vsel %vm8117_vm2, %v4954_v39, 0.0 }
  0xe2   : > { %v3897_v42 = vpop.f32.mrf.mxu0 }
  0xe3   : > { %v675_v44 = vsel %vm8117_vm2, %v4957_v41, 0.0  ;;  %v744_v45 = vmul.f32 %v4957_v41, %v4957_v41  ;;  %v4966_v46 = vadd.f32 %v3897_v42, %v4951_v37  ;;  %v777_v54 = vsel %vm8117_vm2, %v745_v43, 0.0 }
  0xe4   : > { %v525_v47 = vpop.f32.mrf.mxu0  ;;  %v677_v51 = vadd.f32 %v676_v48, %v675_v44 }
  0xe5   : > { %v776_v49 = vsel %vm8117_vm2, %v744_v45, 0.0  ;;  %v4972_v50 = vadd.f32 %v4951_v37, %v525_v47  ;;  %v747_v52 = vmul.f32 %v4966_v46, %v4966_v46  ;;  %v680_v61 = vsel %vm8117_vm2, %v4966_v46, 0.0 }
  0xe6   : > { %v3900_v53 = vpop.f32.mrf.mxu0  ;;  %v778_v58 = vadd.f32 %v777_v54, %v776_v49 }
  0xe7   : > { %v678_v55 = vsel %vm8117_vm2, %v4972_v50, 0.0  ;;  %v746_v56 = vmul.f32 %v4972_v50, %v4972_v50  ;;  %v4982_v57 = vadd.f32 %v3900_v53, %v4951_v37  ;;  %v781_v0 = vsel %vm8117_vm2, %v747_v52, 0.0 }
  0xe8   : > { %v679_v59 = vadd.f32 %v678_v55, %v677_v51  ;;  %v535_v60 = vpop.f32.mrf.mxu0 }
  0xe9   : > { %v779_v62 = vsel %vm8117_vm2, %v746_v56, 0.0  ;;  %v4988_v63 = vadd.f32 %v4951_v37, %v535_v60  ;;  %v749_v4 = vmul.f32 %v4982_v57, %v4982_v57  ;;  %v684_v11 = vsel %vm8117_vm2, %v4982_v57, 0.0 }
  0xea   : > { %v780_v1 = vadd.f32 %v779_v62, %v778_v58  ;;  %v681_v2 = vadd.f32 %v680_v61, %v679_v59  ;;  %v3903_v3 = vpop.f32.mrf.mxu0  ;;  %v8041_v62 = vmov 0.0  }
  0xeb   : > { %v682_v5 = vsel %vm8117_vm2, %v4988_v63, 0.0  ;;  %v748_v6 = vmul.f32 %v4988_v63, %v4988_v63  ;;  %v4998_v7 = vadd.f32 %v3903_v3, %v4951_v37  ;;  %v785_v18 = vsel %vm8117_vm2, %v749_v4, 0.0  ;;  %3996 = vmatprep.subr.mxu1 %v8041_v62  ;;  %3138 = vmatprep.subr.mxu0 %v8041_v62 }
  0xec   : > { %v683_v8 = vadd.f32 %v682_v5, %v681_v2  ;;  %v782_v9 = vadd.f32 %v781_v0, %v780_v1  ;;  %v545_v10 = vpop.f32.mrf.mxu0 }
  0xed   : > { %v783_v12 = vsel %vm8117_vm2, %v748_v6, 0.0  ;;  %v5004_v13 = vadd.f32 %v4951_v37, %v545_v10  ;;  %v751_v15 = vmul.f32 %v4998_v7, %v4998_v7  ;;  %v688_v25 = vsel %vm8117_vm2, %v4998_v7, 0.0 }
  0xee   : > { %v784_v14 = vadd.f32 %v783_v12, %v782_v9  ;;  %v685_v16 = vadd.f32 %v684_v11, %v683_v8  ;;  %v3906_v17 = vpop.f32.mrf.mxu0 }
  0xef   : > { %v686_v19 = vsel %vm8117_vm2, %v5004_v13, 0.0  ;;  %v750_v20 = vmul.f32 %v5004_v13, %v5004_v13  ;;  %v5014_v21 = vadd.f32 %v3906_v17, %v4951_v37  ;;  %v789_v28 = vsel %vm8117_vm2, %v751_v15, 0.0 }
  0xf0   : > { %v687_v22 = vadd.f32 %v686_v19, %v685_v16  ;;  %v786_v23 = vadd.f32 %v785_v18, %v784_v14  ;;  %v555_v24 = vpop.f32.mrf.mxu0 }
  0xf1   : > { %v787_v26 = vsel %vm8117_vm2, %v750_v20, 0.0  ;;  %v5020_v27 = vadd.f32 %v4951_v37, %v555_v24  ;;  %v753_v32 = vmul.f32 %v5014_v21, %v5014_v21  ;;  %v692_v42 = vsel %vm8117_vm2, %v5014_v21, 0.0 }
  0xf2   : > { %v788_v29 = vadd.f32 %v787_v26, %v786_v23  ;;  %v689_v30 = vadd.f32 %v688_v25, %v687_v22  ;;  %v3909_v31 = vpop.f32.mrf.mxu0 }
  0xf3   : > { %v690_v33 = vsel %vm8117_vm2, %v5020_v27, 0.0  ;;  %v752_v34 = vmul.f32 %v5020_v27, %v5020_v27  ;;  %v5030_v35 = vadd.f32 %v3909_v31, %v4951_v37  ;;  %v793_v51 = vsel %vm8117_vm2, %v753_v32, 0.0 }
  0xf4   : > { %v691_v36 = vadd.f32 %v690_v33, %v689_v30  ;;  %v790_v38 = vadd.f32 %v789_v28, %v788_v29  ;;  %v565_v40 = vpop.f32.mrf.mxu0 }
  0xf5   : > { %v791_v43 = vsel %vm8117_vm2, %v752_v34, 0.0  ;;  %v5036_v44 = vadd.f32 %v4951_v37, %v565_v40  ;;  %v755_v47 = vmul.f32 %v5030_v35, %v5030_v35  ;;  %v696_v59 = vsel %vm8117_vm2, %v5030_v35, 0.0 }
  0xf6   : > { %v792_v45 = vadd.f32 %v791_v43, %v790_v38  ;;  %v693_v48 = vadd.f32 %v692_v42, %v691_v36  ;;  %v3912_v49 = vpop.f32.mrf.mxu0 }
  0xf7   : > { %v694_v52 = vsel %vm8117_vm2, %v5036_v44, 0.0  ;;  %v754_v53 = vmul.f32 %v5036_v44, %v5036_v44  ;;  %v5046_v54 = vadd.f32 %v3912_v49, %v4951_v37  ;;  %v797_v0 = vsel %vm8117_vm2, %v755_v47, 0.0 }
  0xf8   : > { %v695_v55 = vadd.f32 %v694_v52, %v693_v48  ;;  %v794_v56 = vadd.f32 %v793_v51, %v792_v45  ;;  %v575_v58 = vpop.f32.mrf.mxu0 }
  0xf9   : > { %v795_v60 = vsel %vm8117_vm2, %v754_v53, 0.0  ;;  %v5052_v61 = vadd.f32 %v4951_v37, %v575_v58  ;;  %v757_v4 = vmul.f32 %v5046_v54, %v5046_v54  ;;  %v700_v12 = vsel %vm8117_vm2, %v5046_v54, 0.0 }
  0xfa   : > { %v796_v1 = vadd.f32 %v795_v60, %v794_v56  ;;  %v697_v2 = vadd.f32 %v696_v59, %v695_v55  ;;  %v3915_v3 = vpop.f32.mrf.mxu0 }
  0xfb   : > { %v698_v5 = vsel %vm8117_vm2, %v5052_v61, 0.0  ;;  %v756_v6 = vmul.f32 %v5052_v61, %v5052_v61  ;;  %v5064_v8 = vadd.f32 %v3915_v3, %v4951_v37  ;;  %v801_v20 = vsel %vm8117_vm2, %v757_v4, 0.0 }
  0xfc   : > { %v699_v9 = vadd.f32 %v698_v5, %v697_v2  ;;  %v798_v10 = vadd.f32 %v797_v0, %v796_v1  ;;  %v585_v11 = vpop.f32.mrf.mxu0 }
  0xfd   : > { %v799_v14 = vsel %vm8117_vm2, %v756_v6, 0.0  ;;  %v5070_v15 = vadd.f32 %v4951_v37, %v585_v11  ;;  %v759_v17 = vmul.f32 %v5064_v8, %v5064_v8  ;;  %v704_v29 = vsel %vm8117_vm2, %v5064_v8, 0.0 }
  0xfe   : > { %v800_v16 = vadd.f32 %v799_v14, %v798_v10  ;;  %v701_v18 = vadd.f32 %v700_v12, %v699_v9  ;;  %v3918_v19 = vpop.f32.mrf.mxu0 }
  0xff   : > { %v702_v22 = vsel %vm8117_vm2, %v5070_v15, 0.0  ;;  %v758_v23 = vmul.f32 %v5070_v15, %v5070_v15  ;;  %v5080_v24 = vadd.f32 %v3918_v19, %v4951_v37  ;;  %v805_v32 = vsel %vm8117_vm2, %v759_v17, 0.0 }
 0x100   : > { %v703_v25 = vadd.f32 %v702_v22, %v701_v18  ;;  %v802_v26 = vadd.f32 %v801_v20, %v800_v16  ;;  %v595_v28 = vpop.f32.mrf.mxu0 }
 0x101   : > { %v803_v30 = vsel %vm8117_vm2, %v758_v23, 0.0  ;;  %v5086_v31 = vadd.f32 %v4951_v37, %v595_v28  ;;  %v761_v38 = vmul.f32 %v5080_v24, %v5080_v24  ;;  %v708_v49 = vsel %vm8117_vm2, %v5080_v24, 0.0 }
 0x102   : > { %v804_v33 = vadd.f32 %v803_v30, %v802_v26  ;;  %v705_v34 = vadd.f32 %v704_v29, %v703_v25  ;;  %v3921_v36 = vpop.f32.mrf.mxu0 }
 0x103   : > { %v706_v40 = vsel %vm8117_vm2, %v5086_v31, 0.0  ;;  %v760_v42 = vmul.f32 %v5086_v31, %v5086_v31  ;;  %v5096_v43 = vadd.f32 %v3921_v36, %v4951_v37  ;;  %v809_v59 = vsel %vm8117_vm2, %v761_v38, 0.0 }
 0x104   : > { %v707_v45 = vadd.f32 %v706_v40, %v705_v34  ;;  %v806_v47 = vadd.f32 %v805_v32, %v804_v33  ;;  %v605_v48 = vpop.f32.mrf.mxu0 }
 0x105   : > { %v807_v51 = vsel %vm8117_vm2, %v760_v42, 0.0  ;;  %v5102_v52 = vadd.f32 %v4951_v37, %v605_v48  ;;  %v763_v55 = vmul.f32 %v5096_v43, %v5096_v43  ;;  %v712_v5 = vsel %vm8117_vm2, %v5096_v43, 0.0 }
 0x106   : > { %v808_v53 = vadd.f32 %v807_v51, %v806_v47  ;;  %v709_v56 = vadd.f32 %v708_v49, %v707_v45  ;;  %v3924_v58 = vpop.f32.mrf.mxu0 }
 0x107   : > { %v710_v60 = vsel %vm8117_vm2, %v5102_v52, 0.0  ;;  %v762_v0 = vmul.f32 %v5102_v52, %v5102_v52  ;;  %v5112_v1 = vadd.f32 %v3924_v58, %v4951_v37  ;;  %v813_v10 = vsel %vm8117_vm2, %v763_v55, 0.0 }
 0x108   : > { %v711_v2 = vadd.f32 %v710_v60, %v709_v56  ;;  %v810_v3 = vadd.f32 %v809_v59, %v808_v53  ;;  %v615_v4 = vpop.f32.mrf.mxu0 }
 0x109   : > { %v811_v6 = vsel %vm8117_vm2, %v762_v0, 0.0  ;;  %v5118_v9 = vadd.f32 %v4951_v37, %v615_v4  ;;  %v765_v16 = vmul.f32 %v5112_v1, %v5112_v1  ;;  %v716_v25 = vsel %vm8117_vm2, %v5112_v1, 0.0 }
 0x10a   : > { %v812_v11 = vadd.f32 %v811_v6, %v810_v3  ;;  %v713_v12 = vadd.f32 %v712_v5, %v711_v2  ;;  %v3927_v14 = vpop.f32.mrf.mxu0 }
 0x10b   : > { %v714_v17 = vsel %vm8117_vm2, %v5118_v9, 0.0  ;;  %v764_v18 = vmul.f32 %v5118_v9, %v5118_v9  ;;  %v5128_v19 = vadd.f32 %v3927_v14, %v4951_v37  ;;  %v817_v34 = vsel %vm8117_vm2, %v765_v16, 0.0 }
 0x10c   : > { %v715_v20 = vadd.f32 %v714_v17, %v713_v12  ;;  %v814_v22 = vadd.f32 %v813_v10, %v812_v11  ;;  %v625_v23 = vpop.f32.mrf.mxu0 }
 0x10d   : > { %v815_v26 = vsel %vm8117_vm2, %v764_v18, 0.0  ;;  %v5134_v28 = vadd.f32 %v4951_v37, %v625_v23  ;;  %v767_v30 = vmul.f32 %v5128_v19, %v5128_v19  ;;  %v720_v48 = vsel %vm8117_vm2, %v5128_v19, 0.0 }
 0x10e   : > { %v816_v29 = vadd.f32 %v815_v26, %v814_v22  ;;  %v717_v32 = vadd.f32 %v716_v25, %v715_v20  ;;  %v3930_v33 = vpop.f32.mrf.mxu0 }
 0x10f   : > { %v718_v36 = vsel %vm8117_vm2, %v5134_v28, 0.0  ;;  %v766_v38 = vmul.f32 %v5134_v28, %v5134_v28  ;;  %v5144_v40 = vadd.f32 %v3930_v33, %v4951_v37  ;;  %v821_v53 = vsel %vm8117_vm2, %v767_v30, 0.0 }
 0x110   : > { %v719_v42 = vadd.f32 %v718_v36, %v717_v32  ;;  %v818_v45 = vadd.f32 %v817_v34, %v816_v29  ;;  %v635_v47 = vpop.f32.mrf.mxu0 }
 0x111   : > { %v819_v49 = vsel %vm8117_vm2, %v766_v38, 0.0  ;;  %v5150_v51 = vadd.f32 %v4951_v37, %v635_v47  ;;  %v769_v59 = vmul.f32 %v5144_v40, %v5144_v40  ;;  %v724_v6 = vsel %vm8117_vm2, %v5144_v40, 0.0 }
 0x112   : > { %v820_v55 = vadd.f32 %v819_v49, %v818_v45  ;;  %v721_v56 = vadd.f32 %v720_v48, %v719_v42  ;;  %v3933_v58 = vpop.f32.mrf.mxu0 }
 0x113   : > { %v722_v60 = vsel %vm8117_vm2, %v5150_v51, 0.0  ;;  %v768_v0 = vmul.f32 %v5150_v51, %v5150_v51  ;;  %v5160_v2 = vadd.f32 %v3933_v58, %v4951_v37  ;;  %v825_v18 = vsel %vm8117_vm2, %v769_v59, 0.0 }
 0x114   : > { %v723_v3 = vadd.f32 %v722_v60, %v721_v56  ;;  %v822_v4 = vadd.f32 %v821_v53, %v820_v55  ;;  %v645_v5 = vpop.f32.mrf.mxu0 }
 0x115   : > { %v823_v10 = vsel %vm8117_vm2, %v768_v0, 0.0  ;;  %v5166_v11 = vadd.f32 %v4951_v37, %v645_v5  ;;  %v771_v14 = vmul.f32 %v5160_v2, %v5160_v2  ;;  %v728_v30 = vsel %vm8117_vm2, %v5160_v2, 0.0 }
 0x116   : > { %v824_v12 = vadd.f32 %v823_v10, %v822_v4  ;;  %v725_v16 = vadd.f32 %v724_v6, %v723_v3  ;;  %v3936_v17 = vpop.f32.mrf.mxu0 }
 0x117   : > { %v726_v20 = vsel %vm8117_vm2, %v5166_v11, 0.0  ;;  %v770_v22 = vmul.f32 %v5166_v11, %v5166_v11  ;;  %v5176_v23 = vadd.f32 %v3936_v17, %v4951_v37  ;;  %v829_v34 = vsel %vm8117_vm2, %v771_v14, 0.0 }
 0x118   : > { %v727_v25 = vadd.f32 %v726_v20, %v725_v16  ;;  %v826_v26 = vadd.f32 %v825_v18, %v824_v12  ;;  %v655_v29 = vpop.f32.mrf.mxu0 }
 0x119   : > { %v827_v32 = vsel %vm8117_vm2, %v770_v22, 0.0  ;;  %v5182_v33 = vadd.f32 %v4951_v37, %v655_v29  ;;  %v773_v45 = vmul.f32 %v5176_v23, %v5176_v23  ;;  %v732_v58 = vsel %vm8117_vm2, %v5176_v23, 0.0 }
 0x11a   : > { %v828_v36 = vadd.f32 %v827_v32, %v826_v26  ;;  %v729_v38 = vadd.f32 %v728_v30, %v727_v25  ;;  %v3939_v42 = vpop.f32.mrf.mxu0 }
 0x11b   : > { %v730_v47 = vsel %vm8117_vm2, %v5182_v33, 0.0  ;;  %v772_v48 = vmul.f32 %v5182_v33, %v5182_v33  ;;  %v5192_v49 = vadd.f32 %v3939_v42, %v4951_v37  ;;  %v833_v4 = vsel %vm8117_vm2, %v773_v45, 0.0 }
 0x11c   : > { %v731_v53 = vadd.f32 %v730_v47, %v729_v38  ;;  %v830_v55 = vadd.f32 %v829_v34, %v828_v36  ;;  %v665_v56 = vpop.f32.mrf.mxu0 }
 0x11d   : > { %v831_v59 = vsel %vm8117_vm2, %v772_v48, 0.0  ;;  %v666_v60 = vadd.f32 %v4951_v37, %v665_v56  ;;  %v775_v5 = vmul.f32 %v5192_v49, %v5192_v49  ;;  %v736_v16 = vsel %vm8117_vm2, %v5192_v49, 0.0 }
 0x11e   : > { %v832_v0 = vadd.f32 %v831_v59, %v830_v55  ;;  %v733_v3 = vadd.f32 %v732_v58, %v731_v53 }
 0x11f   : > { %v734_v6 = vsel %vm8117_vm2, %v666_v60, 0.0  ;;  %v774_v10 = vmul.f32 %v666_v60, %v666_v60  ;;  %v837_v37 = vsel %vm8117_vm2, %v775_v5, 0.0 }
 0x120   : > { %v735_v12 = vadd.f32 %v734_v6, %v733_v3  ;;  %v834_v14 = vadd.f32 %v833_v4, %v832_v0 }
 0x121   : > { %v835_v17 = vsel %vm8117_vm2, %v774_v10, 0.0 }
 0x122   : > { %v737_v18 = vadd.f32 %v736_v16, %v735_v12  ;;  %v836_v20 = vadd.f32 %v835_v17, %v834_v14 }
 0x124   : > { %v738_v22 = vrot.slane %v737_v18, 4  ;;  %v838_v25 = vadd.f32 %v837_v37, %v836_v20 }
 0x126   : > { %v739_v26 = vadd.f32 %v738_v22, %v737_v18  ;;  %v839_v29 = vrot.slane %v838_v25, 4 }
 0x128   : > { %v740_v30 = vrot.slane %v739_v26, 2  ;;  %v840_v32 = vadd.f32 %v839_v29, %v838_v25 }
 0x12a   : > { %v741_v34 = vadd.f32 %v740_v30, %v739_v26  ;;  %v841_v36 = vrot.slane %v840_v32, 2 }
 0x12c   : > { %v742_v38 = vrot.slane %v741_v34, 1  ;;  %v842_v42 = vadd.f32 %v841_v36, %v840_v32 }
 0x12e   : > { %v743_v45 = vadd.f32 %v742_v38, %v741_v34  ;;  %v843_v47 = vrot.slane %v842_v42, 1 }
 0x130   : > { %v844_v48 = vadd.f32 %v843_v47, %v842_v42  ;;  %v5206_v53 = vmul.f32 0.00390625, %v743_v45 }
 0x132   : > { %v847_v55 = vmul.f32 0.00390625, %v844_v48  ;;  %v848_v56 = vmul.f32 %v5206_v53, %v5206_v53  ;;  %v883_v58 = vsub.f32 %v666_v60, %v5206_v53  ;;  %v866_v3 = vsub.f32 %v5046_v54, %v5206_v53 }
 0x133   : > { %v869_v4 = vsub.f32 %v5086_v31, %v5206_v53  ;;  %v870_v5 = vsub.f32 %v5080_v24, %v5206_v53  ;;  %v871_v6 = vsub.f32 %v5102_v52, %v5206_v53  ;;  %v872_v12 = vsub.f32 %v5096_v43, %v5206_v53 }
 0x134   : > { %v849_v59 = vsub.f32 %v847_v55, %v848_v56  ;;  %v873_v60 = vsub.f32 %v5118_v9, %v5206_v53  ;;  %v874_v14 = vsub.f32 %v5112_v1, %v5206_v53  ;;  %v875_v16 = vsub.f32 %v5134_v28, %v5206_v53 }
 0x135   : > { %v876_v17 = vsub.f32 %v5128_v19, %v5206_v53  ;;  %v877_v24 = vsub.f32 %v5150_v51, %v5206_v53  ;;  %v878_v52 = vsub.f32 %v5144_v40, %v5206_v53  ;;  %v879_v43 = vsub.f32 %v5166_v11, %v5206_v53 }
 0x136   : > { %v850_v0 = vmax.f32 %v849_v59, 0.0  ;;  %v880_v9 = vsub.f32 %v5160_v2, %v5206_v53  ;;  %v881_v1 = vsub.f32 %v5182_v33, %v5206_v53  ;;  %v882_v28 = vsub.f32 %v5176_v23, %v5206_v53  ;;  %v5252_v2 = vld [vmem:[%s8025_s3] ss:$0 sm:$0xff] }
 0x137   : > { %v884_v19 = vsub.f32 %v5192_v49, %v5206_v53  ;;  %v856_v51 = vsub.f32 %v4966_v46, %v5206_v53  ;;  %v857_v40 = vsub.f32 %v4988_v63, %v5206_v53  ;;  %v5260_v46 = vld [vmem:[%s8026_s4] ss:$0 sm:$0xff]  ;;  %v853_v37 = vsub.f32 %v4957_v41, %v5206_v53 }
 0x138   : > { %v851_v10 = vadd.f32 1e-06, %v850_v0  ;;  %v854_v25 = vsub.f32 %v4954_v39, %v5206_v53  ;;  %v855_v30 = vsub.f32 %v4972_v50, %v5206_v53  ;;  %v858_v32 = vsub.f32 %v4982_v57, %v5206_v53 }
 0x139   : > { %v859_v41 = vsub.f32 %v5004_v13, %v5206_v53 }
 0x13a   : > { %4570 = vrsqrt.f32 %v851_v10 }
 0x147   : > { %v5247_v18 = vpop.eup %4570 }
 0x148   : > { %v915_v11 = vmul.f32 %v5247_v18, %v883_v58  ;;  %v888_v23 = vmul.f32 %v5247_v18, %v856_v51  ;;  %v889_v33 = vmul.f32 %v5247_v18, %v857_v40  ;;  %v885_v34 = vmul.f32 %v5247_v18, %v853_v37 }
 0x149   : > { %v886_v38 = vmul.f32 %v5247_v18, %v854_v25  ;;  %v5289_v42 = vmul.f32 %v5247_v18, %v870_v5  ;;  %v903_v45 = vmul.f32 %v5247_v18, %v871_v6  ;;  %v904_v50 = vmul.f32 %v5247_v18, %v872_v12 }
 0x14a   : > { %v954_v63 = vmul.f32 %v5252_v2, %v915_v11  ;;  %v927_v49 = vmul.f32 %v5252_v2, %v888_v23  ;;  %v928_v20 = vmul.f32 %v5252_v2, %v889_v33  ;;  %v905_v57 = vmul.f32 %v5247_v18, %v873_v60 }
 0x14b   : > { %v906_v47 = vmul.f32 %v5247_v18, %v874_v14  ;;  %v890_v13 = vmul.f32 %v5247_v18, %v858_v32  ;;  %v907_v48 = vmul.f32 %v5247_v18, %v875_v16  ;;  %v908_v55 = vmul.f32 %v5247_v18, %v876_v17 }
 0x14c   : > { %v5268_v22 = vadd.f32 %v5260_v46, %v954_v63  ;;  %v5273_v26 = vadd.f32 %v5260_v46, %v927_v49  ;;  %v5276_v29 = vadd.f32 %v5260_v46, %v928_v20  ;;  %v909_v56 = vmul.f32 %v5247_v18, %v877_v24 }
 0x14d   : > { %v910_v58 = vmul.f32 %v5247_v18, %v878_v52  ;;  %v911_v59 = vmul.f32 %v5247_v18, %v879_v43  ;;  %v912_v0 = vmul.f32 %v5247_v18, %v880_v9  ;;  %v913_v5 = vmul.f32 %v5247_v18, %v881_v1 }
 0x14e   : > { %v3742_v36 = vmul.f32 -1.442695, %v5273_v26  ;;  %v3743_v39 = vmul.f32 -1.442695, %v5276_v29  ;;  %v914_v6 = vmul.f32 %v5247_v18, %v882_v28  ;;  %v916_v10 = vmul.f32 %v5247_v18, %v884_v19 }
 0x14f   : > { %v860_v12 = vsub.f32 %v4998_v7, %v5206_v53  ;;  %v861_v60 = vsub.f32 %v5020_v27, %v5206_v53  ;;  %v891_v14 = vmul.f32 %v5247_v18, %v859_v41  ;;  %v924_v16 = vmul.f32 %v5252_v2, %v885_v34 }
 0x150   : > { %4572 = vpow2.f32 %v3742_v36  ;;  %v862_v17 = vsub.f32 %v5014_v21, %v5206_v53  ;;  %v863_v24 = vsub.f32 %v5036_v44, %v5206_v53  ;;  %v865_v52 = vsub.f32 %v5052_v61, %v5206_v53 }
 0x151   : > { %4574 = vpow2.f32 %v3743_v39  ;;  %v867_v43 = vsub.f32 %v5070_v15, %v5206_v53  ;;  %v887_v7 = vmul.f32 %v5247_v18, %v855_v30  ;;  %v892_v27 = vmul.f32 %v5247_v18, %v860_v12 }
 0x152   : > { %v893_v9 = vmul.f32 %v5247_v18, %v861_v60  ;;  %v5323_v1 = vadd.f32 %v5260_v46, %v924_v16  ;;  %v894_v21 = vmul.f32 %v5247_v18, %v862_v17  ;;  %v925_v44 = vmul.f32 %v5252_v2, %v886_v38 }
 0x153   : > { %v899_v28 = vmul.f32 %v5247_v18, %v867_v43  ;;  %v929_v61 = vmul.f32 %v5252_v2, %v890_v13  ;;  %v930_v15 = vmul.f32 %v5252_v2, %v891_v14  ;;  %v942_v51 = vmul.f32 %v5252_v2, %v903_v45 }
 0x154   : > { %v3739_v19 = vmul.f32 -1.442695, %v5323_v1  ;;  %v943_v40 = vmul.f32 %v5252_v2, %v904_v50  ;;  %v944_v11 = vmul.f32 %v5252_v2, %v905_v57  ;;  %v945_v23 = vmul.f32 %v5252_v2, %v906_v47 }
 0x155   : > { %v946_v33 = vmul.f32 %v5252_v2, %v907_v48  ;;  %v947_v63 = vmul.f32 %v5252_v2, %v908_v55  ;;  %v948_v49 = vmul.f32 %v5252_v2, %v909_v56  ;;  %v949_v20 = vmul.f32 %v5252_v2, %v910_v58 }
 0x156   : > { %4576 = vpow2.f32 %v3739_v19  ;;  %v950_v37 = vmul.f32 %v5252_v2, %v911_v59  ;;  %v951_v25 = vmul.f32 %v5252_v2, %v912_v0  ;;  %v952_v30 = vmul.f32 %v5252_v2, %v913_v5 }
 0x157   : > { %v953_v32 = vmul.f32 %v5252_v2, %v914_v6  ;;  %v955_v41 = vmul.f32 %v5252_v2, %v916_v10  ;;  %v868_v34 = vsub.f32 %v5064_v8, %v5206_v53  ;;  %v926_v36 = vmul.f32 %v5252_v2, %v887_v7 }
 0x158   : > { %v5348_v39 = vadd.f32 %v5260_v46, %v929_v61  ;;  %v5351_v38 = vadd.f32 %v5260_v46, %v930_v15  ;;  %v864_v45 = vsub.f32 %v5030_v35, %v5206_v53  ;;  %v938_v50 = vmul.f32 %v5252_v2, %v899_v28 }
 0x159   : > { %v895_v57 = vmul.f32 %v5247_v18, %v863_v24  ;;  %v897_v47 = vmul.f32 %v5247_v18, %v865_v52  ;;  %v900_v13 = vmul.f32 %v5247_v18, %v868_v34  ;;  %v931_v55 = vmul.f32 %v5252_v2, %v892_v27 }
 0x15a   : > { %v3744_v8 = vmul.f32 -1.442695, %v5348_v39  ;;  %v932_v56 = vmul.f32 %v5252_v2, %v893_v9  ;;  %v933_v58 = vmul.f32 %v5252_v2, %v894_v21  ;;  %v5364_v59 = vadd.f32 %v5260_v46, %v925_v44 }
 0x15b   : > { %v3745_v5 = vmul.f32 -1.442695, %v5351_v38  ;;  %v5368_v6 = vadd.f32 %v5260_v46, %v926_v36  ;;  %v5371_v12 = vadd.f32 %v5260_v46, %v938_v50  ;;  %v5374_v60 = vadd.f32 %v5260_v46, %v942_v51 }
 0x15c   : > { %4578 = vpow2.f32 %v3744_v8  ;;  %v5377_v14 = vadd.f32 %v5260_v46, %v943_v40  ;;  %v5380_v16 = vadd.f32 %v5260_v46, %v944_v11  ;;  %v5383_v17 = vadd.f32 %v5260_v46, %v945_v23 }
 0x15d   : > { %v4573_v48 = vpop.eup %4572  ;;  %v5386_v24 = vadd.f32 %v5260_v46, %v946_v33  ;;  %v5389_v52 = vadd.f32 %v5260_v46, %v947_v63  ;;  %v5392_v43 = vadd.f32 %v5260_v46, %v948_v49  ;;  %v5395_v7 = vadd.f32 %v5260_v46, %v949_v20 }
 0x15e   : > { %v4575_v35 = vpop.eup %4574  ;;  %v1094_v0 = vadd.f32 1.0, %v4573_v48  ;;  %v5398_v27 = vadd.f32 %v5260_v46, %v950_v37  ;;  %v5401_v9 = vadd.f32 %v5260_v46, %v951_v25  ;;  %v5404_v21 = vadd.f32 %v5260_v46, %v952_v30 }
 0x15f   : > { %v1095_v10 = vadd.f32 1.0, %v4575_v35  ;;  %8322 = vst [vmem:[#allocation5_spill] sm:$0xff] %v5386_v24  ;;  %8323 = vst [vmem:[#allocation6_spill] sm:$0xff] %v5389_v52  ;;  %v5407_v28 = vadd.f32 %v5260_v46, %v953_v32  ;;  %v5410_v44 = vadd.f32 %v5260_v46, %v955_v41  ;;  %v3740_v61 = vmul.f32 -1.442695, %v5364_v59 }
 0x160   : > { %4580 = vrcp.f32 %v1094_v0  ;;  %8324 = vst [vmem:[#allocation7_spill] sm:$0xff] %v5392_v43  ;;  %8325 = vst [vmem:[#allocation8_spill] sm:$0xff] %v5395_v7  ;;  %v3741_v19 = vmul.f32 -1.442695, %v5368_v6  ;;  %v896_v15 = vmul.f32 %v5247_v18, %v864_v45  ;;  %v936_v51 = vmul.f32 %v5252_v2, %v897_v47 }
 0x161   : > { %4582 = vrcp.f32 %v1095_v10  ;;  %8326 = vst [vmem:[#allocation9_spill] sm:$0xff] %v5398_v27  ;;  %8327 = vst [vmem:[#allocation10_spill] sm:$0xff] %v5401_v9  ;;  %v5417_v40 = vadd.f32 %v5260_v46, %v931_v55  ;;  %v939_v23 = vmul.f32 %v5252_v2, %v900_v13  ;;  %v5421_v33 = vadd.f32 %v5260_v46, %v932_v56 }
 0x162   : > { %4584 = vpow2.f32 %v3745_v5  ;;  %8328 = vst [vmem:[#allocation11_spill] sm:$0xff] %v5404_v21  ;;  %8329 = vst [vmem:[#allocation12_spill] sm:$0xff] %v5407_v28  ;;  %v1219_v63 = vlaneseq  ;;  %v898_v49 = vmul.f32 %v5247_v18, %v866_v3  ;;  %v3753_v37 = vmul.f32 -1.442695, %v5371_v12 }
 0x163   : > { %8330 = vst [vmem:[#allocation13_spill] sm:$0xff] %v5410_v44  ;;  %v4577_v11 = vpop.eup %4576  ;;  %4586 = vpow2.f32 %v3740_v61  ;;  %v901_v25 = vmul.f32 %v5247_v18, %v869_v4  ;;  %v934_v30 = vmul.f32 %v5252_v2, %v895_v57  ;;  %v5434_v32 = vadd.f32 %v5260_v46, %v933_v58 }
 0x164   : > { %v1091_v20 = vadd.f32 1.0, %v4577_v11  ;;  %4588 = vpow2.f32 %v3741_v19  ;;  %v935_v41 = vmul.f32 %v5252_v2, %v896_v15  ;;  %v5438_v54 = vadd.f32 %v5260_v46, %v936_v51 }
 0x165   : > { %v3746_v3 = vmul.f32 -1.442695, %v5417_v40  ;;  %v5442_v34 = vadd.f32 %v5260_v46, %v939_v23  ;;  %v3747_v31 = vmul.f32 -1.442695, %v5421_v33  ;;  %v5445_v53 = vshrl.u32 %v1219_v63, 7 }
 0x166   : > { %4590 = vrcp.f32 %v1091_v20  ;;  %v937_v4 = vmul.f32 %v5252_v2, %v898_v49  ;;  %v940_v36 = vmul.f32 %v5252_v2, %v901_v25  ;;  %v5450_v45 = vadd.f32 %v5260_v46, %v934_v30 }
 0x167   : > { %4592 = vpow2.f32 %v3753_v37  ;;  %8331 = vst [vmem:[#allocation14_spill] sm:$0xff] %v5445_v53  ;;  %v3748_v50 = vmul.f32 -1.442695, %v5434_v32  ;;  %v5454_v47 = vadd.f32 %v5260_v46, %v935_v41  ;;  %v3751_v13 = vmul.f32 -1.442695, %v5438_v54 }
 0x168   : > { %4594 = vpow2.f32 %v3746_v3  ;;  %v3754_v48 = vmul.f32 -1.442695, %v5442_v34  ;;  %v1222_v55 = vadd.s32 16, %v5445_v53  ;;  %v941_v35 = vmul.f32 %v5252_v2, %v5289_v42 }
 0x169   : > { %v4579_v18 = vpop.eup %4578  ;;  %4596 = vpow2.f32 %v3747_v31  ;;  %v5465_v0 = vadd.f32 %v5260_v46, %v937_v4  ;;  %v5471_v61 = vadd.f32 %v5260_v46, %v940_v36  ;;  %v3749_v19 = vmul.f32 -1.442695, %v5450_v45 }
 0x16a   : > { %v1096_v57 = vadd.f32 1.0, %v4579_v18  ;;  %v1270_v11 = vand.u32 15, %v1222_v55  ;;  %v5489_v37 = vadd.f32 %v5260_v46, %v941_v35  ;;  %v8336_v18 = vmov 0 }
 0x16b   : > { %v3752_v49 = vmul.f32 -1.442695, %v5465_v0  ;;  %v3755_v30 = vmul.f32 -1.442695, %v5471_v61 }
 0x16c   : > { %4598 = vrcp.f32 %v1096_v57  ;;  %vm5495_vm4 = vcmp.ge.s32.totalorder %v1270_v11, 1  ;;  %v3756_v36 = vmul.f32 -1.442695, %v5489_v37 }
 0x16d   : > { %v4581_v8 = vpop.eup %4580  ;;  %4600 = vpow2.f32 %v3748_v50  ;;  %v8337_v18 = vsel %vm5495_vm4, 4294967295, %v8336_v18 }
 0x16e   : > { %v4583_v56 = vpop.eup %4582  ;;  %v5460_v58 = vmul.f32 %v4581_v8, %v5273_v26  ;;  %v3750_v26 = vmul.f32 -1.442695, %v5454_v47  ;;  %4602 = vpow2.f32 %v3751_v13  ;;  %8338 = vst [vmem:[#allocation19_spill] sm:$0xff] %v8337_v18 }
 0x16f   : > { %v4585_v5 = vpop.eup %4584  ;;  %v5468_v10 = vmul.f32 %v4583_v56, %v5276_v29  ;;  %4604 = vpow2.f32 %v3754_v48 }
 0x170   : > { %8332 = vst [vmem:[#allocation15_spill] sm:$0xff] %v5460_v58  ;;  %v1097_v15 = vadd.f32 1.0, %v4585_v5  ;;  %v8031_v2 = vrot.slane %v5460_v58, 7  ;;  %v4587_v29 = vpop.eup %4586 }
 0x171   : > { %8333 = vst [vmem:[#allocation16_spill] sm:$0xff] %v5468_v10  ;;  %v4115_v42 = vpack.i.bf16 %v5468_v10, %v5460_v58  ;;  %v8034_v51 = vrot.slane %v5468_v10, 7  ;;  %v4589_v23 = vpop.eup %4588  ;;  %v1092_v63 = vadd.f32 1.0, %v4587_v29 }
 0x172   : > { %4606 = vrcp.f32 %v1097_v15  ;;  %v1093_v25 = vadd.f32 1.0, %v4589_v23 }
 0x173   : > { %4116 = vrot.lane.b32.xlu1 %v4115_v42, %s4763_s23  ;;  %4608 = vpow2.f32 %v3749_v19  ;;  %v5486_v20 = vsel %vm8119_vm3, %v8031_v2, %v8034_v51  ;;  %v4591_v41 = vpop.eup %4590  ;;  %v1223_v2 = vadd.s32 24, %v5445_v53 }
 0x174   : > { %8334 = vst [vmem:[#allocation17_spill] sm:$0xff] %v5486_v20  ;;  %4610 = vpow2.f32 %v3750_v26  ;;  %v4593_v3 = vpop.eup %4592  ;;  %v5493_v31 = vmul.f32 %v4591_v41, %v5323_v1  ;;  %v3769_v26 = vmul.f32 -1.442695, %v5268_v22  ;;  %v1226_v41 = vadd.s32 48, %v5445_v53 }
 0x175   : > { %4612 = vrcp.f32 %v1092_v63  ;;  %v1105_v4 = vadd.f32 1.0, %v4593_v3  ;;  %v4595_v57 = vpop.eup %4594  ;;  %v5526_v3 = vadd.s32 56, %v5445_v53 }
 0x176   : > { %8335 = vst [vmem:[#allocation18_spill] sm:$0xff] %v5493_v31  ;;  %4614 = vrcp.f32 %v1093_v25  ;;  %v4105_v46 = vpack.i.bf16 %v5493_v31, %v8041_v62  ;;  %v8037_v50 = vrot.slane %v5493_v31, 7  ;;  %v4597_v13 = vpop.eup %4596  ;;  %v5654_v62 = vadd.s32 112, %v5445_v53 }
 0x177   : > { %4616 = vpow2.f32 %v3752_v49 }
 0x178   : > { %4618 = vpow2.f32 %v3755_v30  ;;  %4106 = vrot.lane.b32.xlu0 %v4105_v46, %s4763_s23  ;;  %v5507_v1 = vsel %vm8119_vm3, 0.0, %v8037_v50  ;;  %v1099_v46 = vadd.f32 1.0, %v4597_v13 }
 0x179   : > { %4620 = vrcp.f32 %v1105_v4  ;;  %8339 = vst [vmem:[#allocation20_spill] sm:$0xff] %v5507_v1  ;;  %v4599_v8 = vpop.eup %4598 }
 0x17a   : > { %v4601_v55 = vpop.eup %4600  ;;  %4622 = vpow2.f32 %v3756_v36  ;;  %v5513_v5 = vmul.f32 %v4599_v8, %v5348_v39  ;;  %v1098_v39 = vadd.f32 1.0, %v4595_v57  ;;  %v1228_v36 = vadd.s32 64, %v5445_v53 }
 0x17b   : > { %v4603_v56 = vpop.eup %4602  ;;  %4624 = vpow2.f32 %v3769_v26  ;;  %v5534_v57 = vadd.s32 72, %v5445_v53 }
 0x17c   : > { %v4605_v35 = vpop.eup %4604  ;;  %8340 = vst [vmem:[#allocation21_spill] sm:$0xff] %v5513_v5  ;;  %v1103_v11 = vadd.f32 1.0, %v4603_v56  ;;  %v1221_v56 = vadd.s32 8, %v5445_v53 }
 0x17d   : > { %v1106_v49 = vadd.f32 1.0, %v4605_v35 }
 0x17e   : > { %4626 = vrcp.f32 %v1103_v11 }
 0x17f   : > { %v4607_v19 = vpop.eup %4606  ;;  %4628 = vrcp.f32 %v1106_v49 }
 0x180   : > { %v4609_v15 = vpop.eup %4608  ;;  %v5517_v42 = vmul.f32 %v4607_v19, %v5351_v38  ;;  %4630 = vrcp.f32 %v1098_v39 }
 0x181   : > { %v4611_v29 = vpop.eup %4610  ;;  %v1101_v26 = vadd.f32 1.0, %v4609_v15  ;;  %4632 = vrcp.f32 %v1099_v46 }
 0x182   : > { %8341 = vst [vmem:[#allocation22_spill] sm:$0xff] %v5517_v42  ;;  %v4613_v23 = vpop.eup %4612  ;;  %v4120_v63 = vpack.i.bf16 %v5517_v42, %v5513_v5 }
 0x183   : > { %v4615_v25 = vpop.eup %4614  ;;  %v5522_v30 = vmul.f32 %v4613_v23, %v5364_v59  ;;  %v1100_v59 = vadd.f32 1.0, %v4601_v55  ;;  %v1102_v23 = vadd.f32 1.0, %v4611_v29  ;;  %v1298_v55 = vand.u32 15, %v1226_v41 }
 0x184   : > { %v4617_v4 = vpop.eup %4616  ;;  %4121 = vrot.lane.b32.xlu1 %v4120_v63, %s4763_s23  ;;  %v5530_v38 = vmul.f32 %v4615_v25, %v5368_v6  ;;  %v1224_v6 = vadd.s32 32, %v5445_v53  ;;  %v1312_v25 = vand.u32 15, %v1228_v36  ;;  %v1263_v29 = vand.u32 15, %v1221_v56 }
 0x185   : > { %8342 = vst [vmem:[#allocation23_spill] sm:$0xff] %v5522_v30  ;;  %v4619_v8 = vpop.eup %4618  ;;  %v1104_v11 = vadd.f32 1.0, %v4617_v4  ;;  %4634 = vrcp.f32 %v1100_v59  ;;  %v8043_v41 = vrot.slane %v5517_v42, 7  ;;  %v8038_v46 = vrot.slane %v5522_v30, 7 }
 0x186   : > { %8343 = vst [vmem:[#allocation24_spill] sm:$0xff] %v5530_v38  ;;  %v4621_v35 = vpop.eup %4620  ;;  %v4110_v19 = vpack.i.bf16 %v5530_v38, %v5522_v30  ;;  %v1107_v49 = vadd.f32 1.0, %v4619_v8  ;;  %4636 = vrcp.f32 %v1101_v26  ;;  %v1284_v39 = vand.u32 15, %v1224_v6 }
 0x187   : > { %v5541_v13 = vmul.f32 %v4621_v35, %v5371_v12  ;;  %v4623_v48 = vpop.eup %4622  ;;  %v8035_v12 = vrot.slane %v5513_v5, 7  ;;  %4638 = vrcp.f32 %v1102_v23  ;;  %v8032_v4 = vrot.slane %v5530_v38, 7 }
 0x188   : > { %4111 = vrot.lane.b32.xlu0 %v4110_v19, %s4763_s23  ;;  %v1108_v36 = vadd.f32 1.0, %v4623_v48  ;;  %4640 = vrcp.f32 %v1104_v11  ;;  %v8040_v8 = vrot.slane %v5460_v58, 1  ;;  %v8033_v59 = vrot.slane %v5468_v10, 1 }
 0x189   : > { %8344 = vst [vmem:[#allocation25_spill] sm:$0xff] %v5541_v13  ;;  %v4135_v15 = vpack.i.bf16 %v5541_v13, %v5468_v10  ;;  %4642 = vrcp.f32 %v1107_v49  ;;  %v8039_v56 = vrot.slane %v5517_v42, 1  ;;  %v8036_v35 = vrot.slane %v5513_v5, 1 }
 0x18a   : > { %v1277_v19 = vand.u32 15, %v1223_v2  ;;  %v3757_v26 = vmul.f32 -1.442695, %v5374_v60  ;;  %vm5558_vm6 = vcmp.ge.s32.totalorder %v1298_v55, 1  ;;  %v8345_v6 = vmov 0 }
 0x18b   : > { %4136 = vrot.lane.b32.xlu1 %v4135_v15, %s4764_s24  ;;  %v8346_v6 = vsel %vm5558_vm6, 4294967295, %v8345_v6  ;;  %vm5562_vm7 = vcmp.ge.s32.totalorder %v1312_v25, 1  ;;  %v8348_v23 = vmov 0  ;;  %v5567_v48 = vadd.s32 80, %v5445_v53 }
 0x18c   : > { %8347 = vst [vmem:[#allocation26_spill] sm:$0xff] %v8346_v6  ;;  %v8349_v23 = vsel %vm5562_vm7, 4294967295, %v8348_v23  ;;  %v3758_v11 = vmul.f32 -1.442695, %v5377_v14  ;;  %v5575_v2 = vsel %vm8119_vm3, %v8035_v12, %v8043_v41  ;;  %v5582_v55 = vsel %vm8119_vm3, %v8038_v46, %v8032_v4  ;;  %v4625_v4 = vpop.eup %4624 }
 0x18d   : > { %8350 = vst [vmem:[#allocation27_spill] sm:$0xff] %v8349_v23  ;;  %8351 = vst [vmem:[#allocation28_spill] sm:$0xff] %v5575_v2  ;;  %vm5584_vm8 = vcmp.ge.s32.totalorder %v1284_v39, 1  ;;  %v8353_v25 = vmov 0  ;;  %4644 = vrcp.f32 %v1108_v36  ;;  %v5589_v15 = vadd.s32 88, %v5445_v53  ;;  %v4627_v51 = vpop.eup %4626 }
 0x18e   : > { %8352 = vst [vmem:[#allocation29_spill] sm:$0xff] %v5582_v55  ;;  %v8354_v25 = vsel %vm5584_vm8, 4294967295, %v8353_v25  ;;  %vm5591_vm9 = vcmp.le.s32.totalorder %v1263_v29, 14  ;;  %v8356_v49 = vmov 0  ;;  %v5600_v63 = vsel %vm8118_vm5, %v8040_v8, %v8033_v59 }
 0x18f   : > { %8355 = vst [vmem:[#allocation30_spill] sm:$0xff] %v8354_v25  ;;  %v8357_v49 = vsel %vm5591_vm9, 4294967295, %v8356_v49  ;;  %8359 = vst [vmem:[#allocation32_spill] sm:$0xff] %v5600_v63  ;;  %v5607_v39 = vsel %vm8118_vm5, %v8036_v35, %v8039_v56  ;;  %v5610_v29 = vadd.s32 96, %v5445_v53  ;;  %vm5612_vm10 = vcmp.le.s32.totalorder %v1277_v19, 14  ;;  %v4629_v19 = vpop.eup %4628  ;;  %v8501_v25 = vld [vmem:[#allocation7_spill] sm:$0xff] }
 0x190   : > { %8358 = vst [vmem:[#allocation31_spill] sm:$0xff] %v8357_v49  ;;  %8360 = vst [vmem:[#allocation33_spill] sm:$0xff] %v5607_v39  ;;  %v8361_v36 = vmov 0  ;;  %4646 = vpow2.f32 %v3757_v26  ;;  %v5627_v46 = vmul.f32 %v4627_v51, %v5438_v54  ;;  %v4631_v59 = vpop.eup %4630  ;;  %v5634_v12 = vmul.f32 %v4629_v19, %v5442_v34 }
 0x191   : > { %v8362_v36 = vsel %vm5612_vm10, 4294967295, %v8361_v36  ;;  %4648 = vpow2.f32 %v3758_v11  ;;  %v5638_v8 = vadd.s32 104, %v5445_v53  ;;  %v4633_v51 = vpop.eup %4632  ;;  %v5646_v50 = vmul.f32 %v4631_v59, %v5417_v40 }
 0x192   : > { %8363 = vst [vmem:[#allocation34_spill] sm:$0xff] %v8362_v36  ;;  %8364 = vst [vmem:[#allocation35_spill] sm:$0xff] %v5627_v46  ;;  %v4125_v11 = vpack.i.bf16 %v5627_v46, %v5530_v38  ;;  %v4635_v19 = vpop.eup %4634  ;;  %v3759_v35 = vmul.f32 -1.442695, %v5380_v16  ;;  %v4140_v56 = vpack.i.bf16 %v5634_v12, %v5513_v5  ;;  %v5657_v54 = vadd.s32 40, %v5445_v53 }
 0x193   : > { %8365 = vst [vmem:[#allocation36_spill] sm:$0xff] %v5634_v12  ;;  %8366 = vst [vmem:[#allocation37_spill] sm:$0xff] %v5646_v50  ;;  %v4637_v41 = vpop.eup %4636  ;;  %v3760_v40 = vmul.f32 -1.442695, %v5383_v17  ;;  %v5662_v59 = vmul.f32 %v4633_v51, %v5421_v33  ;;  %v5665_v26 = vmul.f32 %v4635_v19, %v5434_v32  ;;  %v8055_v34 = vrot.slane %v5646_v50, 7 }
 0x194   : > { %4126 = vrot.lane.b32.xlu0 %v4125_v11, %s4764_s24  ;;  %v4639_v1 = vpop.eup %4638  ;;  %v1121_v23 = vadd.f32 1.0, %v4625_v4  ;;  %v3761_v49 = vmul.f32 -1.442695, %v5386_v24  ;;  %4141 = vrot.lane.b32.xlu1 %v4140_v56, %s4764_s24  ;;  %v5671_v55 = vmul.f32 %v4637_v41, %v5450_v45  ;;  %v3762_v33 = vmul.f32 -1.442695, %v5389_v52 }
 0x195   : > { %8367 = vst [vmem:[#allocation38_spill] sm:$0xff] %v5662_v59  ;;  %8368 = vst [vmem:[#allocation39_spill] sm:$0xff] %v5665_v26  ;;  %v4641_v11 = vpop.eup %4640  ;;  %v3763_v51 = vmul.f32 -1.442695, %v5392_v43  ;;  %v5677_v32 = vmul.f32 %v4639_v1, %v5454_v47  ;;  %v8371_v4 = vrot.slane %v5517_v42, 7  ;;  %4650 = vpow2.f32 %v3759_v35 }
 0x196   : > { %8369 = vst [vmem:[#allocation40_spill] sm:$0xff] %v5671_v55  ;;  %v4643_v56 = vpop.eup %4642  ;;  %v5687_v45 = vmul.f32 %v4641_v11, %v5465_v0  ;;  %v8057_v39 = vrot.slane %v5671_v55, 1  ;;  %4652 = vpow2.f32 %v3760_v40  ;;  %v8060_v43 = vrot.slane %v5665_v26, 1 }
 0x197   : > { %8370 = vst [vmem:[#allocation41_spill] sm:$0xff] %v5677_v32  ;;  %v5684_v19 = vsel %vm8119_vm3, %v8371_v4, %v8055_v34  ;;  %v8056_v47 = vrot.slane %v5677_v32, 1  ;;  %4654 = vrcp.f32 %v1121_v23  ;;  %v3764_v4 = vmul.f32 -1.442695, %v5395_v7 }
 0x198   : > { %8372 = vst [vmem:[#allocation42_spill] sm:$0xff] %v5684_v19  ;;  %8373 = vst [vmem:[#allocation43_spill] sm:$0xff] %v5687_v45  ;;  %v4160_v41 = vpack.i.bf16 %v5684_v19, %v5665_v26  ;;  %v4130_v35 = vpack.i.bf16 %v5687_v45, %v5460_v58  ;;  %v5699_v0 = vmul.f32 %v4643_v56, %v5471_v61  ;;  %v3765_v40 = vmul.f32 -1.442695, %v5398_v27 }
 0x199   : > { %4656 = vpow2.f32 %v3761_v49  ;;  %v5708_v23 = vsel %vm8118_vm5, %v8057_v39, %v8056_v47  ;;  %v3766_v1 = vmul.f32 -1.442695, %v5401_v9  ;;  %v5716_v56 = vadd.s32 120, %v5445_v53  ;;  %v3018_v49 = vld [vmem:[%s8028_s6 + $0x78] sm:$0xff] }
 0x19a   : > { %8374 = vst [vmem:[#allocation44_spill] sm:$0xff] %v5699_v0  ;;  %4161 = vrot.lane.b32.xlu1 %v4160_v41, %s4764_s24  ;;  %v4645_v11 = vpop.eup %4644  ;;  %8375 = vst [vmem:[#allocation45_spill] sm:$0xff] %v5708_v23  ;;  %4658 = vpow2.f32 %v3762_v33  ;;  %4131 = vrot.lane.b32.xlu0 %v4130_v35, %s4764_s24  ;;  %v4170_v61 = vpack.i.bf16 %v5662_v59, %v5708_v23  ;;  %v8376_v47 = vrot.slane %v5662_v59, 1  ;;  %v3767_v9 = vmul.f32 -1.442695, %v5404_v21 }
 0x19b   : > { %4660 = vpow2.f32 %v3763_v51  ;;  %4028 = vmatpush1.msra.mxu1 %v3018_v49  ;;  %3139 = vmatpush1.msra.mxu0 %v3018_v49  ;;  %v5732_v27 = vmul.f32 %v4645_v11, %v5489_v37  ;;  %v4145_v51 = vpack.i.bf16 %v5699_v0, %v5517_v42  ;;  %v5741_v49 = vadd.s32 136, %v5445_v53  ;;  %v3017_v37 = vld [vmem:[%s8028_s6 + $0x70] sm:$0xff] }
 0x19c   : > { %v5726_v33 = vsel %vm8118_vm5, %v8376_v47, %v8060_v43  ;;  %4662 = vpow2.f32 %v3764_v4  ;;  %v8379_v47 = vmov 0.0   ;;  %v3768_v43 = vmul.f32 -1.442695, %v5407_v28 }
 0x19d   : > { %v4647_v41 = vpop.eup %4646  ;;  %8377 = vst [vmem:[#allocation46_spill] sm:$0xff] %v5726_v33  ;;  %8378 = vst [vmem:[#allocation47_spill] sm:$0xff] %v5732_v27  ;;  %3997 = vmatprep.subr.mxu1 %v8379_v47  ;;  %4664 = vpow2.f32 %v3765_v40  ;;  %3140 = vmatprep.subr.mxu0 %v8379_v47  ;;  %v4175_v11 = vpack.i.bf16 %v5726_v33, %v8379_v47  ;;  %v5751_v40 = vadd.s32 128, %v5445_v53  ;;  %v8382_v35 = vrot.slane %v5460_v58, 1 }
 0x19e   : > { %v4649_v34 = vpop.eup %4648  ;;  %4171 = vrot.lane.b32.xlu1 %v4170_v61, %s4763_s23  ;;  %8380 = vst [vmem:[#allocation48_spill] sm:$0xff] %v5741_v49  ;;  %4666 = vpow2.f32 %v3766_v1  ;;  %v1109_v4 = vadd.f32 1.0, %v4647_v41  ;;  %4146 = vrot.lane.b32.xlu0 %v4145_v51, %s4764_s24  ;;  %v3016_v61 = vld [vmem:[%s8028_s6 + $0x68] sm:$0xff]  ;;  %v8383_v28 = vrot.slane %v5530_v38, 1  ;;  %v3770_v33 = vmul.f32 -1.442695, %v5410_v44 }
 0x19f   : > { %8381 = vst [vmem:[#allocation49_spill] sm:$0xff] %v5751_v40  ;;  %v1110_v39 = vadd.f32 1.0, %v4649_v34  ;;  %4029 = vmatpush1.msra.mxu1 %v3017_v37  ;;  %4668 = vpow2.f32 %v3767_v9  ;;  %v4150_v21 = vpack.i.bf16 %v5732_v27, %v5646_v50  ;;  %v8388_v34 = vrot.slane %v5522_v30, 7  ;;  %3141 = vmatpush1.msra.mxu0 %v3017_v37 }
 0x1a0   : > { %v5761_v1 = vsel %vm8118_vm5, %v8383_v28, %v8382_v35  ;;  %3998 = vmatprep.subr.mxu1 %v8379_v47  ;;  %4670 = vpow2.f32 %v3768_v43  ;;  %v8385_v28 = vrot.slane %v5646_v50, 1  ;;  %v8386_v35 = vrot.slane %v5517_v42, 1  ;;  %3142 = vmatprep.subr.mxu0 %v8379_v47 }
 0x1a1   : > { %8384 = vst [vmem:[#allocation50_spill] sm:$0xff] %v5761_v1  ;;  %4030 = vmatpush1.msra.mxu1 %v3016_v61  ;;  %4672 = vrcp.f32 %v1109_v4  ;;  %v4180_v43 = vpack.i.bf16 %v5761_v1, %v5665_v26  ;;  %v8391_v4 = vrot.slane %v5677_v32, 7  ;;  %v8395_v44 = vrot.slane %v5665_v26, 7  ;;  %3143 = vmatpush1.msra.mxu0 %v3016_v61 }
 0x1a2   : > { %4176 = vrot.lane.b32.xlu1 %v4175_v11, %s4765_s17  ;;  %v5776_v41 = vsel %vm8118_vm5, %v8386_v35, %v8385_v28  ;;  %v5783_v11 = vld [vmem:[%s8028_s6 + $0x60] sm:$0xff]  ;;  %4151 = vrot.lane.b32.xlu0 %v4150_v21, %s4764_s24  ;;  %v8389_v28 = vrot.slane %v5493_v31, 7  ;;  %v4651_v51 = vpop.eup %4650  ;;  %4674 = vrcp.f32 %v1110_v39  ;;  %v8392_v21 = vrot.slane %v5671_v55, 7 }
 0x1a3   : > { %8387 = vst [vmem:[#allocation51_spill] sm:$0xff] %v5776_v41  ;;  %3999 = vmatprep.subr.mxu1 %v8379_v47  ;;  %v4653_v39 = vpop.eup %4652  ;;  %4676 = vpow2.f32 %v3770_v33  ;;  %v8396_v7 = vrot.slane %v5662_v59, 7  ;;  %v1111_v40 = vadd.f32 1.0, %v4651_v51  ;;  %v8399_v33 = vrot.slane %v5468_v10, 7  ;;  %3144 = vmatprep.subr.mxu0 %v8379_v47 }
 0x1a4   : > { %v5793_v35 = vsel %vm8119_vm3, %v8389_v28, %v8388_v34  ;;  %v5802_v42 = vsel %vm8119_vm3, %v8392_v21, %v8391_v4  ;;  %4031 = vmatpush1.msra.mxu1 %v5783_v11  ;;  %v5810_v34 = vld [vmem:[%s8028_s6 + $0x58] sm:$0xff]  ;;  %v4155_v28 = vpack.i.bf16 %v5776_v41, %v5646_v50  ;;  %v5817_v21 = vadd.s32 152, %v5445_v53  ;;  %v5819_v9 = vpop.eup %4654  ;;  %v5837_v4 = vld [vmem:[%s8028_s6 + $0x50] sm:$0xff]  ;;  %3145 = vmatpush1.msra.mxu0 %v5783_v11 }
 0x1a5   : > { %8390 = vst [vmem:[#allocation52_spill] sm:$0xff] %v5793_v35  ;;  %8393 = vst [vmem:[#allocation53_spill] sm:$0xff] %v5802_v42  ;;  %v5826_v37 = vsel %vm8119_vm3, %v8396_v7, %v8395_v44  ;;  %4000 = vmatprep.subr.mxu1 %v8379_v47  ;;  %v4190_v7 = vpack.i.bf16 %v5802_v42, %v5793_v35  ;;  %v8398_v44 = vrot.slane %v5513_v5, 7  ;;  %v5851_v41 = vadd.s32 168, %v5445_v53 }
 0x1a6   : > { %4181 = vrot.lane.b32.xlu1 %v4180_v43, %s4763_s23  ;;  %8394 = vst [vmem:[#allocation54_spill] sm:$0xff] %v5817_v21  ;;  %8397 = vst [vmem:[#allocation55_spill] sm:$0xff] %v5826_v37  ;;  %v5831_v43 = vadd.s32 144, %v5445_v53  ;;  %v4657_v50 = vpop.eup %4656  ;;  %4156 = vrot.lane.b32.xlu0 %v4155_v28, %s4763_s23  ;;  %v1112_v59 = vadd.f32 1.0, %v4653_v39  ;;  %v8402_v51 = vrot.slane %v5634_v12, 7  ;;  %v8403_v28 = vrot.slane %v5541_v13, 7 }
 0x1a7   : > { %v5848_v49 = vsel %vm8119_vm3, %v8399_v33, %v8398_v44  ;;  %8401 = vst [vmem:[#allocation57_spill] sm:$0xff] %v5851_v41  ;;  %4032 = vmatpush1.msra.mxu1 %v5810_v34  ;;  %v4659_v26 = vpop.eup %4658  ;;  %v5867_v33 = vld [vmem:[%s8028_s6 + $0x48] sm:$0xff]  ;;  %v4165_v44 = vpack.i.bf16 %v5826_v37, %v5677_v32  ;;  %v5877_v42 = vadd.s32 184, %v5445_v53  ;;  %v8407_v52 = vrot.slane %v5460_v58, 7  ;;  %v5900_v58 = vld [vmem:[%s8028_s6 + $0x40] sm:$0xff]  ;;  %3146 = vmatprep.subr.mxu0 %v8379_v47 }
 0x1a8   : > { %8400 = vst [vmem:[#allocation56_spill] sm:$0xff] %v5848_v49  ;;  %v5859_v35 = vsel %vm8119_vm3, %v8403_v28, %v8402_v51  ;;  %4001 = vmatprep.subr.mxu1 %v8379_v47  ;;  %v4661_v39 = vpop.eup %4660  ;;  %v5874_v28 = vadd.s32 160, %v5445_v53  ;;  %v8408_v61 = vrot.slane %v5530_v38, 7  ;;  %v8411_v51 = vrot.slane %v5627_v46, 7  ;;  %3147 = vmatpush1.msra.mxu0 %v5810_v34 }
 0x1a9   : > { %8404 = vst [vmem:[#allocation58_spill] sm:$0xff] %v5859_v35  ;;  %8406 = vst [vmem:[#allocation60_spill] sm:$0xff] %v5877_v42  ;;  %4033 = vmatpush1.msra.mxu1 %v5837_v4  ;;  %v4663_v19 = vpop.eup %4662  ;;  %4678 = vrcp.f32 %v1111_v40  ;;  %v1114_v6 = vadd.f32 1.0, %v4659_v26  ;;  %v8413_v38 = vrot.slane %v5634_v12, 1  ;;  %v8414_v2 = vrot.slane %v5541_v13, 1  ;;  %v5927_v26 = vld [vmem:[%s8028_s6 + $0x38] sm:$0xff]  ;;  %3148 = vmatprep.subr.mxu0 %v8379_v47 }
 0x1aa   : > { %4191 = vrot.lane.b32.xlu1 %v4190_v7, %s4764_s24  ;;  %8405 = vst [vmem:[#allocation59_spill] sm:$0xff] %v5874_v28  ;;  %v5885_v24 = vsel %vm8119_vm3, %v8408_v61, %v8407_v52  ;;  %v8410_v7 = vrot.slane %v5687_v45, 7  ;;  %4002 = vmatprep.subr.mxu1 %v8379_v47  ;;  %v4665_v52 = vpop.eup %4664  ;;  %v1113_v61 = vadd.f32 1.0, %v4657_v50  ;;  %4680 = vrcp.f32 %v1112_v59 }
 0x1ab   : > { %8409 = vst [vmem:[#allocation61_spill] sm:$0xff] %v5885_v24  ;;  %4166 = vrot.lane.b32.xlu0 %v4165_v44, %s4764_s24  ;;  %4034 = vmatpush1.msra.mxu1 %v5867_v33  ;;  %v4667_v37 = vpop.eup %4666  ;;  %v5914_v50 = vsel %vm8118_vm5, %v8414_v2, %v8413_v38  ;;  %v8416_v40 = vand.u32 15, %v5657_v54  ;;  %v8417_v44 = vmov 0  ;;  %v1115_v59 = vadd.f32 1.0, %v4661_v39 }
 0x1ac   : > { %v5892_v21 = vsel %vm8119_vm3, %v8411_v51, %v8410_v7  ;;  %v5905_v51 = vpack.i.bf16 %v5859_v35, %v5848_v49  ;;  %8415 = vst [vmem:[#allocation63_spill] sm:$0xff] %v5914_v50  ;;  %4003 = vmatprep.subr.mxu1 %v8379_v47  ;;  %v5938_v54 = vadd.s32 176, %v5445_v53  ;;  %v1116_v7 = vadd.f32 1.0, %v4663_v19  ;;  %v5960_v19 = vld [vmem:[%s8028_s6 + $0x30] sm:$0xff]  ;;  %3149 = vmatpush1.msra.mxu0 %v5837_v4 }
 0x1ad   : > { %8412 = vst [vmem:[#allocation62_spill] sm:$0xff] %v5892_v21  ;;  %vm5918_vm11 = vcmp.le.s32.totalorder %v8416_v40, 14  ;;  %v5932_v38 = vpack.i.bf16 %v5892_v21, %v5885_v24  ;;  %4035 = vmatpush1.msra.mxu1 %v5900_v58  ;;  %v4669_v40 = vpop.eup %4668  ;;  %v8420_v35 = vrot.slane %v5687_v45, 1  ;;  %v8421_v39 = vrot.slane %v5627_v46, 1  ;;  %3150 = vmatprep.subr.mxu0 %v8379_v47 }
 0x1ae   : > { %v8418_v44 = vsel %vm5918_vm11, 4294967295, %v8417_v44  ;;  %4211 = vrot.lane.b32.xlu1 %v5905_v51, %s4765_s17  ;;  %v8423_v2 = vand.u32 15, %v5610_v29  ;;  %v8424_v41 = vmov 0  ;;  %4004 = vmatprep.subr.mxu1 %v8379_v47  ;;  %4682 = vrcp.f32 %v1113_v61 }
 0x1af   : > { %8419 = vst [vmem:[#allocation64_spill] sm:$0xff] %v8418_v44  ;;  %v5946_v49 = vsel %vm8118_vm5, %v8421_v39, %v8420_v35  ;;  %v4671_v35 = vpop.eup %4670  ;;  %4186 = vrot.lane.b32.xlu0 %v5932_v38, %s4765_s17  ;;  %v4220_v29 = vpack.i.bf16 %v5627_v46, %v5914_v50  ;;  %v8428_v39 = vmov 0  ;;  %v5975_v24 = vadd.s32 200, %v5445_v53  ;;  %4036 = vmatpush1.msra.mxu1 %v5927_v26 }
 0x1b0   : > { %8422 = vst [vmem:[#allocation65_spill] sm:$0xff] %v5946_v49  ;;  %vm5952_vm12 = vcmp.ge.s32.totalorder %v8423_v2, 1  ;;  %v8427_v2 = vand.u32 15, %v5638_v8  ;;  %v4673_v11 = vpop.eup %4672  ;;  %4684 = vrcp.f32 %v1114_v6  ;;  %v8431_v50 = vand.u32 15, %v5654_v62  ;;  %4005 = vmatprep.subr.mxu1 %v8379_v47  ;;  %3151 = vmatpush1.msra.mxu0 %v5867_v33 }
 0x1b1   : > { %v8425_v41 = vsel %vm5952_vm12, 4294967295, %v8424_v41  ;;  %v4675_v21 = vpop.eup %4674  ;;  %v5993_v6 = vmul.f32 %v5819_v9, %v5268_v22  ;;  %v1117_v61 = vadd.f32 1.0, %v4665_v52  ;;  %4686 = vrcp.f32 %v1115_v59  ;;  %4037 = vmatpush1.msra.mxu1 %v5960_v19  ;;  %v6008_v22 = vld [vmem:[%s8028_s6 + $0x28] sm:$0xff]  ;;  %3152 = vmatprep.subr.mxu0 %v8379_v47 }
 0x1b2   : > { %8426 = vst [vmem:[#allocation66_spill] sm:$0xff] %v8425_v41  ;;  %vm5969_vm13 = vcmp.le.s32.totalorder %v8427_v2, 14  ;;  %vm5982_vm14 = vcmp.ge.s32.totalorder %v8431_v50, 1  ;;  %v5987_v2 = vadd.s32 192, %v5445_v53  ;;  %v4195_v62 = vpack.i.bf16 %v5671_v55, %v5946_v49  ;;  %4221 = vrot.lane.b32.xlu1 %v4220_v29, %s4763_s23  ;;  %v4677_v9 = vpop.eup %4676  ;;  %4006 = vmatprep.subr.mxu1 %v8379_v47 }
 0x1b3   : > { %v8429_v39 = vsel %vm5969_vm13, 4294967295, %v8428_v39  ;;  %8434 = vst [vmem:[#allocation68_spill] sm:$0xff] %v5993_v6  ;;  %v8435_v50 = vand.u32 15, %v5716_v56  ;;  %v8436_v28 = vmov 0  ;;  %v1118_v52 = vadd.f32 1.0, %v4667_v37  ;;  %4038 = vmatpush1.msra.mxu1 %v6008_v22  ;;  %3153 = vmatpush1.msra.mxu0 %v5900_v58 }
 0x1b4   : > { %8430 = vst [vmem:[#allocation67_spill] sm:$0xff] %v8429_v39  ;;  %4688 = vrcp.f32 %v1116_v7  ;;  %v8439_v59 = vrot.slane %v5522_v30, 1  ;;  %v8440_v29 = vrot.slane %v5493_v31, 1  ;;  %v1119_v42 = vadd.f32 1.0, %v4669_v40  ;;  %4196 = vrot.lane.b32.xlu0 %v4195_v62, %s4763_s23  ;;  %4007 = vmatprep.subr.mxu1 %v8379_v47 }
 0x1b5   : > { %vm6000_vm15 = vcmp.le.s32.totalorder %v8435_v50, 14  ;;  %v4225_v37 = vpack.i.bf16 %v5946_v49, %v5761_v1  ;;  %v6024_v7 = vadd.s32 216, %v5445_v53  ;;  %v6027_v31 = vadd.s32 208, %v5445_v53  ;;  %3154 = vmatprep.subr.mxu0 %v8379_v47 }
 0x1b6   : > { %v8437_v28 = vsel %vm6000_vm15, 4294967295, %v8436_v28  ;;  %v6015_v56 = vsel %vm8118_vm5, %v8440_v29, %v8439_v59  ;;  %v6032_v59 = vld [vmem:[%s8028_s6 + $0x20] sm:$0xff]  ;;  %v1120_v29 = vadd.f32 1.0, %v4671_v35  ;;  %v6035_v34 = vmul.f32 %v4673_v11, %v5374_v60  ;;  %3155 = vmatpush1.msra.mxu0 %v5927_v26 }
 0x1b7   : > { %8438 = vst [vmem:[#allocation69_spill] sm:$0xff] %v8437_v28  ;;  %v6038_v40 = vmul.f32 %v4675_v21, %v5377_v14  ;;  %v8443_v62 = vrot.slane %v5732_v27, 1  ;;  %v8444_v50 = vrot.slane %v5699_v0, 1  ;;  %v1122_v1 = vadd.f32 1.0, %v4677_v9  ;;  %4226 = vrot.lane.b32.xlu1 %v4225_v37, %s4765_s17  ;;  %v6059_v21 = vld [vmem:[%s8028_s6 + $0x18] sm:$0xff]  ;;  %4039 = vmatpush1.msra.mxu1 %v6032_v59 }
 0x1b8   : > { %8441 = vst [vmem:[#allocation70_spill] sm:$0xff] %v6035_v34  ;;  %4690 = vrcp.f32 %v1117_v61  ;;  %v4200_v60 = vpack.i.bf16 %v5708_v23, %v6015_v56  ;;  %v2057_v14 = vsel %vm5495_vm4, %v5486_v20, 0.0  ;;  %v8446_v35 = vrot.slane %v5513_v5, 1  ;;  %4008 = vmatprep.subr.mxu1 %v8379_v47  ;;  %3156 = vmatprep.subr.mxu0 %v8379_v47 }
 0x1b9   : > { %8442 = vst [vmem:[#allocation71_spill] sm:$0xff] %v6038_v40  ;;  %v6045_v49 = vsel %vm8118_vm5, %v8444_v50, %v8443_v62  ;;  %4692 = vrcp.f32 %v1118_v52  ;;  %v8447_v11 = vrot.slane %v5468_v10, 1  ;;  %v8449_v9 = vand.u32 15, %v5526_v3  ;;  %4040 = vmatpush1.msra.mxu1 %v6059_v21  ;;  %3157 = vmatpush1.msra.mxu0 %v5960_v19 }
 0x1ba   : > { %8445 = vst [vmem:[#allocation72_spill] sm:$0xff] %v6045_v49  ;;  %v8450_v50 = vmov 0  ;;  %v8453_v37 = vand.u32 15, %v5445_v53  ;;  %v8454_v62 = vmov 0  ;;  %v2024_v52 = vsel %vm5612_vm10, %v5600_v63, 0.0  ;;  %4201 = vrot.lane.b32.xlu0 %v4200_v60, %s4765_s17  ;;  %4009 = vmatprep.subr.mxu1 %v8379_v47 }
 0x1bb   : > { %v6066_v61 = vsel %vm8118_vm5, %v8447_v11, %v8446_v35  ;;  %vm6070_vm0 = vcmp.le.s32.totalorder %v8449_v9, 14  ;;  %v1988_v35 = vsel %vm5584_vm8, %v5486_v20, 0.0  ;;  %4694 = vrcp.f32 %v1119_v42  ;;  %v8500_v20 = vld [vmem:[#allocation29_spill] sm:$0xff]  ;;  %3158 = vmatprep.subr.mxu0 %v8379_v47 }
 0x1bc   : > { %8448 = vst [vmem:[#allocation73_spill] sm:$0xff] %v6066_v61  ;;  %v8451_v50 = vsel %vm6070_vm0, 4294967295, %v8450_v50  ;;  %vm6076_vm1 = vcmp.ge.s32.totalorder %v8453_v37, 1  ;;  %v4230_v3 = vpack.i.bf16 %v6045_v49, %v5687_v45  ;;  %v1950_v11 = vsel %vm5918_vm11, %v5600_v63, 0.0  ;;  %v4679_v37 = vpop.eup %4678  ;;  %v6111_v63 = vld [vmem:[%s8028_s6 + $0x10] sm:$0xff]  ;;  %v8487_v49 = vld [vmem:[#allocation28_spill] sm:$0xff]  ;;  %3159 = vmatpush1.msra.mxu0 %v6008_v22 }
 0x1bd   : > { %8452 = vst [vmem:[#allocation74_spill] sm:$0xff] %v8451_v50  ;;  %v8455_v62 = vsel %vm6076_vm1, 4294967295, %v8454_v62  ;;  %v6096_v9 = vadd.s32 232, %v5445_v53  ;;  %4696 = vrcp.f32 %v1120_v29  ;;  %v8457_v4 = vrot.slane %v5541_v13, 7  ;;  %v4681_v10 = vpop.eup %4680  ;;  %4041 = vmatpush1.msra.mxu1 %v6111_v63  ;;  %3160 = vmatprep.subr.mxu0 %v8379_v47  ;;  %v8531_v22 = vld [vmem:[#allocation11_spill] sm:$0xff] }
 0x1be   : > { %8456 = vst [vmem:[#allocation75_spill] sm:$0xff] %v8455_v62  ;;  %v8458_v60 = vrot.slane %v5687_v45, 7  ;;  %4698 = vrcp.f32 %v1122_v1  ;;  %v4205_v29 = vpack.i.bf16 %v6066_v61, %v5677_v32  ;;  %4231 = vrot.lane.b32.xlu1 %v4230_v3, %s4763_s23  ;;  %v6152_v33 = vmul.f32 %v4681_v10, %v5383_v17  ;;  %4010 = vmatprep.subr.mxu1 %v8379_v47  ;;  %v6325_v61 = vld [vmem:[%s8028_s6 + $0xe8] sm:$0xff] }
 0x1bf   : > { %vm8485_vm11 = vcmask 1040384   ;;  %v8521_v19 = vrot.slane %v5677_v32, 7  ;;  %8526 = vst [vmem:[#allocation91_spill] sm:$0xff] %v6325_v61  ;;  %3161 = vmatpush1.msra.mxu0 %v6032_v59 }
 0x1c0   : > { %v6105_v5 = vsel %vm8119_vm3, %v8458_v60, %v8457_v4  ;;  %v8460_v4 = vrot.slane %v5541_v13, 1  ;;  %v8461_v60 = vrot.slane %v5687_v45, 1  ;;  %v6137_v45 = vmul.f32 %v4679_v37, %v5380_v16  ;;  %4206 = vrot.lane.b32.xlu0 %v4205_v29, %s4763_s23  ;;  %8466 = vst [vmem:[#allocation81_spill] sm:$0xff] %v6152_v33  ;;  %v8499_v13 = vld [vmem:[#allocation33_spill] sm:$0xff]  ;;  %3162 = vmatprep.subr.mxu0 %v8379_v47 }
 0x1c1   : > { %8459 = vst [vmem:[#allocation76_spill] sm:$0xff] %v6105_v5  ;;  %v2067_v23 = vsel %vm5952_vm12, %v6105_v5, 0.0  ;;  %v8467_v16 = vrot.slane %v6038_v40, 1  ;;  %v8470_v29 = vand.u32 15, %v5534_v57  ;;  %v8475_v57 = vand.u32 15, %v5567_v48  ;;  %v6196_v48 = vld [vmem:[%s8028_s6] sm:$0xff]  ;;  %3163 = vmatpush1.msra.mxu0 %v6059_v21 }
 0x1c2   : > { %v6124_v42 = vsel %vm8118_vm5, %v8461_v60, %v8460_v4  ;;  %v6129_v44 = vpack.i.bf16 %v2067_v23, %v2057_v14  ;;  %8464 = vst [vmem:[#allocation79_spill] sm:$0xff] %v6137_v45  ;;  %v1998_v23 = vsel %vm5982_vm14, %v6105_v5, 0.0  ;;  %v6149_v14 = vld [vmem:[%s8028_s6 + $0x8] sm:$0xff]  ;;  %v4683_v60 = vpop.eup %4682  ;;  %4241 = vrot.lane.b32.xlu1 %v5905_v51, %s4764_s24  ;;  %v1952_v26 = vsel %vm6070_vm0, %v8499_v13, 0.0  ;;  %3164 = vmatprep.subr.mxu0 %v8379_v47 }
 0x1c3   : > { %8462 = vst [vmem:[#allocation77_spill] sm:$0xff] %v6124_v42  ;;  %v2034_v3 = vsel %vm5969_vm13, %v6124_v42, 0.0  ;;  %vm6163_vm2 = vcmp.le.s32.totalorder %v8470_v29, 14  ;;  %v6167_v1 = vpack.i.bf16 %v1998_v23, %v1988_v35  ;;  %v1960_v17 = vsel %vm6000_vm15, %v6124_v42, 0.0  ;;  %v4685_v10 = vpop.eup %4684  ;;  %4042 = vmatpush1.msra.mxu1 %v6149_v14  ;;  %v8553_v42 = vld [vmem:[#allocation49_spill] sm:$0xff]  ;;  %3165 = vmatpush1.msra.mxu0 %v6111_v63  ;;  %v6802_v5 = vld [vmem:[%s8028_s6 + $0xa8] sm:$0xff] }
 0x1c4   : > { %8463 = vst [vmem:[#allocation78_spill] sm:$0xff] %v6129_v44  ;;  %v6140_v4 = vpack.i.bf16 %v2034_v3, %v2024_v52  ;;  %v8468_v52 = vrot.slane %v6035_v34, 1  ;;  %v8471_v3 = vmov 0  ;;  %v8478_v35 = vand.u32 15, %v5589_v15  ;;  %v4687_v51 = vpop.eup %4686  ;;  %4216 = vrot.lane.b32.xlu0 %v5932_v38, %s4764_s24  ;;  %4011 = vmatprep.subr.mxu1 %v8379_v47  ;;  %v8494_v38 = vld [vmem:[#allocation5_spill] sm:$0xff] }
 0x1c5   : > { %v8472_v3 = vsel %vm6163_vm2, 4294967295, %v8471_v3  ;;  %8474 = vst [vmem:[#allocation84_spill] sm:$0xff] %v6167_v1  ;;  %v8479_v23 = vmov 0  ;;  %v8483_v15 = vrot.slane %v5732_v27, 7  ;;  %v4689_v58 = vpop.eup %4688  ;;  %v1990_v1 = vsel %vm5558_vm6, %v8487_v49, 0.0  ;;  %4043 = vmatpush1.msra.mxu1 %v6196_v48  ;;  %3166 = vmatprep.subr.mxu0 %v8379_v47 }
 0x1c6   : > { %8465 = vst [vmem:[#allocation80_spill] sm:$0xff] %v6140_v4  ;;  %v6159_v37 = vsel %vm8118_vm5, %v8468_v52, %v8467_v16  ;;  %8473 = vst [vmem:[#allocation83_spill] sm:$0xff] %v8472_v3  ;;  %vm6178_vm5 = vcmp.ge.s32.totalorder %v8475_v57, 1  ;;  %vm6184_vm3 = vcmp.le.s32.totalorder %v8478_v35, 14  ;;  %v6188_v52 = vpack.i.bf16 %v1960_v17, %v1950_v11  ;;  %4012 = vmatprep.subr.mxu1 %v8379_v47 }
 0x1c7   : > { %8469 = vst [vmem:[#allocation82_spill] sm:$0xff] %v6159_v37  ;;  %v8480_v23 = vsel %vm6184_vm3, 4294967295, %v8479_v23  ;;  %v8484_v57 = vrot.slane %v5699_v0, 7  ;;  %v8491_v17 = vrot.slane %v5522_v30, 1  ;;  %v6226_v4 = vadd.s32 224, %v5445_v53  ;;  %3167 = vmatpush1.msra.mxu0 %v6149_v14 }
 0x1c8   : > { %8481 = vst [vmem:[#allocation85_spill] sm:$0xff] %v8480_v23  ;;  %8482 = vst [vmem:[#allocation86_spill] sm:$0xff] %v6188_v52  ;;  %v6229_v44 = vmul.f32 %v4683_v60, %v8494_v38  ;;  %v8498_v60 = vld [vmem:[#allocation42_spill] sm:$0xff]  ;;  %v6257_v49 = vmul.f32 %v4687_v51, %v8501_v25  ;;  %v8507_v51 = vrot.slane %v5671_v55, 7  ;;  %v8554_v3 = vand.u32 15, %v8553_v42  ;;  %3168 = vmatprep.subr.mxu0 %v8379_v47  ;;  %v8729_v52 = vld [vmem:[#allocation53_spill] sm:$0xff] }
 0x1c9   : > { %v6203_v35 = vsel %vm8485_vm11, %v8484_v57, %v8483_v15  ;;  %v4245_v15 = vpack.i.bf16 %v6159_v37, %v5634_v12  ;;  %v8489_v57 = vld [vmem:[#allocation24_spill] sm:$0xff]  ;;  %vm8492_vm11 = vcmask 1046528   ;;  %v1452_v59 = vand.u32 15, %v6226_v4  ;;  %3169 = vmatpush1.msra.mxu0 %v6196_v48 }
 0x1ca   : > { %8486 = vst [vmem:[#allocation87_spill] sm:$0xff] %v6203_v35  ;;  %v8490_v11 = vrot.slane %v8489_v57, 1  ;;  %8495 = vst [vmem:[#allocation5_spill] sm:$0xff] %v6229_v44  ;;  %v8496_v57 = vld [vmem:[#allocation6_spill] sm:$0xff]  ;;  %v4235_v38 = vpack.i.bf16 %v6203_v35, %v8498_v60  ;;  %v4250_v25 = vpack.i.bf16 %v6203_v35, %v6038_v40  ;;  %v8562_v42 = vsel %vm6076_vm1, %v8500_v20, 0.0  ;;  %3170 = vmatprep.subr.mxu0 %v8379_v47 }
 0x1cb   : > { %v6244_v30 = vmul.f32 %v4685_v10, %v8496_v57  ;;  %4246 = vrot.lane.b32.xlu1 %v4245_v15, %s4763_s23  ;;  %8502 = vst [vmem:[#allocation29_spill] sm:$0xff] %v6257_v49  ;;  %v8503_v10 = vld [vmem:[#allocation8_spill] sm:$0xff]  ;;  %v8505_v60 = vld [vmem:[#allocation38_spill] sm:$0xff]  ;;  %v8511_v15 = vrot.slane %v5671_v55, 1  ;;  %vm8571_vm1 = vcmask 1040384   ;;  %v8572_v21 = vand.u32 15, %v5938_v54 }
 0x1cc   : > { %v6222_v29 = vsel %vm8492_vm11, %v8491_v17, %v8490_v11  ;;  %v6238_v11 = vld [vmem:[%s8028_s6 + $0xf8] sm:$0xff]  ;;  %v6241_v17 = vadd.s32 240, %v5445_v53  ;;  %v4691_v53 = vpop.eup %4690  ;;  %v6260_v57 = vmul.f32 %v4689_v58, %v8503_v10  ;;  %v4285_v36 = vpack.i.bf16 %v1990_v1, %v8505_v60  ;;  %4236 = vrot.lane.b32.xlu0 %v4235_v38, %s4765_s17  ;;  %v8508_v58 = vld [vmem:[#allocation39_spill] sm:$0xff]  ;;  %v8592_v54 = vld [vmem:[#allocation54_spill] sm:$0xff] }
 0x1cd   : > { %8493 = vst [vmem:[#allocation26_spill] sm:$0xff] %v6222_v29  ;;  %8497 = vst [vmem:[#allocation6_spill] sm:$0xff] %v6244_v30  ;;  %v2022_v50 = vsel %vm5591_vm9, %v6222_v29, 0.0  ;;  %v4693_v37 = vpop.eup %4692  ;;  %v8509_v10 = vrot.slane %v8508_v58, 7  ;;  %vm8510_vm11 = vcmask 1040384   ;;  %v8512_v13 = vrot.slane %v8508_v58, 1  ;;  %4044 = vmatpush2.msra.mxu1 %v6238_v11  ;;  %3171 = vmatpush2.msra.mxu0 %v6238_v11 }
 0x1ce   : > { %8504 = vst [vmem:[#allocation7_spill] sm:$0xff] %v6260_v57  ;;  %vm8513_vm9 = vcmask 1046528   ;;  %v6290_v38 = vld [vmem:[%s8028_s6 + $0xf0] sm:$0xff]  ;;  %v4695_v35 = vpop.eup %4694  ;;  %4013 = vmatprep.subr.mxu1 %v8379_v47  ;;  %vm8585_vm0 = vcmask 1046528   ;;  %v8593_v62 = vand.u32 15, %v8592_v54  ;;  %v8634_v63 = vmov 0  ;;  %3172 = vmatprep.subr.mxu0 %v8379_v47 }
 0x1cf   : > { %v6276_v1 = vsel %vm8510_vm11, %v8509_v10, %v8507_v51  ;;  %v6283_v29 = vsel %vm8513_vm9, %v8512_v13, %v8511_v15  ;;  %8515 = vst [vmem:[#allocation88_spill] sm:$0xff] %v6290_v38  ;;  %v8516_v51 = vrot.slane %v6152_v33, 1  ;;  %v8517_v10 = vrot.slane %v6137_v45, 1  ;;  %vm8518_vm11 = vmmov %vm8513_vm9  ;;  %v4697_v18 = vpop.eup %4696  ;;  %4251 = vrot.lane.b32.xlu1 %v4250_v25, %s4764_s24  ;;  %4045 = vmatpush2.msra.mxu1 %v6290_v38  ;;  %v6762_v11 = vld [vmem:[%s8028_s6 + $0xb0] sm:$0xff] }
 0x1d0   : > { %8514 = vst [vmem:[#allocation8_spill] sm:$0xff] %v6283_v29  ;;  %v8520_v15 = vrot.slane %v5627_v46, 7  ;;  %vm8522_vm9 = vcmask 1040384   ;;  %v8524_v13 = vrot.slane %v5677_v32, 1  ;;  %v4699_v25 = vpop.eup %4698  ;;  %4286 = vrot.lane.b32.xlu0 %v4285_v36, %s4764_s24  ;;  %4014 = vmatprep.subr.mxu1 %v8379_v47  ;;  %v8537_v36 = vrot.slane %v6035_v34, 7 }
 0x1d1   : > { %v6297_v55 = vsel %vm8518_vm11, %v8517_v10, %v8516_v51  ;;  %v8523_v10 = vrot.slane %v5627_v46, 1  ;;  %v8527_v51 = vld [vmem:[#allocation9_spill] sm:$0xff]  ;;  %v8529_v46 = vld [vmem:[#allocation10_spill] sm:$0xff]  ;;  %4046 = vmatpush2.msra.mxu1 %v6325_v61  ;;  %v8544_v38 = vrot.slane %v6137_v45, 7  ;;  %v8656_v14 = vrot.slane %v6229_v44, 7 }
 0x1d2   : > { %8519 = vst [vmem:[#allocation89_spill] sm:$0xff] %v6297_v55  ;;  %v6305_v58 = vsel %vm8522_vm9, %v8521_v19, %v8520_v15  ;;  %v6328_v39 = vmul.f32 %v4691_v53, %v8527_v51  ;;  %v6331_v32 = vmul.f32 %v4693_v37, %v8529_v46  ;;  %v6338_v19 = vmul.f32 %v4695_v35, %v8531_v22  ;;  %v8534_v51 = vld [vmem:[#allocation12_spill] sm:$0xff] }
 0x1d3   : > { %v6317_v28 = vsel %vm8518_vm11, %v8524_v13, %v8523_v10  ;;  %v2063_v53 = vsel %vm5562_vm7, %v6276_v1, 0.0  ;;  %v4255_v46 = vpack.i.bf16 %v6297_v55, %v5732_v27  ;;  %v2030_v37 = vsel %vm6163_vm2, %v6283_v29, 0.0  ;;  %4015 = vmatprep.subr.mxu1 %v8379_v47 }
 0x1d4   : > { %8525 = vst [vmem:[#allocation90_spill] sm:$0xff] %v6317_v28  ;;  %8528 = vst [vmem:[#allocation9_spill] sm:$0xff] %v6328_v39  ;;  %v6351_v13 = vmul.f32 %v4697_v18, %v8534_v51  ;;  %v8536_v35 = vrot.slane %v6038_v40, 7  ;;  %v2065_v10 = vsel %vm6178_vm5, %v6305_v58, 0.0  ;;  %v2032_v55 = vsel %vm6184_vm3, %v6317_v28, 0.0  ;;  %v8539_v18 = vld [vmem:[#allocation55_spill] sm:$0xff] }
 0x1d5   : > { %8530 = vst [vmem:[#allocation10_spill] sm:$0xff] %v6331_v32  ;;  %8532 = vst [vmem:[#allocation11_spill] sm:$0xff] %v6338_v19  ;;  %v4295_v51 = vpack.i.bf16 %v1952_v26, %v8539_v18  ;;  %4256 = vrot.lane.b32.xlu1 %v4255_v46, %s4763_s23  ;;  %v8540_v29 = vrot.slane %v6244_v30, 1  ;;  %v8543_v15 = vrot.slane %v6152_v33, 7  ;;  %v6389_v26 = vld [vmem:[%s8028_s6 + $0xe0] sm:$0xff]  ;;  %v6396_v61 = vpack.i.bf16 %v6015_v56, %v2030_v37 }
 0x1d6   : > { %8535 = vst [vmem:[#allocation12_spill] sm:$0xff] %v6351_v13  ;;  %v6358_v22 = vsel %vm8522_vm9, %v8537_v36, %v8536_v35  ;;  %v8541_v35 = vrot.slane %v6229_v44, 1  ;;  %8546 = vst [vmem:[#allocation95_spill] sm:$0xff] %v6389_v26  ;;  %v8547_v46 = vld [vmem:[#allocation13_spill] sm:$0xff]  ;;  %v8555_v28 = vmov 0  ;;  %v6427_v37 = vpack.i.bf16 %v2032_v55, %v2022_v50  ;;  %4047 = vmatpush2.msra.mxu1 %v6389_v26 }
 0x1d7   : > { %8538 = vst [vmem:[#allocation92_spill] sm:$0xff] %v6358_v22  ;;  %v6382_v23 = vsel %vm8522_vm9, %v8544_v38, %v8543_v15  ;;  %v6392_v18 = vmul.f32 %v4699_v25, %v8547_v46  ;;  %v8550_v38 = vrot.slane %v6260_v57, 1  ;;  %v8551_v15 = vrot.slane %v6257_v49, 1  ;;  %4296 = vrot.lane.b32.xlu0 %v4295_v51, %s4765_s17  ;;  %4016 = vmatprep.subr.mxu1 %v8379_v47 }
 0x1d8   : > { %v6375_v36 = vsel %vm8518_vm11, %v8541_v35, %v8540_v29  ;;  %8545 = vst [vmem:[#allocation94_spill] sm:$0xff] %v6382_v23  ;;  %v8549_v29 = vld [vmem:[#allocation51_spill] sm:$0xff]  ;;  %vm6407_vm9 = vcmp.ge.s32.totalorder %v8554_v3, 1  ;;  %v8558_v25 = vand.u32 15, %v5831_v43  ;;  %v4260_v56 = vpack.i.bf16 %v6358_v22, %v6152_v33 }
 0x1d9   : > { %8542 = vst [vmem:[#allocation93_spill] sm:$0xff] %v6375_v36  ;;  %8548 = vst [vmem:[#allocation13_spill] sm:$0xff] %v6392_v18  ;;  %v4300_v35 = vpack.i.bf16 %v8549_v29, %v2063_v53  ;;  %v6403_v4 = vsel %vm8518_vm11, %v8551_v15, %v8550_v38  ;;  %v8556_v28 = vsel %vm6407_vm9, 4294967295, %v8555_v28  ;;  %v8559_v53 = vmov 0  ;;  %v8563_v43 = vld [vmem:[#allocation59_spill] sm:$0xff]  ;;  %v6440_v15 = vld [vmem:[%s8028_s6 + $0xd8] sm:$0xff] }
 0x1da   : > { %8552 = vst [vmem:[#allocation96_spill] sm:$0xff] %v6403_v4  ;;  %8557 = vst [vmem:[#allocation49_spill] sm:$0xff] %v8556_v28  ;;  %vm6413_vm8 = vcmp.ge.s32.totalorder %v8558_v25, 1  ;;  %v6425_v3 = vpack.i.bf16 %v2065_v10, %v8562_v42  ;;  %v8564_v46 = vand.u32 15, %v8563_v43  ;;  %v8565_v38 = vmov 0  ;;  %v8569_v25 = vld [vmem:[#allocation37_spill] sm:$0xff]  ;;  %4261 = vrot.lane.b32.xlu1 %v4260_v56, %s4764_s24  ;;  %4048 = vmatpush2.msra.mxu1 %v6440_v15 }
 0x1db   : > { %v8560_v53 = vsel %vm6413_vm8, 4294967295, %v8559_v53  ;;  %v1466_v51 = vand.u32 15, %v6241_v17  ;;  %v4265_v10 = vpack.i.bf16 %v6375_v36, %v6038_v40  ;;  %v8568_v50 = vrot.slane %v8505_v60, 7  ;;  %v8587_v36 = vld [vmem:[#allocation48_spill] sm:$0xff]  ;;  %4301 = vrot.lane.b32.xlu0 %v4300_v35, %s4765_s17  ;;  %v6568_v35 = vld [vmem:[%s8028_s6 + $0xd0] sm:$0xff]  ;;  %4017 = vmatprep.subr.mxu1 %v8379_v47 }
 0x1dc   : > { %8561 = vst [vmem:[#allocation97_spill] sm:$0xff] %v8560_v53  ;;  %vm6431_vm11 = vcmp.ge.s32.totalorder %v8564_v46, 1  ;;  %v8570_v42 = vrot.slane %v8569_v25, 7  ;;  %vm6455_vm7 = vcmp.ge.s32.totalorder %v8572_v21, 1  ;;  %v8573_v17 = vmov 0  ;;  %4049 = vmatpush2.msra.mxu1 %v6568_v35 }
 0x1dd   : > { %v8566_v38 = vsel %vm6431_vm11, 4294967295, %v8565_v38  ;;  %v8574_v17 = vsel %vm6455_vm7, 4294967295, %v8573_v17  ;;  %v8576_v46 = vand.u32 15, %v5987_v2  ;;  %v8577_v29 = vmov 0  ;;  %4018 = vmatprep.subr.mxu1 %v8379_v47 }
 0x1de   : > { %8567 = vst [vmem:[#allocation59_spill] sm:$0xff] %v8566_v38  ;;  %v6451_v43 = vsel %vm8571_vm1, %v8570_v42, %v8568_v50  ;;  %8575 = vst [vmem:[#allocation98_spill] sm:$0xff] %v8574_v17  ;;  %v8580_v50 = vrot.slane %v5699_v0, 7  ;;  %v8581_v42 = vrot.slane %v5634_v12, 7  ;;  %v8583_v21 = vrot.slane %v8505_v60, 1  ;;  %4266 = vrot.lane.b32.xlu1 %v4265_v10, %s4763_s23 }
 0x1df   : > { %vm6461_vm10 = vcmp.ge.s32.totalorder %v8576_v46, 1  ;;  %v8584_v46 = vrot.slane %v8569_v25, 1  ;;  %v8588_v22 = vand.u32 15, %v8587_v36  ;;  %v8589_v56 = vmov 0  ;;  %v8614_v25 = vld [vmem:[#allocation60_spill] sm:$0xff]  ;;  %4311 = vrot.lane.b32.xlu0 %v6396_v61, %s4763_s23 }
 0x1e0   : > { %v8578_v29 = vsel %vm6461_vm10, 4294967295, %v8577_v29  ;;  %v6476_v2 = vsel %vm8571_vm1, %v8581_v42, %v8580_v50  ;;  %vm6493_vm10 = vcmp.le.s32.totalorder %v8593_v62, 14  ;;  %v8594_v26 = vmov 0  ;;  %v8597_v50 = vld [vmem:[#allocation57_spill] sm:$0xff] }
 0x1e1   : > { %8579 = vst [vmem:[#allocation99_spill] sm:$0xff] %v8578_v29  ;;  %8582 = vst [vmem:[#allocation100_spill] sm:$0xff] %v6476_v2  ;;  %v6483_v55 = vsel %vm8585_vm0, %v8584_v46, %v8583_v21  ;;  %vm6487_vm4 = vcmp.le.s32.totalorder %v8588_v22, 14  ;;  %v8595_v26 = vsel %vm6493_vm10, 4294967295, %v8594_v26  ;;  %v8598_v42 = vand.u32 15, %v8597_v50  ;;  %v8697_v29 = vld [vmem:[#allocation88_spill] sm:$0xff] }
 0x1e2   : > { %8586 = vst [vmem:[#allocation101_spill] sm:$0xff] %v6483_v55  ;;  %v8590_v56 = vsel %vm6487_vm4, 4294967295, %v8589_v56  ;;  %8596 = vst [vmem:[#allocation54_spill] sm:$0xff] %v8595_v26  ;;  %v8599_v60 = vmov 0  ;;  %v8602_v21 = vand.u32 15, %v6027_v31  ;;  %v8603_v36 = vmov 0  ;;  %3173 = vmatpush2.msra.mxu0 %v8697_v29 }
 0x1e3   : > { %8591 = vst [vmem:[#allocation48_spill] sm:$0xff] %v8590_v56  ;;  %vm6499_vm1 = vcmp.le.s32.totalorder %v8598_v42, 14  ;;  %v8606_v22 = vrot.slane %v5699_v0, 1  ;;  %v8607_v62 = vrot.slane %v5634_v12, 1  ;;  %vm8608_vm4 = vcmask 1046528   ;;  %4321 = vrot.lane.b32.xlu0 %v6425_v3, %s4765_s17  ;;  %v8701_v29 = vld [vmem:[#allocation19_spill] sm:$0xff]  ;;  %3174 = vmatprep.subr.mxu0 %v8379_v47 }
 0x1e4   : > { %v8600_v60 = vsel %vm6499_vm1, 4294967295, %v8599_v60  ;;  %vm6505_vm0 = vcmp.ge.s32.totalorder %v8602_v21, 1  ;;  %v8610_v46 = vrot.slane %v6035_v34, 1  ;;  %v8611_v50 = vrot.slane %v5732_v27, 1  ;;  %vm8612_vm1 = vmmov %vm8608_vm4  ;;  %v8705_v3 = vld [vmem:[#allocation73_spill] sm:$0xff] }
 0x1e5   : > { %8601 = vst [vmem:[#allocation57_spill] sm:$0xff] %v8600_v60  ;;  %v8604_v36 = vsel %vm6505_vm0, 4294967295, %v8603_v36  ;;  %v6515_v54 = vsel %vm8608_vm4, %v8607_v62, %v8606_v22  ;;  %v8615_v55 = vand.u32 15, %v8614_v25  ;;  %v8616_v0 = vmov 0 }
 0x1e6   : > { %8605 = vst [vmem:[#allocation102_spill] sm:$0xff] %v8604_v36  ;;  %8609 = vst [vmem:[#allocation103_spill] sm:$0xff] %v6515_v54  ;;  %v6522_v42 = vsel %vm8612_vm1, %v8611_v50, %v8610_v46  ;;  %v8619_v22 = vand.u32 15, %v5975_v24  ;;  %v8620_v62 = vmov 0  ;;  %v8623_v12 = vand.u32 15, %v6024_v7  ;;  %v8709_v36 = vld [vmem:[#allocation91_spill] sm:$0xff] }
 0x1e7   : > { %8613 = vst [vmem:[#allocation104_spill] sm:$0xff] %v6522_v42  ;;  %vm6528_vm0 = vcmp.le.s32.totalorder %v8615_v55, 14  ;;  %v8624_v46 = vmov 0  ;;  %vm6544_vm10 = vcmp.ge.s32.totalorder %v1452_v59, 1  ;;  %v8627_v50 = vmov 0  ;;  %4331 = vrot.lane.b32.xlu0 %v6427_v37, %s4763_s23  ;;  %3175 = vmatpush2.msra.mxu0 %v8709_v36  ;;  %v8710_v37 = vld [vmem:[#allocation26_spill] sm:$0xff] }
 0x1e8   : > { %v8617_v0 = vsel %vm6528_vm0, 4294967295, %v8616_v0  ;;  %vm6534_vm4 = vcmp.le.s32.totalorder %v8619_v22, 14  ;;  %vm6540_vm1 = vcmp.le.s32.totalorder %v8623_v12, 14  ;;  %v8628_v50 = vsel %vm6544_vm10, 4294967295, %v8627_v50  ;;  %3176 = vmatprep.subr.mxu0 %v8379_v47 }
 0x1e9   : > { %8618 = vst [vmem:[#allocation60_spill] sm:$0xff] %v8617_v0  ;;  %v8621_v62 = vsel %vm6534_vm4, 4294967295, %v8620_v62  ;;  %v8625_v46 = vsel %vm6540_vm1, 4294967295, %v8624_v46  ;;  %8629 = vst [vmem:[#allocation107_spill] sm:$0xff] %v8628_v50  ;;  %v8630_v25 = vand.u32 15, %v6096_v9  ;;  %v8631_v59 = vmov 0 }
 0x1ea   : > { %8622 = vst [vmem:[#allocation105_spill] sm:$0xff] %v8621_v62  ;;  %8626 = vst [vmem:[#allocation106_spill] sm:$0xff] %v8625_v46  ;;  %vm6561_vm4 = vcmp.ge.s32.totalorder %v1466_v51, 1  ;;  %v8637_v51 = vrot.slane %v6137_v45, 1  ;;  %v8641_v22 = vrot.slane %v6035_v34, 7  ;;  %v8642_v7 = vrot.slane %v5732_v27, 7 }
 0x1eb   : > { %vm6557_vm1 = vcmp.le.s32.totalorder %v8630_v25, 14  ;;  %v8635_v63 = vsel %vm6561_vm4, 4294967295, %v8634_v63  ;;  %v8638_v25 = vrot.slane %v6038_v40, 1  ;;  %vm8639_vm4 = vcmask 1046528   ;;  %v8706_v50 = vld [vmem:[#allocation101_spill] sm:$0xff]  ;;  %v8780_v0 = vld [vmem:[#allocation12_spill] sm:$0xff] }
 0x1ec   : > { %v8632_v59 = vsel %vm6557_vm1, 4294967295, %v8631_v59  ;;  %8636 = vst [vmem:[#allocation109_spill] sm:$0xff] %v8635_v63  ;;  %vm8643_vm1 = vcmask 1040384   ;;  %v8645_v9 = vrot.slane %v6229_v44, 1  ;;  %v8646_v55 = vrot.slane %v6152_v33, 1  ;;  %vm8647_vm10 = vmmov %vm8639_vm4  ;;  %v3021_v63 = vld [vmem:[%s8028_s6 + $0x90] sm:$0xff] }
 0x1ed   : > { %8633 = vst [vmem:[#allocation108_spill] sm:$0xff] %v8632_v59  ;;  %v6582_v21 = vsel %vm8639_vm4, %v8638_v25, %v8637_v51  ;;  %v6589_v12 = vsel %vm8643_vm1, %v8642_v7, %v8641_v22  ;;  %v6603_v51 = vld [vmem:[%s8028_s6 + $0xc8] sm:$0xff]  ;;  %v8649_v25 = vrot.slane %v6137_v45, 7  ;;  %v8650_v7 = vrot.slane %v6038_v40, 7  ;;  %vm8651_vm4 = vmmov %vm8643_vm1 }
 0x1ee   : > { %8640 = vst [vmem:[#allocation110_spill] sm:$0xff] %v6582_v21  ;;  %8644 = vst [vmem:[#allocation111_spill] sm:$0xff] %v6589_v12  ;;  %v6596_v10 = vsel %vm8647_vm10, %v8646_v55, %v8645_v9  ;;  %v8653_v31 = vrot.slane %v6257_v49, 1  ;;  %v8654_v55 = vrot.slane %v6244_v30, 1  ;;  %v8657_v24 = vrot.slane %v6152_v33, 7  ;;  %4050 = vmatpush2.msra.mxu1 %v6603_v51 }
 0x1ef   : > { %8648 = vst [vmem:[#allocation112_spill] sm:$0xff] %v6596_v10  ;;  %v6610_v22 = vsel %vm8651_vm4, %v8650_v7, %v8649_v25  ;;  %v8659_v25 = vrot.slane %v6328_v39, 1  ;;  %v8660_v7 = vrot.slane %v6260_v57, 1  ;;  %vm8661_vm4 = vmmov %vm8647_vm10  ;;  %v8667_v61 = vrot.slane %v6328_v39, 7  ;;  %4019 = vmatprep.subr.mxu1 %v8379_v47 }
 0x1f0   : > { %8652 = vst [vmem:[#allocation113_spill] sm:$0xff] %v6610_v22  ;;  %v6617_v9 = vsel %vm8647_vm10, %v8654_v55, %v8653_v31  ;;  %v6624_v27 = vsel %vm8643_vm1, %v8657_v24, %v8656_v14  ;;  %v2061_v31 = vsel %vm5558_vm6, %v6451_v43, 0.0  ;;  %v8663_v55 = vrot.slane %v6257_v49, 7  ;;  %vm8665_vm10 = vmmov %vm8643_vm1 }
 0x1f1   : > { %8655 = vst [vmem:[#allocation114_spill] sm:$0xff] %v6617_v9  ;;  %8658 = vst [vmem:[#allocation115_spill] sm:$0xff] %v6624_v27  ;;  %v6639_v24 = vsel %vm8661_vm4, %v8660_v7, %v8659_v25  ;;  %v8664_v14 = vrot.slane %v6244_v30, 7  ;;  %v8668_v40 = vrot.slane %v6260_v57, 7  ;;  %v8670_v34 = vrot.slane %v6338_v19, 1 }
 0x1f2   : > { %8662 = vst [vmem:[#allocation116_spill] sm:$0xff] %v6639_v24  ;;  %v8671_v25 = vrot.slane %v6331_v32, 1  ;;  %v8673_v49 = vrot.slane %v6338_v19, 7  ;;  %v8678_v48 = vrot.slane %v5993_v6, 1  ;;  %v8682_v6 = vrot.slane %v6392_v18, 1 }
 0x1f3   : > { %v6646_v45 = vsel %vm8665_vm10, %v8664_v14, %v8663_v55  ;;  %v6653_v44 = vsel %vm8643_vm1, %v8668_v40, %v8667_v61  ;;  %v8674_v55 = vrot.slane %v6331_v32, 7  ;;  %vm8675_vm10 = vmmov %vm8643_vm1  ;;  %v6675_v40 = vld [vmem:[%s8028_s6 + $0xc0] sm:$0xff]  ;;  %v8696_v18 = vpack.i.bf16 %v6403_v4, %v6152_v33  ;;  %v8707_v4 = vld [vmem:[#allocation74_spill] sm:$0xff] }
 0x1f4   : > { %8666 = vst [vmem:[#allocation117_spill] sm:$0xff] %v6646_v45  ;;  %8669 = vst [vmem:[#allocation118_spill] sm:$0xff] %v6653_v44  ;;  %v6661_v7 = vsel %vm8661_vm4, %v8671_v25, %v8670_v34  ;;  %v8679_v25 = vrot.slane %v6351_v13, 1  ;;  %4051 = vmatpush2.msra.mxu1 %v6675_v40  ;;  %vm8700_vm11 = vnez %v8625_v46  ;;  %vm8702_vm8 = vnez %v8701_v29  ;;  %v8718_v61 = vld [vmem:[#allocation30_spill] sm:$0xff] }
 0x1f5   : > { %8672 = vst [vmem:[#allocation119_spill] sm:$0xff] %v6661_v7  ;;  %v6668_v14 = vsel %vm8675_vm10, %v8674_v55, %v8673_v49  ;;  %v8677_v49 = vpack.i.bf16 %v6382_v23, %v6244_v30  ;;  %vm8680_vm1 = vmmov %vm8661_vm4  ;;  %4020 = vmatprep.subr.mxu1 %v8379_v47  ;;  %v1986_v33 = vsel %vm8702_vm8, %v8500_v20, 0.0  ;;  %vm8703_vm7 = vnez %v8632_v59 }
 0x1f6   : > { %8676 = vst [vmem:[#allocation120_spill] sm:$0xff] %v6668_v14  ;;  %v6692_v55 = vsel %vm8680_vm1, %v8679_v25, %v8678_v48  ;;  %vm8683_vm4 = vmmov %vm8680_vm1  ;;  %v8685_v25 = vld [vmem:[#allocation90_spill] sm:$0xff]  ;;  %vm8692_vm1 = vnez %v8590_v56  ;;  %v1996_v48 = vsel %vm5952_vm12, %v6305_v58, 0.0  ;;  %vm8708_vm12 = vnez %v8707_v4  ;;  %v8713_v4 = vld [vmem:[#allocation95_spill] sm:$0xff] }
 0x1f7   : > { %4271 = vrot.lane.b32.xlu1 %v8677_v49, %s4764_s24  ;;  %8681 = vst [vmem:[#allocation121_spill] sm:$0xff] %v6692_v55  ;;  %v6707_v19 = vsel %vm8683_vm4, %v8682_v6, 0.0  ;;  %v6726_v6 = vld [vmem:[%s8028_s6 + $0xb8] sm:$0xff]  ;;  %vm8693_vm4 = vnez %v8595_v26  ;;  %v4280_v55 = vpack.i.bf16 %v8705_v3, %v2061_v31  ;;  %v2028_v41 = vsel %vm8708_vm12, %v8706_v50, 0.0  ;;  %v8711_v31 = vld [vmem:[#allocation34_spill] sm:$0xff]  ;;  %3177 = vmatpush2.msra.mxu0 %v8713_v4 }
 0x1f8   : > { %8684 = vst [vmem:[#allocation122_spill] sm:$0xff] %v6707_v19  ;;  %4052 = vmatpush2.msra.mxu1 %v6726_v6  ;;  %vm8712_vm10 = vnez %v8711_v31  ;;  %v1958_v36 = vsel %vm5969_vm13, %v8685_v25, 0.0  ;;  %v8714_v19 = vld [vmem:[#allocation46_spill] sm:$0xff]  ;;  %3178 = vmatprep.subr.mxu0 %v8379_v47  ;;  %vm8719_vm13 = vnez %v8718_v61  ;;  %v6840_v31 = vpop.permute.xlu1 %4116  ;;  %v8765_v26 = vrot.slane %v6331_v32, 1 }
 0x1f9   : > { %4021 = vmatprep.subr.mxu1 %v8379_v47  ;;  %v1948_v3 = vsel %vm8712_vm10, %v8710_v37, 0.0  ;;  %3179 = vmatpush2.msra.mxu0 %v6440_v15  ;;  %8720 = vst [vmem:[#allocation88_spill] sm:$0xff] %v6840_v31  ;;  %v8721_v15 = vld [vmem:[#allocation40_spill] sm:$0xff]  ;;  %vm8724_vm10 = vcmask 261120   ;;  %v8766_v56 = vrot.slane %v6328_v39, 1 }
 0x1fa   : > { %4053 = vmatpush2.msra.mxu1 %v6762_v11  ;;  %v4355_v4 = vpack.i.bf16 %v1958_v36, %v1948_v3  ;;  %3180 = vmatprep.subr.mxu0 %v8379_v47  ;;  %v4119_v36 = vunpack.i.h.bf16 %v6840_v31 }
 0x1fb   : > { %4276 = vrot.lane.b32.xlu1 %v8696_v18, %s4763_s23  ;;  %v4345_v18 = vpack.i.bf16 %v1996_v48, %v1986_v33  ;;  %4022 = vmatprep.subr.mxu1 %v8379_v47  ;;  %v4290_v33 = vpack.i.bf16 %v8714_v19, %v2028_v41  ;;  %v8715_v48 = vld [vmem:[#allocation27_spill] sm:$0xff]  ;;  %v6832_v41 = vld [vmem:[%s8028_s6 + $0x98] sm:$0xff]  ;;  %v2069_v19 = vsel %vm5982_vm14, %v6476_v2, 0.0 }
 0x1fc   : > { %4054 = vmatpush2.msra.mxu1 %v6802_v5  ;;  %vm8716_vm12 = vnez %v8715_v48  ;;  %3181 = vmatpush2.msra.mxu0 %v6568_v35  ;;  %v8727_v35 = vld [vmem:[#allocation64_spill] sm:$0xff] }
 0x1fd   : > { %4346 = vrot.lane.b32.xlu0 %v4345_v18, %s4764_s24  ;;  %v1992_v37 = vsel %vm8716_vm12, %v6451_v43, 0.0  ;;  %4023 = vmatprep.subr.mxu1 %v8379_v47  ;;  %v8717_v18 = vld [vmem:[#allocation28_spill] sm:$0xff] }
 0x1fe   : > { %v2059_v25 = vsel %vm8719_vm13, %v8717_v18, 0.0  ;;  %v4305_v3 = vpack.i.bf16 %v1992_v37, %v8721_v15  ;;  %3182 = vmatprep.subr.mxu0 %v8379_v47  ;;  %v8722_v37 = vld [vmem:[#allocation17_spill] sm:$0xff]  ;;  %v2036_v15 = vsel %vm6000_vm15, %v6515_v54, 0.0  ;;  %v8748_v48 = vld [vmem:[#allocation44_spill] sm:$0xff] }
 0x1ff   : > { %4281 = vrot.lane.b32.xlu1 %v4280_v55, %s4765_s17  ;;  %v6820_v55 = vld [vmem:[%s8028_s6 + $0xa0] sm:$0xff]  ;;  %v4360_v59 = vpack.i.bf16 %v2069_v19, %v2059_v25  ;;  %3183 = vmatpush2.msra.mxu0 %v6603_v51  ;;  %v3020_v25 = vld [vmem:[%s8028_s6 + $0x88] sm:$0xff] }
 0x200   : > { %4055 = vmatpush2.msra.mxu1 %v6820_v55  ;;  %3184 = vmatprep.subr.mxu0 %v8379_v47  ;;  %v8733_v51 = vld [vmem:[#allocation18_spill] sm:$0xff] }
 0x201   : > { %4356 = vrot.lane.b32.xlu0 %v4355_v4, %s4765_s17  ;;  %4024 = vmatprep.subr.mxu1 %v8379_v47  ;;  %v8723_v4 = vsel %vm5558_vm6, %v8722_v37, 0.0 }
 0x202   : > { %4056 = vmatpush2.msra.mxu1 %v6832_v41  ;;  %v6863_v34 = vsel %vm8724_vm10, %v8723_v4, %v4119_v36  ;;  %v8731_v36 = vld [vmem:[#allocation75_spill] sm:$0xff]  ;;  %v1994_v4 = vsel %vm6178_vm5, %v6276_v1, 0.0  ;;  %vm8735_vm10 = vcmask 1046528   ;;  %3185 = vmatpush2.msra.mxu0 %v6675_v40 }
 0x203   : > { %4291 = vrot.lane.b32.xlu1 %v4290_v33, %s4763_s23  ;;  %v1954_v33 = vsel %vm6163_vm2, %v8706_v50, 0.0  ;;  %8725 = vst [vmem:[#allocation19_spill] sm:$0xff] %v6863_v34  ;;  %v8726_v50 = vld [vmem:[#allocation33_spill] sm:$0xff]  ;;  %vm8728_vm2 = vnez %v8727_v35  ;;  %4025 = vmatprep.subr.mxu1 %v8379_v47  ;;  %vm8732_vm6 = vnez %v8731_v36  ;;  %v6890_v35 = vpop.permute.xlu0 %4106 }
 0x204   : > { %v2026_v31 = vsel %vm8728_vm2, %v8726_v50, 0.0  ;;  %v4315_v19 = vpack.i.bf16 %v1954_v33, %v8729_v52  ;;  %4057 = vmatpush2.msra.mxu1 %v3021_v63  ;;  %v8734_v33 = vrot.slane %v8733_v51, 1  ;;  %8736 = vst [vmem:[#allocation91_spill] sm:$0xff] %v6890_v35  ;;  %v3019_v36 = vld [vmem:[%s8028_s6 + $0x80] sm:$0xff]  ;;  %v2038_v50 = vsel %vm8692_vm1, %v6522_v42, 0.0  ;;  %3186 = vmatprep.subr.mxu0 %v8379_v47 }
 0x205   : > { %4361 = vrot.lane.b32.xlu0 %v4360_v59, %s4765_s17  ;;  %4026 = vmatprep.subr.mxu1 %v8379_v47  ;;  %v4370_v59 = vpack.i.bf16 %v2036_v15, %v2026_v31  ;;  %v4109_v31 = vunpack.i.h.bf16 %v6890_v35 }
 0x206   : > { %v1945_v49 = vsel %vm8735_vm10, 0.0, %v8734_v33  ;;  %4058 = vmatpush2.msra.mxu1 %v3020_v25  ;;  %v8739_v33 = vld [vmem:[#allocation8_spill] sm:$0xff]  ;;  %3187 = vmatpush2.msra.mxu0 %v6726_v6  ;;  %vm8741_vm10 = vcmask 261120  }
 0x207   : > { %4306 = vrot.lane.b32.xlu1 %v4305_v3, %s4764_s24  ;;  %v8730_v3 = vld [vmem:[#allocation20_spill] sm:$0xff]  ;;  %4027 = vmatprep.subr.mxu1 %v8379_v47  ;;  %v1956_v52 = vsel %vm6184_vm3, %v8739_v33, 0.0 }
 0x208   : > { %v1984_v37 = vsel %vm8732_vm6, %v8730_v3, 0.0  ;;  %4059 = vmatpush2.msra.mxu1 %v3019_v36  ;;  %v8740_v34 = vsel %vm8702_vm8, %v8730_v3, 0.0  ;;  %3188 = vmatprep.subr.mxu0 %v8379_v47  ;;  %vm8747_vm8 = vmmov %vm8741_vm10 }
 0x209   : > { %4371 = vrot.lane.b32.xlu0 %v4370_v59, %s4763_s23  ;;  %v4325_v15 = vpack.i.bf16 %v1994_v4, %v1984_v37  ;;  %v6914_v35 = vsel %vm8741_vm10, %v8740_v34, %v4109_v31  ;;  %v8742_v37 = vld [vmem:[#allocation25_spill] sm:$0xff]  ;;  %3189 = vmatpush2.msra.mxu0 %v6762_v11  ;;  %v8743_v34 = vld [vmem:[#allocation70_spill] sm:$0xff]  ;;  %v6934_v11 = vpop.permute.xlu1 %4121  ;;  %v8746_v31 = vsel %vm8716_vm12, %v8717_v18, 0.0  ;;  %v8749_v18 = vld [vmem:[#allocation80_spill] sm:$0xff]  ;;  %vm8750_vm12 = vnez %v8560_v53 }
 0x20a   : > { %v4380_v4 = vpack.i.bf16 %v2038_v50, %v8742_v37  ;;  %3190 = vmatprep.subr.mxu0 %v8379_v47  ;;  %v1962_v50 = vsel %vm8692_vm1, %v6515_v54, 0.0  ;;  %v8745_v59 = vld [vmem:[#allocation78_spill] sm:$0xff]  ;;  %vm8752_vm10 = vmmov %vm8747_vm8  ;;  %vm8776_vm1 = vcmask 1040384  }
 0x20b   : > { %4316 = vrot.lane.b32.xlu1 %v4315_v19, %s4765_s17  ;;  %v8737_v19 = vld [vmem:[#allocation31_spill] sm:$0xff]  ;;  %3191 = vmatpush2.msra.mxu0 %v6802_v5  ;;  %v4124_v5 = vunpack.i.h.bf16 %v6934_v11  ;;  %v8772_v54 = vld [vmem:[#allocation82_spill] sm:$0xff] }
 0x20c   : > { %vm8738_vm6 = vnez %v8737_v19  ;;  %3192 = vmatprep.subr.mxu0 %v8379_v47 }
 0x20d   : > { %v1946_v40 = vsel %vm8738_vm6, %v1945_v49, 0.0  ;;  %v2000_v49 = vsel %vm6407_vm9, %v6476_v2, 0.0  ;;  %4381 = vrot.lane.b32.xlu0 %v4380_v4, %s4763_s23  ;;  %3193 = vmatpush2.msra.mxu0 %v6820_v55  ;;  %v2040_v55 = vsel %vm8693_vm4, %v6582_v21, 0.0 }
 0x20e   : > { %v4335_v6 = vpack.i.bf16 %v1956_v52, %v1946_v40  ;;  %v4395_v29 = vpack.i.bf16 %v2000_v49, %v8743_v34  ;;  %3194 = vmatprep.subr.mxu0 %v8379_v47  ;;  %v8744_v52 = vld [vmem:[#allocation92_spill] sm:$0xff]  ;;  %v4405_v4 = vpack.i.bf16 %v2040_v55, %v8748_v48  ;;  %v2002_v49 = vsel %vm8750_vm12, %v6589_v12, 0.0 }
 0x20f   : > { %4326 = vrot.lane.b32.xlu1 %v4325_v15, %s4764_s24  ;;  %3195 = vmatpush2.msra.mxu0 %v6832_v41  ;;  %v4400_v3 = vpack.i.bf16 %v1962_v50, %v8744_v52  ;;  %v6951_v15 = vsel %vm8747_vm8, %v8746_v31, %v4124_v5  ;;  %v6954_v41 = vpop.permute.xlu0 %4111  ;;  %v8754_v5 = vld [vmem:[#allocation84_spill] sm:$0xff]  ;;  %v8757_v31 = vld [vmem:[#allocation63_spill] sm:$0xff]  ;;  %vm8761_vm8 = vcmask 1040384  }
 0x210   : > { %3196 = vmatprep.subr.mxu0 %v8379_v47  ;;  %v4114_v40 = vunpack.i.h.bf16 %v6954_v41 }
 0x211   : > { %4396 = vrot.lane.b32.xlu0 %v4395_v29, %s4764_s24  ;;  %3197 = vmatpush2.msra.mxu0 %v3021_v63  ;;  %v6961_v63 = vld [vmem:[%s8028_s6 + $0x118] sm:$0xff]  ;;  %v8753_v29 = vld [vmem:[#allocation79_spill] sm:$0xff] }
 0x212   : > { %3198 = vmatprep.subr.mxu0 %v8379_v47  ;;  %v4420_v50 = vpack.i.bf16 %v2002_v49, %v8753_v29 }
 0x213   : > { %4336 = vrot.lane.b32.xlu1 %v4335_v6, %s4765_s17  ;;  %3199 = vmatpush2.msra.mxu0 %v3020_v25  ;;  %v8751_v25 = vsel %vm8719_vm13, %v8500_v20, 0.0  ;;  %v2071_v20 = vsel %vm6407_vm9, %v6589_v12, 0.0  ;;  %vm8756_vm13 = vnez %v8600_v60 }
 0x214   : > { %3200 = vmatprep.subr.mxu0 %v8379_v47  ;;  %v6975_v6 = vsel %vm8752_vm10, %v8751_v25, %v4114_v40  ;;  %v2042_v55 = vsel %vm8756_vm13, %v6596_v10, 0.0  ;;  %v4385_v40 = vpack.i.bf16 %v8757_v31, %v2071_v20  ;;  %vm8763_vm10 = vnez %v8566_v38  ;;  %v8774_v31 = vld [vmem:[#allocation29_spill] sm:$0xff] }
 0x215   : > { %4401 = vrot.lane.b32.xlu0 %v4400_v3, %s4765_s17  ;;  %3201 = vmatpush2.msra.mxu0 %v3019_v36  ;;  %v1964_v36 = vsel %vm8693_vm4, %v6522_v42, 0.0  ;;  %v8755_v3 = vld [vmem:[#allocation86_spill] sm:$0xff]  ;;  %vm8278_vm4 = vcmask 523264  }
 0x216   : > { %3940 = vmatprep.subr.mxu0 %v6961_v63  ;;  %v4425_v61 = vpack.i.bf16 %v1964_v36, %v6382_v23  ;;  %v7012_v36 = vpop.permute.xlu0 %4126 }
 0x217   : > { %4341 = vrot.lane.b32.xlu1 %v8745_v59, %s4765_s17  ;;  %v6992_v59 = vpop.permute.xlu1 %4136 }
 0x219   : > { %4406 = vrot.lane.b32.xlu0 %v4405_v4, %s4763_s23  ;;  %v8758_v4 = vrot.slane %v6244_v30, 7 }
 0x21b   : > { %4351 = vrot.lane.b32.xlu1 %v8749_v18, %s4763_s23  ;;  %v8759_v18 = vld [vmem:[#allocation5_spill] sm:$0xff]  ;;  %v7014_v20 = vpop.permute.xlu1 %4141 }
 0x21c   : > { %v8760_v49 = vrot.slane %v8759_v18, 7 }
 0x21d   : > { %4421 = vrot.lane.b32.xlu0 %v4420_v50, %s4764_s24  ;;  %v4430_v50 = vpack.i.bf16 %v2042_v55, %v8743_v34 }
 0x21e   : > { %v7004_v25 = vsel %vm8761_vm8, %v8760_v49, %v8758_v4  ;;  %v8764_v49 = vld [vmem:[#allocation72_spill] sm:$0xff]  ;;  %vm8767_vm8 = vcmask 1046528  }
 0x21f   : > { %4366 = vrot.lane.b32.xlu1 %v8754_v5, %s4764_s24  ;;  %8762 = vst [vmem:[#allocation26_spill] sm:$0xff] %v7004_v25  ;;  %v2004_v5 = vsel %vm8763_vm10, %v6610_v22, 0.0  ;;  %v7027_v4 = vpop.permute.xlu1 %4161  ;;  %v7035_v42 = vsel %vm8767_vm8, %v8766_v56, %v8765_v26  ;;  %v2075_v56 = vsel %vm8763_vm10, %v6624_v27, 0.0  ;;  %vm8769_vm8 = vnez %v8574_v17  ;;  %v8792_v17 = vld [vmem:[#allocation93_spill] sm:$0xff] }
 0x220   : > { %v4445_v55 = vpack.i.bf16 %v2004_v5, %v8759_v18  ;;  %8768 = vst [vmem:[#allocation95_spill] sm:$0xff] %v7035_v42  ;;  %v7037_v5 = vpop.permute.xlu0 %4131  ;;  %v4415_v60 = vpack.i.bf16 %v7035_v42, %v6244_v30  ;;  %v4435_v23 = vpack.i.bf16 %v8772_v54, %v2075_v56  ;;  %v8775_v30 = vrot.slane %v8774_v31, 7  ;;  %v8782_v54 = vld [vmem:[#allocation11_spill] sm:$0xff] }
 0x221   : > { %4426 = vrot.lane.b32.xlu0 %v4425_v61, %s4765_s17  ;;  %v4390_v61 = vpack.i.bf16 %v7004_v25, %v6260_v57  ;;  %v8783_v13 = vrot.slane %v8782_v54, 1 }
 0x223   : > { %4376 = vrot.lane.b32.xlu1 %v8755_v3, %s4765_s17  ;;  %v2073_v3 = vsel %vm8750_vm12, %v6610_v22, 0.0 }
 0x225   : > { %4431 = vrot.lane.b32.xlu0 %v4430_v50, %s4763_s23  ;;  %v4410_v50 = vpack.i.bf16 %v8764_v49, %v2073_v3  ;;  %v7045_v3 = vpop.permute.xlu1 %4171 }
 0x226   : > { %v4174_v26 = vunpack.i.h.bf16 %v7045_v3 }
 0x227   : > { %4386 = vrot.lane.b32.xlu1 %v4385_v40, %s4765_s17  ;;  %v1966_v40 = vsel %vm8756_vm13, %v6582_v21, 0.0  ;;  %v8770_v21 = vsel %vm6178_vm5, %v6451_v43, 0.0  ;;  %vm8771_vm13 = vcmask 261120   ;;  %vm8778_vm5 = vnez %v8621_v62 }
 0x229   : > { %4446 = vrot.lane.b32.xlu0 %v4445_v55, %s4764_s24  ;;  %v2044_v55 = vsel %vm6528_vm0, %v6617_v9, 0.0  ;;  %v7066_v49 = vpop.permute.xlu1 %4176 }
 0x22b   : > { %4391 = vrot.lane.b32.xlu1 %v4390_v61, %s4764_s24  ;;  %v4450_v61 = vpack.i.bf16 %v1966_v40, %v7004_v25  ;;  %v7053_v40 = vpop.permute.xlu0 %4146  ;;  %v2819_v25 = vsel %vm8771_vm13, %v8770_v21, %v4174_v26  ;;  %v1968_v21 = vsel %vm6528_vm0, %v6596_v10, 0.0  ;;  %v8781_v10 = vrot.slane %v8780_v0, 1 }
 0x22d   : > { %4451 = vrot.lane.b32.xlu0 %v4450_v61, %s4765_s17  ;;  %v2006_v61 = vsel %vm8769_vm8, %v6624_v27, 0.0  ;;  %v7088_v56 = vpop.permute.xlu1 %4181 }
 0x22e   : > { %v4470_v43 = vpack.i.bf16 %v2006_v61, %v8774_v31 }
 0x22f   : > { %4411 = vrot.lane.b32.xlu1 %v4410_v50, %s4765_s17  ;;  %v4455_v50 = vpack.i.bf16 %v2044_v55, %v8753_v29  ;;  %v4179_v55 = vunpack.i.h.bf16 %v7066_v49  ;;  %v7077_v16 = vpop.permute.xlu0 %4151  ;;  %v8797_v29 = vld [vmem:[#allocation66_spill] sm:$0xff] }
 0x231   : > { %4456 = vrot.lane.b32.xlu0 %v4455_v50, %s4763_s23  ;;  %v7085_v26 = vsel %vm8278_vm4, %v2819_v25, %v4179_v55  ;;  %v2077_v50 = vsel %vm8769_vm8, %v6646_v45, 0.0  ;;  %v2046_v25 = vsel %vm8778_vm5, %v6639_v24, 0.0  ;;  %v7103_v55 = vpop.permute.xlu1 %4191 }
 0x233   : > { %4416 = vrot.lane.b32.xlu1 %v4415_v60, %s4763_s23  ;;  %v8773_v60 = vrot.slane %v6260_v57, 7  ;;  %v7095_v61 = vpop.permute.xlu0 %4156 }
 0x235   : > { %v7075_v27 = vsel %vm8776_vm1, %v8775_v30, %v8773_v60  ;;  %4471 = vrot.lane.b32.xlu0 %v4470_v43, %s4764_s24  ;;  %v8779_v60 = vld [vmem:[#allocation89_spill] sm:$0xff]  ;;  %vm8784_vm1 = vcmask 1046528  }
 0x236   : > { %8777 = vst [vmem:[#allocation27_spill] sm:$0xff] %v7075_v27  ;;  %v4440_v30 = vpack.i.bf16 %v7075_v27, %v6331_v32  ;;  %v4460_v43 = vpack.i.bf16 %v8779_v60, %v2077_v50  ;;  %v7111_v22 = vsel %vm8784_vm1, %v8783_v13, %v8781_v10  ;;  %v7121_v50 = vpop.permute.xlu1 %4211  ;;  %vm8790_vm1 = vcmask 1040384  }
 0x237   : > { %4436 = vrot.lane.b32.xlu1 %v4435_v23, %s4765_s17  ;;  %v4475_v23 = vpack.i.bf16 %v1968_v21, %v7075_v27  ;;  %8785 = vst [vmem:[#allocation28_spill] sm:$0xff] %v7111_v22  ;;  %v7113_v21 = vpop.permute.xlu0 %4166  ;;  %v8786_v27 = vld [vmem:[#allocation99_spill] sm:$0xff]  ;;  %v4465_v60 = vpack.i.bf16 %v7111_v22, %v6260_v57  ;;  %v1970_v57 = vsel %vm8778_vm5, %v6617_v9, 0.0  ;;  %vm8798_vm5 = vnez %v8797_v29 }
 0x238   : > { %vm8787_vm13 = vnez %v8786_v27  ;;  %v8799_v8 = vsel %vm8798_vm5, %v6276_v1, 0.0  ;;  %vm8808_vm5 = vcmask 1046528  }
 0x239   : > { %4476 = vrot.lane.b32.xlu0 %v4475_v23, %s4765_s17  ;;  %v2008_v23 = vsel %vm8787_vm13, %v6646_v45, 0.0  ;;  %v2079_v13 = vsel %vm8787_vm13, %v6653_v44, 0.0  ;;  %v8789_v45 = vrot.slane %v6328_v39, 7 }
 0x23a   : > { %v7143_v27 = vpop.permute.xlu1 %4221 }
 0x23b   : > { %4441 = vrot.lane.b32.xlu1 %v4440_v30, %s4764_s24  ;;  %v4480_v30 = vpack.i.bf16 %v2046_v25, %v8759_v18  ;;  %v7128_v10 = vpop.permute.xlu0 %4186  ;;  %v4495_v25 = vpack.i.bf16 %v2008_v23, %v6328_v39  ;;  %v4485_v18 = vpack.i.bf16 %v8792_v17, %v2079_v13  ;;  %v4224_v23 = vunpack.i.h.bf16 %v7143_v27  ;;  %v8795_v17 = vld [vmem:[#allocation102_spill] sm:$0xff] }
 0x23c   : > { %vm8796_vm4 = vnez %v8795_v17 }
 0x23d   : > { %4481 = vrot.lane.b32.xlu0 %v4480_v30, %s4763_s23  ;;  %v2081_v38 = vsel %vm8796_vm4, %v6668_v14, 0.0  ;;  %v2010_v29 = vsel %vm8796_vm4, %v6653_v44, 0.0  ;;  %vm8850_vm4 = vcmask 785408  }
 0x23e   : > { %v4227_v62 = vpop.permute.xlu1 %4226  ;;  %vm8851_vm15 = vmmov %vm8850_vm4 }
 0x23f   : > { %4461 = vrot.lane.b32.xlu1 %v4460_v43, %s4765_s17  ;;  %v8788_v43 = vrot.slane %v6331_v32, 7  ;;  %v4229_v9 = vunpack.i.h.bf16 %v4227_v62 }
 0x241   : > { %v7137_v30 = vsel %vm8790_vm1, %v8789_v45, %v8788_v43  ;;  %4496 = vrot.lane.b32.xlu0 %v4495_v25, %s4764_s24  ;;  %v2048_v43 = vsel %vm8700_vm11, %v6661_v7, 0.0  ;;  %v8793_v25 = vsel %vm5982_vm14, %v6305_v58, 0.0  ;;  %vm8794_vm1 = vcmask 261120  }
 0x242   : > { %8791 = vst [vmem:[#allocation30_spill] sm:$0xff] %v7137_v30  ;;  %v4500_v12 = vpack.i.bf16 %v1970_v57, %v7137_v30  ;;  %v2823_v13 = vsel %vm8794_vm1, %v8793_v25, %v4224_v23  ;;  %v4490_v57 = vpack.i.bf16 %v7137_v30, %v8780_v0  ;;  %vm8800_vm0 = vmmov %vm8794_vm1  ;;  %v1788_v23 = vrot.slane %v8780_v0, 7  ;;  %v8801_v25 = vld [vmem:[#allocation68_spill] sm:$0xff] }
 0x243   : > { %4466 = vrot.lane.b32.xlu1 %v4465_v60, %s4763_s23  ;;  %v7147_v60 = vpop.permute.xlu0 %4196  ;;  %vm8802_vm14 = vcmask 523264   ;;  %v8807_v2 = vrot.slane %v8801_v25, 1 }
 0x244   : > { %v4199_v45 = vunpack.i.h.bf16 %v7147_v60 }
 0x245   : > { %4501 = vrot.lane.b32.xlu0 %v4500_v12, %s4765_s17  ;;  %v4505_v12 = vpack.i.bf16 %v2048_v43, %v8774_v31  ;;  %v7189_v43 = vpop.permute.xlu1 %4231  ;;  %v8805_v31 = vld [vmem:[#allocation13_spill] sm:$0xff] }
 0x246   : > { %v2821_v58 = vsel %vm8800_vm0, %v8799_v8, %v4199_v45  ;;  %vm8803_vm0 = vmmov %vm8802_vm14  ;;  %v8806_v52 = vrot.slane %v8805_v31, 1 }
 0x247   : > { %4486 = vrot.lane.b32.xlu1 %v4485_v18, %s4765_s17  ;;  %v4228_v18 = vunpack.i.l.bf16 %v4227_v62  ;;  %v7171_v33 = vpop.permute.xlu0 %4201  ;;  %v1978_v62 = vrot.slane %v8801_v25, 7  ;;  %v7186_v45 = vsel %vm8803_vm0, %v2823_v13, %v4229_v9  ;;  %vm8810_vm1 = vmmov %vm8803_vm0  ;;  %v4520_v9 = vpack.i.bf16 %v2010_v29, %v8782_v54 }
 0x248   : > { %v4204_v30 = vunpack.i.h.bf16 %v7171_v33  ;;  %v7197_v17 = vsel %vm8808_vm5, %v8807_v2, %v8806_v52  ;;  %v1972_v2 = vsel %vm8700_vm11, %v6639_v24, 0.0  ;;  %vm8828_vm11 = vcmask 523264  }
 0x249   : > { %v7183_v1 = vsel %vm8802_vm14, %v6975_v6, %v4228_v18  ;;  %4506 = vrot.lane.b32.xlu0 %v4505_v12, %s4763_s23  ;;  %8809 = vst [vmem:[#allocation17_spill] sm:$0xff] %v7197_v17  ;;  %vm8811_vm14 = vcmask 1040384   ;;  %v7216_v52 = vpop.permute.xlu1 %4241 }
 0x24a   : > { %v7200_v44 = vsel %vm8810_vm1, %v2821_v58, %v4204_v30  ;;  %v1979_v13 = vsel %vm8811_vm14, %v1788_v23, %v1978_v62  ;;  %vm8813_vm0 = vmmov %vm8811_vm14  ;;  %v4515_v30 = vpack.i.bf16 %v7197_v17, %v6331_v32  ;;  %v8815_v58 = vld [vmem:[#allocation107_spill] sm:$0xff] }
 0x24b   : > { %4491 = vrot.lane.b32.xlu1 %v4490_v57, %s4764_s24  ;;  %v8804_v57 = vld [vmem:[#allocation96_spill] sm:$0xff]  ;;  %v7202_v6 = vpop.permute.xlu0 %4206  ;;  %vm8816_vm5 = vnez %v8815_v58  ;;  %vm8820_vm1 = vmmov %vm8813_vm0  ;;  %v4123_v58 = vunpack.i.l.bf16 %v6934_v11 }
 0x24c   : > { %v4510_v8 = vpack.i.bf16 %v8804_v57, %v2081_v38  ;;  %v8812_v38 = vrot.slane %v8782_v54, 7  ;;  %v2083_v12 = vsel %vm8816_vm5, %v1979_v13, 0.0  ;;  %v8819_v57 = vld [vmem:[#allocation14_spill] sm:$0xff]  ;;  %v2012_v34 = vsel %vm8816_vm5, %v6668_v14, 0.0 }
 0x24d   : > { %4521 = vrot.lane.b32.xlu0 %v4520_v9, %s4764_s24  ;;  %v7231_v24 = vpop.permute.xlu1 %4246  ;;  %v4535_v17 = vpack.i.bf16 %v7035_v42, %v2083_v12  ;;  %v1251_v32 = vadd.s32 248, %v8819_v57  ;;  %v8821_v42 = vld [vmem:[#allocation109_spill] sm:$0xff]  ;;  %v1974_v14 = vsel %vm8703_vm7, %v6661_v7, 0.0  ;;  %v8839_v7 = vld [vmem:[#allocation91_spill] sm:$0xff] }
 0x24e   : > { %v7210_v18 = vsel %vm8813_vm0, %v8812_v38, %v1788_v23  ;;  %v1980_v23 = vrot.slane %v8805_v31, 7  ;;  %v8817_v38 = vld [vmem:[#allocation121_spill] sm:$0xff]  ;;  %vm8822_vm14 = vnez %v8821_v42  ;;  %v4129_v42 = vunpack.i.h.bf16 %v7012_v36 }
 0x24f   : > { %4511 = vrot.lane.b32.xlu1 %v4510_v8, %s4765_s17  ;;  %8814 = vst [vmem:[#allocation20_spill] sm:$0xff] %v7210_v18  ;;  %v7222_v29 = vpop.permute.xlu0 %4216  ;;  %v4525_v8 = vpack.i.bf16 %v1972_v2, %v7210_v18  ;;  %v2050_v9 = vsel %vm8703_vm7, %v8817_v38, 0.0  ;;  %v4540_v12 = vpack.i.bf16 %v7210_v18, %v8805_v31  ;;  %v1473_v57 = vand.u32 15, %v1251_v32 }
 0x250   : > { %v4530_v2 = vpack.i.bf16 %v2050_v9, %v6328_v39  ;;  %vm8827_vm7 = vcmask 261120  }
 0x251   : > { %4526 = vrot.lane.b32.xlu0 %v4525_v8, %s4765_s17  ;;  %v7244_v8 = vpop.permute.xlu1 %4251 }
 0x253   : > { %4516 = vrot.lane.b32.xlu1 %v4515_v30, %s4763_s23  ;;  %v7235_v53 = vpop.permute.xlu0 %4236  ;;  %v2054_v30 = vsel %vm8820_vm1, %v1980_v23, 0.0  ;;  %vm7262_vm1 = vcmp.le.s32.totalorder %v1473_v57, 14 }
 0x254   : > { %v2085_v19 = vsel %vm8822_vm14, %v2054_v30, 0.0  ;;  %v4159_v30 = vunpack.i.h.bf16 %v7095_v61 }
 0x255   : > { %4531 = vrot.lane.b32.xlu0 %v4530_v2, %s4763_s23  ;;  %v1981_v2 = vsel %vm8813_vm0, %v1978_v62, %v1980_v23  ;;  %v7260_v32 = vpop.permute.xlu1 %4256  ;;  %v8825_v62 = vld [vmem:[#allocation122_spill] sm:$0xff]  ;;  %vm8305_vm0 = vcmask 785408   ;;  %v4164_v23 = vunpack.i.h.bf16 %v7027_v4 }
 0x256   : > { %v2052_v11 = vsel %vm7262_vm1, %v8825_v62, 0.0 }
 0x257   : > { %4536 = vrot.lane.b32.xlu1 %v4535_v17, %s4765_s17  ;;  %v7250_v9 = vpop.permute.xlu0 %4286  ;;  %v4545_v17 = vpack.i.bf16 %v2012_v34, %v8801_v25  ;;  %v4560_v34 = vpack.i.bf16 %v7111_v22, %v2085_v19  ;;  %v8838_v22 = vld [vmem:[#allocation88_spill] sm:$0xff] }
 0x259   : > { %4546 = vrot.lane.b32.xlu0 %v4545_v17, %s4764_s24  ;;  %v7276_v57 = vpop.permute.xlu1 %4261  ;;  %v8826_v17 = vld [vmem:[#allocation56_spill] sm:$0xff] }
 0x25a   : > { %v2816_v19 = vsel %vm8827_vm7, %v8826_v17, %v4123_v58 }
 0x25b   : > { %4541 = vrot.lane.b32.xlu1 %v4540_v12, %s4764_s24  ;;  %v7267_v18 = vpop.permute.xlu0 %4296  ;;  %v4550_v12 = vpack.i.bf16 %v1974_v14, %v1981_v2 }
 0x25c   : > { %v4299_v31 = vunpack.i.h.bf16 %v7267_v18 }
 0x25d   : > { %4551 = vrot.lane.b32.xlu0 %v4550_v12, %s4765_s17  ;;  %v2014_v12 = vsel %vm8822_vm14, %v1979_v13, 0.0  ;;  %v7292_v46 = vpop.permute.xlu1 %4266 }
 0x25e   : > { %v2849_v14 = vsel %vm8828_vm11, %v2816_v19, %v4299_v31  ;;  %8829 = vst [vmem:[#allocation75_spill] sm:$0xff] %v7292_v46  ;;  %v4565_v31 = vpack.i.bf16 %v2014_v12, %v8379_v47  ;;  %v4128_v12 = vunpack.i.l.bf16 %v7012_v36  ;;  %vm8833_vm11 = vmmov %vm8827_vm7 }
 0x25f   : > { %4561 = vrot.lane.b32.xlu1 %v4560_v34, %s4765_s17  ;;  %v7281_v25 = vpop.permute.xlu0 %4301  ;;  %v4555_v34 = vpack.i.bf16 %v2052_v11, %v8782_v54  ;;  %v7287_v62 = vsel %vm8305_vm0, %v2849_v14, %v4164_v23  ;;  %v4173_v11 = vunpack.i.l.bf16 %v7045_v3  ;;  %vm8834_vm0 = vcmask 523264   ;;  %v8840_v54 = vld [vmem:[#allocation41_spill] sm:$0xff] }
 0x260   : > { %vm8835_vm14 = vmmov %vm8834_vm0 }
 0x261   : > { %4556 = vrot.lane.b32.xlu0 %v4555_v34, %s4763_s23  ;;  %v1976_v34 = vsel %vm7262_vm1, %v8817_v38, 0.0  ;;  %vm8836_vm1 = vcmask 785408  }
 0x262   : > { %vm8837_vm5 = vmmov %vm8836_vm1 }
 0x263   : > { %2177 = vrot.lane.b32.xlu1 %v8780_v0, %s4763_s23  ;;  %v7294_v58 = vpop.permute.xlu0 %4311 }
 0x264   : > { %v4314_v17 = vunpack.i.h.bf16 %v7294_v58 }
 0x265   : > { %4566 = vrot.lane.b32.xlu0 %v4565_v31, %s4764_s24  ;;  %v8832_v31 = vld [vmem:[#allocation40_spill] sm:$0xff] }
 0x266   : > { %v2907_v3 = vsel %vm8827_vm7, %v8733_v51, %v4314_v17  ;;  %v2917_v47 = vsel %vm8833_vm11, %v8832_v31, %v4173_v11  ;;  %v4118_v51 = vunpack.i.l.bf16 %v8838_v22  ;;  %v4108_v11 = vunpack.i.l.bf16 %v8839_v7  ;;  %vm8846_vm11 = vmmov %vm8834_vm0 }
 0x267   : > { %2431 = vrot.lane.b32.xlu1 %v1981_v2, %s4764_s24  ;;  %v4322_v19 = vpop.permute.xlu0 %4321  ;;  %s7975_s24 = scalar_lea.hbm %s8030_s8, %s3808_s20 }
 0x268   : > { %v4324_v13 = vunpack.i.h.bf16 %v4322_v19  ;;  %v4323_v14 = vunpack.i.l.bf16 %v4322_v19 }
 0x269   : > { %v7301_v23 = vpop.permute.xlu1 %4271  ;;  %2303 = vrot.lane.b32.xlu0 %v1976_v34, %s4765_s17  ;;  %s4700_s17 = scalar_lea.vmem %s7977_s21, 4096 }
 0x26a   : > { %8830 = vst [vmem:[#allocation18_spill] sm:$0xff] %v7301_v23  ;;  %v2939_v19 = vsel %vm8834_vm0, %v2907_v3, %v4323_v14  ;;  %v2949_v0 = vsel %vm8835_vm14, %v2917_v47, %v4324_v13  ;;  %v4189_v14 = vunpack.i.h.bf16 %v7128_v10  ;;  %v4134_v47 = vunpack.i.h.bf16 %v7037_v5  ;;  %vm8841_vm14 = vmmov %vm8827_vm7  ;;  %p4701_p11 = scmp.ne.s32.totalorder %s7977_s21, %s4700_s17  ;;  %p4708_p1 = scmp.lt.s32.totalorder %s4706_s9, %s4700_s17 }
 0x26b   : > { %v7318_v38 = vpop.permute.xlu0 %4331  ;;  %v2971_v36 = vsel %vm8836_vm1, %v2939_v19, %v4128_v12  ;;  %v7322_v34 = vsel %vm8837_vm5, %v2949_v0, %v4129_v42  ;;  %v4289_v0 = vunpack.i.h.bf16 %v7250_v9  ;;  %v4288_v42 = vunpack.i.l.bf16 %v7250_v9  ;;  %v8842_v19 = vld [vmem:[#allocation22_spill] sm:$0xff]  ;;  %vm8843_vm5 = vmmov %vm8827_vm7 }
 0x26c   : > { %v4334_v17 = vunpack.i.h.bf16 %v7318_v38  ;;  %3202 = vmatprep.mubr.f32.mxu0 %v2971_v36  ;;  %v2913_v36 = vsel %vm8843_vm5, %v8842_v19, %v4159_v30  ;;  %vm8844_vm7 = vmmov %vm8834_vm0  ;;  %p4702_p12 = pnand %p4701_p11, %p4852_p5  ;;  %p4709_p2 = por %p4708_p1, %p4707_p0 }
 0x26d   : > { %v7311_v2 = vpop.permute.xlu1 %4276  ;;  %vm8848_vm1 = vmmov %vm8843_vm5 }
 0x26e   : > { %8831 = vst [vmem:[#allocation25_spill] sm:$0xff] %v7311_v2  ;;  %v2918_v12 = vsel %vm8841_vm14, %v8840_v54, %v4334_v17  ;;  %v8845_v2 = vld [vmem:[#allocation19_spill] sm:$0xff]  ;;  %vm8849_vm14 = vmmov %vm8848_vm1  ;;  %p4703_p13 = pneg %p4702_p12 }
 0x26f   : > { %v7333_v22 = vpop.permute.xlu0 %4346  ;;  %v2950_v7 = vsel %vm8834_vm0, %v2918_v12, %v4189_v14  ;;  %v7346_v54 = vsel %vm8849_vm14, 0.0, %v4108_v11  ;;  %vm8852_vm5 = vmmov %vm8850_vm4  ;;  %v4113_v14 = vunpack.i.l.bf16 %v6954_v41  ;;  %v4149_v11 = vunpack.i.h.bf16 %v7053_v40 }
 0x270   : > { %v7351_v30 = vsel %vm8852_vm5, %v2950_v7, %v4134_v47  ;;  %v4148_v12 = vunpack.i.l.bf16 %v7053_v40  ;;  %v4209_v41 = vunpack.i.h.bf16 %v7202_v6  ;;  %v8853_v47 = vld [vmem:[#allocation37_spill] sm:$0xff]  ;;  %v4313_v40 = vunpack.i.l.bf16 %v7294_v58  ;;  %vm8861_vm14 = vmmov %vm8852_vm5  ;;  %p4710_p3 = pnand %p4709_p2, %p4703_p13 }
 0x271   : > { %v4282_v3 = vpop.permute.xlu1 %4281  ;;  %v4168_v58 = vunpack.i.l.bf16 %v7113_v21 }
 0x272   : > { %v4284_v13 = vunpack.i.h.bf16 %v4282_v3  ;;  %v4283_v31 = vunpack.i.l.bf16 %v4282_v3  ;;  %v8847_v3 = vld [vmem:[#allocation61_spill] sm:$0xff] }
 0x273   : > { %v7343_v46 = vsel %vm8848_vm1, %v8847_v3, %v4118_v51  ;;  %v4163_v51 = vunpack.i.l.bf16 %v7027_v4  ;;  %v4304_v4 = vunpack.i.h.bf16 %v7281_v25 }
 0x274   : > { %v2945_v39 = vsel %vm8844_vm7, %v2913_v36, %v4283_v31  ;;  %v2848_v23 = vsel %vm8846_vm11, %v8845_v2, %v4284_v13  ;;  %v4158_v31 = vunpack.i.l.bf16 %v7095_v61  ;;  %v4303_v36 = vunpack.i.l.bf16 %v7281_v25  ;;  %vm8857_vm7 = vmmov %vm8852_vm5 }
 0x275   : > { %v4292_v9 = vpop.permute.xlu1 %4291  ;;  %v2977_v17 = vsel %vm8850_vm4, %v2945_v39, %v4288_v42  ;;  %v2881_v28 = vsel %vm8851_vm15, %v2848_v23, %v4289_v0  ;;  %v4298_v39 = vunpack.i.l.bf16 %v7267_v18  ;;  %v7359_v42 = vpop.permute.xlu0 %4356  ;;  %v4223_v23 = vunpack.i.l.bf16 %v7143_v27  ;;  %vm8854_vm15 = vmmov %vm8848_vm1  ;;  %v8855_v0 = vld [vmem:[#allocation38_spill] sm:$0xff] }
 0x276   : > { %v4294_v2 = vunpack.i.h.bf16 %v4292_v9  ;;  %v4293_v13 = vunpack.i.l.bf16 %v4292_v9  ;;  %3232 = vmatprep.mubr.f32.mxu1 %v2977_v17  ;;  %vm8856_vm4 = vmmov %vm8848_vm1  ;;  %v8858_v9 = vld [vmem:[#allocation42_spill] sm:$0xff] }
 0x277   : > { %3233 = vmatmul.mubr.f32.vlgmr.msra.gmra.mxu1 %v2881_v28  ;;  %v4178_v28 = vunpack.i.l.bf16 %v7066_v49  ;;  %vm8859_vm11 = vmmov %vm8848_vm1 }
 0x278   : > { %v2914_v61 = vsel %vm8854_vm15, %v8853_v47, %v4293_v13  ;;  %v2915_v19 = vsel %vm8856_vm4, %v8855_v0, %v4294_v2  ;;  %v2818_v17 = vsel %vm8859_vm11, %v8858_v9, %v4158_v31  ;;  %v4169_v13 = vunpack.i.h.bf16 %v7113_v21  ;;  %vm8860_vm1 = vmmov %vm8834_vm0  ;;  %v8863_v9 = vld [vmem:[#allocation39_spill] sm:$0xff] }
 0x279   : > { %v4307_v18 = vpop.permute.xlu1 %4306  ;;  %v2946_v7 = vsel %vm8834_vm0, %v2914_v61, %v4298_v39  ;;  %v4333_v2 = vunpack.i.l.bf16 %v7318_v38  ;;  %v4362_v47 = vpop.permute.xlu0 %4361  ;;  %v2947_v25 = vsel %vm8860_vm1, %v2915_v19, %v4303_v36  ;;  %vm8862_vm5 = vmmov %vm8834_vm0 }
 0x27a   : > { %v4308_v27 = vunpack.i.l.bf16 %v4307_v18  ;;  %v2978_v3 = vsel %vm8857_vm7, %v2946_v7, %v4163_v51  ;;  %v4309_v0 = vunpack.i.h.bf16 %v4307_v18  ;;  %v4364_v39 = vunpack.i.h.bf16 %v4362_v47  ;;  %vm8864_vm15 = vmmov %vm8856_vm4  ;;  %v8865_v18 = vld [vmem:[#allocation16_spill] sm:$0xff] }
 0x27b   : > { %3237 = vmatprep.mubr.f32.mxu1 %v2978_v3  ;;  %v4363_v61 = vunpack.i.l.bf16 %v4362_v47  ;;  %v2850_v31 = vsel %vm8862_vm5, %v6951_v15, %v4304_v4  ;;  %v2916_v38 = vsel %vm8864_vm15, %v8863_v9, %v4313_v40  ;;  %v2911_v3 = vsel %vm8856_vm4, %v8865_v18, %v4209_v41  ;;  %vm8866_vm0 = vmmov %vm8856_vm4  ;;  %v8870_v15 = vld [vmem:[#allocation23_spill] sm:$0xff] }
 0x27c   : > { %3238 = vmatmul.mubr.f32.gmra.mxu1 %v7287_v62  ;;  %v2979_v51 = vsel %vm8861_vm14, %v2947_v25, %v4308_v27  ;;  %v2921_v21 = vsel %vm8866_vm0, %v8742_v37, %v4223_v23  ;;  %vm8867_vm7 = vmmov %vm8860_vm1  ;;  %v4183_v37 = vunpack.i.l.bf16 %v7088_v56  ;;  %v4188_v23 = vunpack.i.l.bf16 %v7128_v10 }
 0x27d   : > { %v4317_v7 = vpop.permute.xlu1 %4316  ;;  %3242 = vmatprep.mubr.f32.mxu1 %v2979_v51  ;;  %v2943_v62 = vsel %vm8867_vm7, %v2911_v3, %v4363_v61  ;;  %vm8868_vm11 = vmmov %vm8860_vm1  ;;  %v7391_v47 = vpop.permute.xlu0 %4371  ;;  %v4138_v10 = vunpack.i.l.bf16 %v6992_v59  ;;  %v4143_v18 = vunpack.i.l.bf16 %v7014_v20  ;;  %v4198_v3 = vunpack.i.l.bf16 %v7147_v60 }
 0x27e   : > { %v4319_v19 = vunpack.i.h.bf16 %v4317_v7  ;;  %v4318_v36 = vunpack.i.l.bf16 %v4317_v7  ;;  %v2953_v27 = vsel %vm8868_vm11, %v2921_v21, %v4364_v39  ;;  %vm8869_vm1 = vmmov %vm8861_vm14  ;;  %v8878_v7 = vld [vmem:[#allocation52_spill] sm:$0xff] }
 0x27f   : > { %v2883_v25 = vsel %vm8869_vm1, %v2850_v31, %v4309_v0  ;;  %vm8871_vm14 = vmmov %vm8866_vm0  ;;  %v4184_v0 = vunpack.i.h.bf16 %v7088_v56  ;;  %v4139_v31 = vunpack.i.h.bf16 %v6992_v59  ;;  %v4133_v56 = vunpack.i.l.bf16 %v7037_v5  ;;  %v3037_v5 = vld [vmem:[%s8028_s6 + $0x110] sm:$0xff] }
 0x280   : > { %v2908_v4 = vsel %vm8871_vm14, %v8870_v15, %v4333_v2  ;;  %vm8872_vm5 = vmmov %vm8869_vm1  ;;  %3243 = vmatmul.mubr.f32.gmra.mxu1 %v2883_v25  ;;  %v8886_v15 = vld [vmem:[#allocation24_spill] sm:$0xff] }
 0x281   : > { %v7397_v40 = vsel %vm8872_vm5, %v2943_v62, %v4148_v12  ;;  %vm8873_vm15 = vmmov %vm8869_vm1  ;;  %v4327_v51 = vpop.permute.xlu1 %4326  ;;  %v4194_v62 = vunpack.i.h.bf16 %v7103_v55 }
 0x282   : > { %v7400_v41 = vsel %vm8873_vm15, %v2953_v27, %v4149_v11  ;;  %vm8874_vm4 = vmmov %vm8867_vm7  ;;  %v4328_v9 = vunpack.i.l.bf16 %v4327_v51  ;;  %v4203_v27 = vunpack.i.l.bf16 %v7171_v33  ;;  %v3036_v33 = vld [vmem:[%s8028_s6 + $0x108] sm:$0xff] }
 0x283   : > { %v2948_v39 = vsel %vm8874_vm4, %v2916_v38, %v4318_v36  ;;  %vm8875_vm0 = vmmov %vm8874_vm4 }
 0x284   : > { %v2851_v61 = vsel %vm8875_vm0, %v2818_v17, %v4319_v19  ;;  %vm8876_vm7 = vmmov %vm8869_vm1  ;;  %v4144_v17 = vunpack.i.h.bf16 %v7014_v20  ;;  %v8883_v19 = vld [vmem:[#allocation55_spill] sm:$0xff]  ;;  %v4234_v20 = vunpack.i.h.bf16 %v7189_v43 }
 0x285   : > { %v2980_v2 = vsel %vm8876_vm7, %v2948_v39, %v4168_v58  ;;  %vm8877_vm11 = vmmov %vm8869_vm1  ;;  %v7422_v58 = vpop.permute.xlu0 %4381  ;;  %v4337_v25 = vpop.permute.xlu1 %4336 }
 0x286   : > { %v2884_v12 = vsel %vm8877_vm11, %v2851_v61, %v4169_v13  ;;  %vm8879_vm1 = vmmov %vm8871_vm14  ;;  %3247 = vmatprep.mubr.f32.mxu1 %v2980_v2  ;;  %v4339_v39 = vunpack.i.h.bf16 %v4337_v25  ;;  %v4338_v61 = vunpack.i.l.bf16 %v4337_v25  ;;  %v4248_v2 = vunpack.i.l.bf16 %v7231_v24 }
 0x287   : > { %v7411_v11 = vsel %vm8879_vm1, %v8878_v7, %v4113_v14  ;;  %vm8880_vm14 = vmmov %vm8875_vm0  ;;  %v4329_v14 = vunpack.i.h.bf16 %v4327_v51  ;;  %3248 = vmatmul.mubr.f32.gmra.mxu1 %v2884_v12  ;;  %v4213_v51 = vunpack.i.l.bf16 %v7121_v50  ;;  %v8891_v7 = vld [vmem:[#allocation35_spill] sm:$0xff]  ;;  %v4359_v25 = vunpack.i.h.bf16 %v7359_v42 }
 0x288   : > { %v2940_v38 = vsel %vm8880_vm14, %v2908_v4, %v4188_v23  ;;  %vm8881_vm5 = vmmov %vm8875_vm0  ;;  %3252 = vmatprep.mubr.f32.mxu1 %v7322_v34  ;;  %v4193_v23 = vunpack.i.l.bf16 %v7103_v55  ;;  %v4214_v34 = vunpack.i.h.bf16 %v7121_v50 }
 0x289   : > { %v2842_v13 = vsel %vm8881_vm5, %v7346_v54, %v4178_v28  ;;  %vm8882_vm15 = vmmov %vm8876_vm7 }
 0x28a   : > { %v2875_v21 = vsel %vm8882_vm15, %v2842_v13, %v4328_v9  ;;  %vm8884_vm4 = vmmov %vm8879_vm1 }
 0x28b   : > { %v2820_v36 = vsel %vm8884_vm4, %v8883_v19, %v4183_v37  ;;  %3203 = vmatmul.mubr.f32.vlgmr.msra.gmra.mxu0 %v2875_v21  ;;  %vm8885_vm0 = vmmov %vm8876_vm7  ;;  %v4208_v37 = vunpack.i.l.bf16 %v7202_v6  ;;  %v4233_v6 = vunpack.i.l.bf16 %v7189_v43 }
 0x28c   : > { %v2972_v60 = vsel %vm8885_vm0, %v2940_v38, %v4133_v56  ;;  %vm8887_vm7 = vmmov %vm8879_vm1  ;;  %3941 = vmatpush3.msra.mxu0 %v6961_v63  ;;  %v4348_v38 = vunpack.i.l.bf16 %v7333_v22  ;;  %v4342_v56 = vpop.permute.xlu1 %4341 }
 0x28d   : > { %v2909_v4 = vsel %vm8887_vm7, %v8886_v15, %v4184_v0  ;;  %3207 = vmatprep.mubr.f32.mxu0 %v2972_v60  ;;  %v7447_v0 = vpop.permute.xlu0 %4396  ;;  %vm8888_vm11 = vmmov %vm8885_vm0  ;;  %3942 = vmatprep.subr.mxu0 %v3037_v5  ;;  %v4344_v21 = vunpack.i.h.bf16 %v4342_v56  ;;  %v4343_v19 = vunpack.i.l.bf16 %v4342_v56  ;;  %v4358_v15 = vunpack.i.l.bf16 %v7359_v42  ;;  %v8908_v56 = vld [vmem:[#allocation43_spill] sm:$0xff] }
 0x28e   : > { %v2885_v55 = vsel %vm8888_vm11, %v7085_v26, %v4329_v14  ;;  %vm8889_vm1 = vmmov %vm8881_vm5  ;;  %3943 = vmatpush3.msra.mxu0 %v3037_v5  ;;  %v4254_v5 = vunpack.i.h.bf16 %v7244_v8 }
 0x28f   : > { %3253 = vmatmul.mubr.f32.gmra.mxu1 %v2885_v55  ;;  %v2843_v63 = vsel %vm8889_vm1, %v7346_v54, %v4338_v61  ;;  %vm8890_vm14 = vmmov %vm8889_vm1  ;;  %3944 = vmatprep.subr.mxu0 %v3036_v33  ;;  %v3035_v54 = vld [vmem:[%s8028_s6 + $0x100] sm:$0xff]  ;;  %v4374_v55 = vunpack.i.h.bf16 %v7391_v47 }
 0x290   : > { %v2853_v12 = vsel %vm8890_vm14, %v2820_v36, %v4339_v39  ;;  %vm8892_vm5 = vmmov %vm8884_vm4  ;;  %3257 = vmatprep.mubr.f32.mxu1 %v7351_v30  ;;  %v8896_v36 = vld [vmem:[#allocation53_spill] sm:$0xff]  ;;  %3945 = vmatpush3.msra.mxu0 %v3036_v33  ;;  %v4352_v61 = vpop.permute.xlu1 %4351 }
 0x291   : > { %v2919_v9 = vsel %vm8892_vm5, %v8891_v7, %v4198_v3  ;;  %vm8893_vm15 = vmmov %vm8885_vm0  ;;  %v4219_v3 = vunpack.i.h.bf16 %v7222_v29  ;;  %3946 = vmatprep.subr.mxu0 %v3035_v54  ;;  %v4218_v7 = vunpack.i.l.bf16 %v7222_v29 }
 0x292   : > { %v2876_v26 = vsel %vm8893_vm15, %v2843_v63, %v4193_v23  ;;  %vm8894_vm4 = vmmov %vm8885_vm0  ;;  %3947 = vmatpush3.msra.mxu0 %v3035_v54  ;;  %v4353_v63 = vunpack.i.l.bf16 %v4352_v61 }
 0x293   : > { %v2886_v13 = vsel %vm8894_vm4, %v2853_v12, %v4194_v62  ;;  %vm8895_vm0 = vmmov %vm8889_vm1  ;;  %3208 = vmatmul.mubr.f32.gmra.mxu0 %v2876_v26  ;;  %v4349_v62 = vunpack.i.h.bf16 %v7333_v22  ;;  %v4373_v22 = vunpack.i.l.bf16 %v7391_v47  ;;  %v8906_v47 = vld [vmem:[#allocation15_spill] sm:$0xff] }
 0x294   : > { %v2844_v14 = vsel %vm8895_vm0, %v6914_v35, %v4203_v27  ;;  %vm8897_vm7 = vmmov %vm8892_vm5  ;;  %v7472_v35 = vpop.permute.xlu0 %4401  ;;  %v8898_v27 = vld [vmem:[#allocation58_spill] sm:$0xff]  ;;  %3258 = vmatmul.mubr.f32.gmra.mxu1 %v2886_v13  ;;  %v4367_v54 = vpop.permute.xlu1 %4366 }
 0x295   : > { %v2822_v30 = vsel %vm8897_vm7, %v8896_v36, %v4208_v37  ;;  %vm8899_vm11 = vmmov %vm8892_vm5  ;;  %v4404_v23 = vunpack.i.h.bf16 %v7472_v35  ;;  %v2877_v42 = vsel %vm8894_vm4, %v2844_v14, %v4348_v38  ;;  %v4238_v14 = vunpack.i.l.bf16 %v7235_v53 }
 0x296   : > { %v2826_v60 = vsel %vm8899_vm11, %v8898_v27, %v4248_v2  ;;  %vm8900_vm1 = vmmov %vm8895_vm0  ;;  %v4369_v50 = vunpack.i.h.bf16 %v4367_v54 }
 0x297   : > { %v2941_v39 = vsel %vm8900_vm1, %v2909_v4, %v4343_v19  ;;  %vm8901_vm14 = vmmov %vm8895_vm0  ;;  %v4354_v4 = vunpack.i.h.bf16 %v4352_v61  ;;  %v2859_v12 = vsel %vm8895_vm0, %v2826_v60, %v4404_v23  ;;  %vm8907_vm1 = vcmask 261120   ;;  %v8913_v19 = vld [vmem:[#allocation21_spill] sm:$0xff] }
 0x298   : > { %v2951_v37 = vsel %vm8901_vm14, %v2919_v9, %v4344_v21  ;;  %vm8902_vm5 = vmmov %vm8894_vm4  ;;  %v4239_v9 = vunpack.i.h.bf16 %v7235_v53  ;;  %v2910_v38 = vsel %vm8907_vm1, %v8906_v47, %v4353_v63  ;;  %v4154_v60 = vunpack.i.h.bf16 %v7077_v16 }
 0x299   : > { %v2973_v33 = vsel %vm8902_vm5, %v2941_v39, %v4138_v10  ;;  %vm8903_vm15 = vmmov %vm8894_vm4  ;;  %v7492_v10 = vpop.permute.xlu0 %4406  ;;  %v4243_v23 = vunpack.i.l.bf16 %v7216_v52  ;;  %v4377_v39 = vpop.permute.xlu1 %4376 }
 0x29a   : > { %v2983_v2 = vsel %vm8903_vm15, %v2951_v37, %v4139_v31  ;;  %3212 = vmatprep.mubr.f32.mxu0 %v2973_v33  ;;  %vm8904_vm7 = vmmov %vm8894_vm4  ;;  %v4379_v61 = vunpack.i.h.bf16 %v4377_v39  ;;  %v4378_v33 = vunpack.i.l.bf16 %v4377_v39  ;;  %v8949_v39 = vld [vmem:[#allocation73_spill] sm:$0xff] }
 0x29b   : > { %3262 = vmatprep.mubr.f32.mxu1 %v2983_v2  ;;  %3213 = vmatmul.mubr.f32.gmra.mxu0 %v2877_v42  ;;  %v2887_v59 = vsel %vm8904_vm7, %v7200_v44, %v4349_v62  ;;  %vm8905_vm11 = vmmov %vm8894_vm4  ;;  %v8922_v2 = vld [vmem:[#allocation87_spill] sm:$0xff] }
 0x29c   : > { %v7497_v31 = vsel %vm8905_vm11, %v2859_v12, %v4254_v5  ;;  %3263 = vmatmul.mubr.f32.gmra.mxu1 %v2887_v59  ;;  %vm8909_vm14 = vmmov %vm8907_vm1  ;;  %v4258_v5 = vunpack.i.l.bf16 %v7260_v32  ;;  %v4264_v12 = vunpack.i.h.bf16 %v7276_v57 }
 0x29d   : > { %v2920_v26 = vsel %vm8909_vm14, %v8908_v56, %v4354_v4  ;;  %vm8910_vm5 = vmmov %vm8895_vm0  ;;  %v7522_v62 = vpop.permute.xlu0 %4421  ;;  %v4398_v56 = vunpack.i.l.bf16 %v7447_v0 }
 0x29e   : > { %v2845_v29 = vsel %vm8910_vm5, %v7411_v11, %v4358_v15  ;;  %vm8911_vm15 = vmmov %vm8895_vm0  ;;  %v2952_v21 = vsel %vm8895_vm0, %v2920_v26, %v4214_v34  ;;  %v4368_v34 = vunpack.i.l.bf16 %v4367_v54  ;;  %v4244_v15 = vunpack.i.h.bf16 %v7216_v52 }
 0x29f   : > { %v2855_v13 = vsel %vm8911_vm15, %v2822_v30, %v4359_v25  ;;  %vm8912_vm4 = vmmov %vm8895_vm0  ;;  %v8916_v30 = vld [vmem:[#allocation36_spill] sm:$0xff]  ;;  %v4383_v52 = vunpack.i.l.bf16 %v7422_v58 }
 0x2a0   : > { %v2942_v44 = vsel %vm8912_vm4, %v2910_v38, %v4213_v51  ;;  %vm8914_vm7 = vmmov %vm8907_vm1 }
 0x2a1   : > { %v2912_v36 = vsel %vm8914_vm7, %v8913_v19, %v4373_v22  ;;  %v2974_v11 = vsel %vm8905_vm11, %v2942_v44, %v4143_v18  ;;  %vm8915_vm1 = vmmov %vm8905_vm11  ;;  %v4153_v18 = vunpack.i.l.bf16 %v7077_v16  ;;  %v8921_v16 = vld [vmem:[#allocation62_spill] sm:$0xff]  ;;  %v4384_v22 = vunpack.i.h.bf16 %v7422_v58  ;;  %v8938_v19 = vld [vmem:[#allocation47_spill] sm:$0xff] }
 0x2a2   : > { %v2984_v53 = vsel %vm8915_vm1, %v2952_v21, %v4144_v17  ;;  %vm8917_vm14 = vmmov %vm8914_vm7  ;;  %3217 = vmatprep.mubr.f32.mxu0 %v2974_v11  ;;  %v2824_v37 = vsel %vm8914_vm7, %v8921_v16, %v4233_v6  ;;  %v8940_v11 = vld [vmem:[#allocation50_spill] sm:$0xff] }
 0x2a3   : > { %v2922_v51 = vsel %vm8917_vm14, %v8916_v30, %v4374_v55  ;;  %3267 = vmatprep.mubr.f32.mxu1 %v2984_v53  ;;  %vm8918_vm5 = vmmov %vm8915_vm1  ;;  %v7543_v55 = vpop.permute.xlu0 %4426  ;;  %v2857_v58 = vsel %vm8895_vm0, %v2824_v37, %v4379_v61 }
 0x2a4   : > { %v2878_v25 = vsel %vm8918_vm5, %v2845_v29, %v4218_v7  ;;  %vm8919_vm15 = vmmov %vm8915_vm1  ;;  %v4429_v6 = vunpack.i.h.bf16 %v7543_v55  ;;  %v4387_v7 = vpop.permute.xlu1 %4386 }
 0x2a5   : > { %v2888_v27 = vsel %vm8919_vm15, %v2855_v13, %v4219_v3  ;;  %3218 = vmatmul.mubr.f32.gmra.mxu0 %v2878_v25  ;;  %vm8920_vm4 = vmmov %vm8895_vm0  ;;  %v2954_v3 = vsel %vm8895_vm0, %v2922_v51, %v4239_v9  ;;  %v4389_v59 = vunpack.i.h.bf16 %v4387_v7  ;;  %v4388_v47 = vunpack.i.l.bf16 %v4387_v7  ;;  %v8967_v7 = vld [vmem:[#allocation18_spill] sm:$0xff] }
 0x2a6   : > { %3268 = vmatmul.mubr.f32.gmra.mxu1 %v2888_v27  ;;  %v2944_v17 = vsel %vm8920_vm4, %v2912_v36, %v4238_v14  ;;  %3222 = vmatprep.mubr.f32.mxu0 %v7397_v40  ;;  %vm8923_vm11 = vmmov %vm8914_vm7  ;;  %v2879_v40 = vsel %vm8915_vm1, %v7183_v1, %v4368_v34  ;;  %v4403_v1 = vunpack.i.l.bf16 %v7472_v35  ;;  %v8933_v35 = vld [vmem:[#allocation76_spill] sm:$0xff]  ;;  %v4253_v51 = vunpack.i.l.bf16 %v7244_v8  ;;  %v8943_v34 = vld [vmem:[#allocation75_spill] sm:$0xff] }
 0x2a7   : > { %3272 = vmatprep.mubr.f32.mxu1 %v7400_v41  ;;  %v2828_v42 = vsel %vm8923_vm11, %v8922_v2, %v4258_v5  ;;  %vm8924_vm14 = vmmov %vm8915_vm1  ;;  %v8934_v13 = vsel %vm6407_vm9, %v8933_v35, 0.0  ;;  %v4268_v25 = vunpack.i.l.bf16 %v8943_v34  ;;  %v4408_v27 = vunpack.i.l.bf16 %v7492_v10  ;;  %v8954_v2 = vld [vmem:[#allocation100_spill] sm:$0xff] }
 0x2a8   : > { %v2889_v43 = vsel %vm8924_vm14, %v7186_v45, %v4369_v50  ;;  %vm8925_vm5 = vmmov %vm8915_vm1  ;;  %vm8931_vm14 = vcmask 261120   ;;  %v7578_v5 = vpop.permute.xlu1 %4391  ;;  %v4249_v50 = vunpack.i.h.bf16 %v7231_v24  ;;  %v4428_v24 = vunpack.i.l.bf16 %v7543_v55  ;;  %v8957_v55 = vld [vmem:[#allocation92_spill] sm:$0xff] }
 0x2a9   : > { %v2976_v41 = vsel %vm8925_vm5, %v2944_v17, %v4153_v18  ;;  %3223 = vmatmul.mubr.f32.gmra.mxu0 %v2879_v40  ;;  %vm8926_vm15 = vmmov %vm8915_vm1  ;;  %v2923_v26 = vsel %vm8931_vm14, %v8748_v48, %v4234_v20  ;;  %v4399_v48 = vunpack.i.h.bf16 %v7447_v0  ;;  %v4409_v18 = vunpack.i.h.bf16 %v7492_v10  ;;  %v8946_v17 = vld [vmem:[#allocation32_spill] sm:$0xff] }
 0x2aa   : > { %3273 = vmatmul.mubr.f32.gmra.mxu1 %v2889_v43  ;;  %v2986_v4 = vsel %vm8926_vm15, %v2954_v3, %v4154_v60  ;;  %vm8927_vm4 = vmmov %vm8895_vm0  ;;  %3227 = vmatprep.mubr.f32.mxu0 %v2976_v41  ;;  %v4423_v10 = vunpack.i.l.bf16 %v7522_v62  ;;  %v8959_v41 = vld [vmem:[#allocation34_spill] sm:$0xff] }
 0x2ab   : > { %v2847_v63 = vsel %vm8927_vm4, %v7343_v46, %v4378_v33  ;;  %3277 = vmatprep.mubr.f32.mxu1 %v2986_v4  ;;  %vm8928_vm7 = vmmov %vm8915_vm1  ;;  %v7561_v46 = vpop.permute.xlu0 %4431  ;;  %v4269_v33 = vunpack.i.h.bf16 %v8943_v34 }
 0x2ac   : > { %v2880_v45 = vsel %vm8928_vm7, %v2847_v63, %v4243_v23  ;;  %vm8929_vm11 = vmmov %vm8915_vm1  ;;  %v4412_v23 = vpop.permute.xlu1 %4411 }
 0x2ad   : > { %v2890_v9 = vsel %vm8929_vm11, %v2857_v58, %v4244_v15  ;;  %vm8930_vm1 = vmmov %vm8895_vm0  ;;  %3228 = vmatmul.mubr.f32.gmra.mxu0 %v2880_v45  ;;  %v8947_v15 = vsel %vm8738_vm6, %v8946_v17, 0.0  ;;  %v4414_v3 = vunpack.i.h.bf16 %v4412_v23  ;;  %v4413_v16 = vunpack.i.l.bf16 %v4412_v23  ;;  %v8986_v17 = vld [vmem:[#allocation111_spill] sm:$0xff] }
 0x2ae   : > { %v2861_v38 = vsel %vm8930_vm1, %v2828_v42, %v4429_v6  ;;  %vm8935_vm5 = vmmov %vm8931_vm14  ;;  %3278 = vmatmul.mubr.f32.gmra.mxu1 %v2890_v9  ;;  %v8955_v42 = vsel %vm8750_vm12, %v8954_v2, 0.0  ;;  %v8961_v6 = vld [vmem:[#allocation33_spill] sm:$0xff]  ;;  %v4274_v45 = vunpack.i.h.bf16 %v8967_v7  ;;  %v4424_v9 = vunpack.i.h.bf16 %v7522_v62 }
 0x2af   : > { %v2825_v14 = vsel %vm8935_vm5, %v8934_v13, %v4383_v52  ;;  %vm8936_vm15 = vmmov %vm8928_vm7  ;;  %v7588_v60 = vpop.permute.xlu0 %4446  ;;  %v4259_v62 = vunpack.i.h.bf16 %v7260_v32 }
 0x2b0   : > { %v7571_v54 = vsel %vm8936_vm15, %v2861_v38, %v4264_v12  ;;  %vm8937_vm4 = vmmov %vm8895_vm0  ;;  %v2858_v21 = vsel %vm8895_vm0, %v2825_v14, %v4389_v59  ;;  %v8965_v12 = vld [vmem:[#allocation71_spill] sm:$0xff]  ;;  %v7623_v59 = vpop.permute.xlu1 %4416  ;;  %v4433_v14 = vunpack.i.l.bf16 %v7561_v46 }
 0x2b1   : > { %v2955_v44 = vsel %vm8937_vm4, %v2923_v26, %v4388_v47  ;;  %vm8939_vm7 = vmmov %vm8935_vm5  ;;  %v8971_v26 = vld [vmem:[#allocation101_spill] sm:$0xff] }
 0x2b2   : > { %v2924_v36 = vsel %vm8939_vm7, %v8938_v19, %v4384_v22  ;;  %vm8941_vm9 = vmmov %vm8935_vm5  ;;  %v2987_v53 = vsel %vm8929_vm11, %v2955_v44, %v4398_v56  ;;  %v8951_v22 = vld [vmem:[#allocation70_spill] sm:$0xff]  ;;  %v4263_v56 = vunpack.i.l.bf16 %v7276_v57  ;;  %v2091_v35 = vsel %vm8728_vm2, %v8971_v26, 0.0 }
 0x2b3   : > { %3948 = vmatprep.mubr.msk.f32.mxu0 %vm8941_vm9, %v8940_v11  ;;  %vm8942_vm1 = vmmov %vm8895_vm0  ;;  %3282 = vmatprep.mubr.f32.mxu1 %v2987_v53  ;;  %v4452_v37 = vpop.permute.xlu0 %4451  ;;  %vm8960_vm9 = vnez %v8959_v41  ;;  %v8978_v53 = vld [vmem:[#allocation46_spill] sm:$0xff] }
 0x2b4   : > { %v2956_v30 = vsel %vm8942_vm1, %v2924_v36, %v4403_v1  ;;  %vm8944_vm14 = vmmov %vm8929_vm11  ;;  %3949 = vmatmul.mubr.msk.f32.vlgmr.msra.gmra.mxu0 %vm8935_vm5, %v8947_v15  ;;  %v4454_v43 = vunpack.i.h.bf16 %v4452_v37  ;;  %v8962_v4 = vsel %vm8960_vm9, %v8961_v6, 0.0  ;;  %v4434_v36 = vunpack.i.h.bf16 %v7561_v46  ;;  %v4437_v11 = vpop.permute.xlu1 %4436 }
 0x2b5   : > { %v2891_v0 = vsel %vm8944_vm14, %v2858_v21, %v4399_v48  ;;  %vm8948_vm15 = vmmov %vm8929_vm11  ;;  %v4453_v48 = vunpack.i.l.bf16 %v4452_v37  ;;  %v4439_v32 = vunpack.i.h.bf16 %v4437_v11  ;;  %v8987_v15 = vsel %vm8763_vm10, %v8986_v17, 0.0  ;;  %v8994_v37 = vld [vmem:[#allocation45_spill] sm:$0xff] }
 0x2b6   : > { %3283 = vmatmul.mubr.f32.gmra.mxu1 %v2891_v0  ;;  %v2988_v8 = vsel %vm8948_vm15, %v2956_v30, %v4253_v51  ;;  %vm8950_vm4 = vmmov %vm8935_vm5  ;;  %v4438_v30 = vunpack.i.l.bf16 %v4437_v11  ;;  %v4448_v51 = vunpack.i.l.bf16 %v7588_v60  ;;  %v8983_v0 = vld [vmem:[#allocation79_spill] sm:$0xff] }
 0x2b7   : > { %3287 = vmatprep.mubr.f32.mxu1 %v2988_v8  ;;  %3951 = vmatprep.mubr.msk.f32.mxu0 %vm8950_vm4, %v8949_v39  ;;  %vm8952_vm0 = vmmov %vm8950_vm4  ;;  %v4457_v44 = vpop.permute.xlu0 %4456  ;;  %v8992_v39 = vld [vmem:[#allocation81_spill] sm:$0xff]  ;;  %v9021_v11 = vld [vmem:[#allocation63_spill] sm:$0xff] }
 0x2b8   : > { %v2925_v61 = vsel %vm8952_vm0, %v8951_v22, %v4249_v50  ;;  %vm8956_vm6 = vmmov %vm8952_vm0  ;;  %v4458_v2 = vunpack.i.l.bf16 %v4457_v44 }
 0x2b9   : > { %v2827_v52 = vsel %vm8956_vm6, %v8955_v42, %v4408_v27  ;;  %vm8958_vm7 = vmmov %vm8952_vm0  ;;  %v2957_v63 = vsel %vm8942_vm1, %v2925_v61, %v4413_v16  ;;  %v8981_v27 = vld [vmem:[#allocation74_spill] sm:$0xff]  ;;  %v4449_v16 = vunpack.i.h.bf16 %v7588_v60  ;;  %v4273_v61 = vunpack.i.l.bf16 %v8967_v7  ;;  %v8999_v60 = vld [vmem:[#allocation83_spill] sm:$0xff] }
 0x2ba   : > { %v2830_v40 = vsel %vm8958_vm7, %v8957_v55, %v4268_v25  ;;  %3288 = vmatmul.mubr.f32.gmra.mxu1 %v7497_v31  ;;  %vm8963_vm11 = vmmov %vm8952_vm0  ;;  %v8968_v31 = vld [vmem:[#allocation51_spill] sm:$0xff]  ;;  %v2989_v47 = vsel %vm8948_vm15, %v2957_v63, %v4423_v10  ;;  %v8980_v25 = vld [vmem:[#allocation8_spill] sm:$0xff]  ;;  %v7661_v10 = vpop.permute.xlu1 %4441  ;;  %v4459_v55 = vunpack.i.h.bf16 %v4457_v44 }
 0x2bb   : > { %3952 = vmatmul.mubr.msk.f32.gmra.mxu0 %vm8963_vm11, %v8962_v4  ;;  %vm8964_vm14 = vmmov %vm8942_vm1  ;;  %3292 = vmatprep.mubr.f32.mxu1 %v2989_v47  ;;  %v4472_v50 = vpop.permute.xlu0 %4471  ;;  %v9005_v63 = vld [vmem:[#allocation65_spill] sm:$0xff]  ;;  %v4419_v47 = vunpack.i.h.bf16 %v7623_v59 }
 0x2bc   : > { %v2860_v58 = vsel %vm8964_vm14, %v2827_v52, %v4414_v3  ;;  %vm8966_vm12 = vmmov %vm8952_vm0  ;;  %v4473_v7 = vunpack.i.l.bf16 %v4472_v50 }
 0x2bd   : > { %v2926_v1 = vsel %vm8966_vm12, %v8965_v12, %v4409_v18  ;;  %vm8969_vm5 = vmmov %vm8952_vm0  ;;  %v9007_v12 = vld [vmem:[#allocation25_spill] sm:$0xff] }
 0x2be   : > { %3954 = vmatprep.mubr.msk.f32.mxu0 %vm8969_vm5, %v8968_v31  ;;  %vm8970_vm4 = vmmov %vm8942_vm1  ;;  %v4462_v4 = vpop.permute.xlu1 %4461 }
 0x2bf   : > { %v2958_v38 = vsel %vm8970_vm4, %v2926_v1, %v4428_v24  ;;  %vm8973_vm0 = vmmov %vm8942_vm1  ;;  %vm8982_vm1 = vnez %v8981_v27  ;;  %v4477_v42 = vpop.permute.xlu0 %4476  ;;  %v4464_v34 = vunpack.i.h.bf16 %v4462_v4  ;;  %v4278_v1 = vunpack.i.l.bf16 %v9007_v12 }
 0x2c0   : > { %v2863_v13 = vsel %vm8973_vm0, %v2830_v40, %v4454_v43  ;;  %vm8974_vm6 = vmmov %vm8948_vm15  ;;  %v2093_v46 = vsel %vm8982_vm1, %v8980_v25, 0.0  ;;  %v9001_v40 = vld [vmem:[#allocation90_spill] sm:$0xff]  ;;  %v4478_v6 = vunpack.i.l.bf16 %v4477_v42  ;;  %v4479_v29 = vunpack.i.h.bf16 %v4477_v42 }
 0x2c1   : > { %v2893_v21 = vsel %vm8974_vm6, %v2860_v58, %v4424_v9  ;;  %vm8975_vm7 = vmmov %vm8974_vm6  ;;  %v4463_v58 = vunpack.i.l.bf16 %v4462_v4  ;;  %v9008_v9 = vld [vmem:[#allocation5_spill] sm:$0xff] }
 0x2c2   : > { %v2896_v19 = vsel %vm8975_vm7, %v2863_v13, %v4274_v45  ;;  %3293 = vmatmul.mubr.f32.gmra.mxu1 %v2893_v21  ;;  %vm8976_vm9 = vmmov %vm8969_vm5  ;;  %v9015_v13 = vld [vmem:[#allocation77_spill] sm:$0xff]  ;;  %v9019_v21 = vld [vmem:[#allocation6_spill] sm:$0xff] }
 0x2c3   : > { %3955 = vmatmul.mubr.msk.f32.gmra.mxu0 %vm8976_vm9, %v2091_v35  ;;  %vm8977_vm11 = vmmov %vm8974_vm6  ;;  %v4482_v45 = vpop.permute.xlu0 %4481 }
 0x2c4   : > { %v2990_v57 = vsel %vm8977_vm11, %v2958_v38, %v4263_v56  ;;  %vm8979_vm2 = vmmov %vm8969_vm5  ;;  %vm9000_vm11 = vnez %v8999_v60  ;;  %v9011_v38 = vld [vmem:[#allocation113_spill] sm:$0xff] }
 0x2c5   : > { %3297 = vmatprep.mubr.f32.mxu1 %v2990_v57  ;;  %3957 = vmatprep.mubr.msk.f32.mxu0 %vm8979_vm2, %v8978_v53  ;;  %vm8984_vm14 = vmmov %vm8979_vm2  ;;  %v9002_v43 = vsel %vm9000_vm11, %v9001_v40, 0.0  ;;  %v9012_v56 = vsel %vm8769_vm8, %v9011_v38, 0.0  ;;  %v4474_v57 = vunpack.i.h.bf16 %v4472_v50 }
 0x2c6   : > { %v2927_v18 = vsel %vm8984_vm14, %v8983_v0, %v4259_v62  ;;  %vm8988_vm12 = vmmov %vm8979_vm2  ;;  %3298 = vmatmul.mubr.f32.gmra.mxu1 %v7571_v54  ;;  %v9016_v62 = vsel %vm6184_vm3, %v9015_v13, 0.0  ;;  %v9028_v0 = vld [vmem:[#allocation67_spill] sm:$0xff]  ;;  %v9057_v13 = vld [vmem:[#allocation48_spill] sm:$0xff] }
 0x2c7   : > { %v2829_v8 = vsel %vm8988_vm12, %v8987_v15, %v4433_v14  ;;  %vm8989_vm5 = vmmov %vm8979_vm2  ;;  %v4497_v25 = vpop.permute.xlu0 %4496  ;;  %vm9029_vm11 = vnez %v9028_v0  ;;  %v9074_v0 = vld [vmem:[#allocation54_spill] sm:$0xff] }
 0x2c8   : > { %3958 = vmatmul.mubr.msk.f32.gmra.mxu0 %vm8989_vm5, %v2093_v46  ;;  %vm8990_vm15 = vmmov %vm8973_vm0  ;;  %v9026_v46 = vld [vmem:[#allocation94_spill] sm:$0xff] }
 0x2c9   : > { %v2959_v24 = vsel %vm8990_vm15, %v2927_v18, %v4438_v30  ;;  %vm8991_vm4 = vmmov %vm8973_vm0  ;;  %v4393_v30 = vunpack.i.l.bf16 %v7578_v5  ;;  %v9030_v18 = vld [vmem:[#allocation103_spill] sm:$0xff] }
 0x2ca   : > { %v2862_v23 = vsel %vm8991_vm4, %v2829_v8, %v4439_v32  ;;  %vm8993_vm0 = vmmov %vm8979_vm2  ;;  %v4279_v32 = vunpack.i.h.bf16 %v9007_v12  ;;  %v9031_v20 = vsel %vm9029_vm11, %v9030_v18, 0.0  ;;  %v4394_v8 = vunpack.i.h.bf16 %v7578_v5  ;;  %v9039_v5 = vld [vmem:[#allocation115_spill] sm:$0xff]  ;;  %v9049_v12 = vld [vmem:[#allocation82_spill] sm:$0xff] }
 0x2cb   : > { %v2928_v3 = vsel %vm8993_vm0, %v8992_v39, %v4434_v36  ;;  %vm8995_vm6 = vmmov %vm8993_vm0  ;;  %v9033_v39 = vld [vmem:[#allocation72_spill] sm:$0xff] }
 0x2cc   : > { %3960 = vmatprep.mubr.msk.f32.mxu0 %vm8995_vm6, %v8994_v37  ;;  %vm8996_vm10 = vmmov %vm8975_vm7  ;;  %v9035_v37 = vld [vmem:[#allocation29_spill] sm:$0xff]  ;;  %v9076_v18 = vld [vmem:[#allocation112_spill] sm:$0xff] }
 0x2cd   : > { %v2991_v22 = vsel %vm8996_vm10, %v2959_v24, %v4448_v51  ;;  %vm8997_vm7 = vmmov %vm8991_vm4  ;;  %v4483_v51 = vunpack.i.l.bf16 %v4482_v45  ;;  %v4484_v24 = vunpack.i.h.bf16 %v4482_v45 }
 0x2ce   : > { %v2960_v54 = vsel %vm8997_vm7, %v2928_v3, %v4453_v48  ;;  %3302 = vmatprep.mubr.f32.mxu1 %v2991_v22  ;;  %vm8998_vm9 = vmmov %vm8996_vm10  ;;  %v7695_v48 = vpop.permute.xlu1 %4466 }
 0x2cf   : > { %v2895_v52 = vsel %vm8998_vm9, %v2862_v23, %v4449_v16  ;;  %vm9003_vm2 = vmmov %vm8993_vm0 }
 0x2d0   : > { %3303 = vmatmul.mubr.f32.gmra.mxu1 %v2895_v52  ;;  %3961 = vmatmul.mubr.msk.f32.gmra.mxu0 %vm9003_vm2, %v9002_v43  ;;  %vm9004_vm1 = vmmov %vm8998_vm9  ;;  %v9040_v52 = vsel %vm8787_vm13, %v9039_v5, 0.0  ;;  %v9042_v43 = vld [vmem:[#allocation69_spill] sm:$0xff] }
 0x2d1   : > { %v2992_v41 = vsel %vm9004_vm1, %v2960_v54, %v4273_v61  ;;  %vm9006_vm14 = vmmov %vm8993_vm0  ;;  %v4418_v54 = vunpack.i.l.bf16 %v7623_v59  ;;  %v4498_v61 = vunpack.i.l.bf16 %v4497_v25  ;;  %v4444_v59 = vunpack.i.h.bf16 %v7661_v10 }
 0x2d2   : > { %3307 = vmatprep.mubr.f32.mxu1 %v2992_v41  ;;  %3963 = vmatprep.mubr.msk.f32.mxu0 %vm9006_vm14, %v9005_v63  ;;  %vm9009_vm12 = vmmov %vm8993_vm0  ;;  %v4487_v23 = vpop.permute.xlu1 %4486  ;;  %v9044_v41 = vld [vmem:[#allocation104_spill] sm:$0xff] }
 0x2d3   : > { %v2929_v31 = vsel %vm9009_vm12, %v9008_v9, %v4269_v33  ;;  %vm9013_vm5 = vmmov %vm8993_vm0  ;;  %v4489_v3 = vunpack.i.h.bf16 %v4487_v23  ;;  %v4488_v16 = vunpack.i.l.bf16 %v4487_v23  ;;  %v4502_v33 = vpop.permute.xlu0 %4501  ;;  %v4443_v9 = vunpack.i.l.bf16 %v7661_v10 }
 0x2d4   : > { %v2831_v26 = vsel %vm9013_vm5, %v9012_v56, %v4458_v2  ;;  %3308 = vmatmul.mubr.f32.gmra.mxu1 %v2896_v19  ;;  %vm9017_vm15 = vmmov %vm8993_vm0  ;;  %v2961_v14 = vsel %vm8991_vm4, %v2929_v31, %v4463_v58  ;;  %v4504_v60 = vunpack.i.h.bf16 %v4502_v33  ;;  %v4503_v40 = vunpack.i.l.bf16 %v4502_v33  ;;  %v9085_v33 = vld [vmem:[#allocation57_spill] sm:$0xff] }
 0x2d5   : > { %3964 = vmatmul.mubr.msk.f32.gmra.mxu0 %vm9017_vm15, %v9016_v62  ;;  %vm9018_vm0 = vmmov %vm8991_vm4  ;;  %v9059_v62 = vld [vmem:[#allocation110_spill] sm:$0xff] }
 0x2d6   : > { %v2864_v44 = vsel %vm9018_vm0, %v2831_v26, %v4464_v34  ;;  %vm9020_vm6 = vmmov %vm9003_vm2  ;;  %v4499_v34 = vunpack.i.h.bf16 %v4497_v25  ;;  %v4492_v58 = vpop.permute.xlu1 %4491  ;;  %v9056_v26 = vld [vmem:[#allocation26_spill] sm:$0xff] }
 0x2d7   : > { %v2930_v36 = vsel %vm9020_vm6, %v9019_v21, %v4459_v55  ;;  %vm9022_vm8 = vmmov %vm9003_vm2  ;;  %v4507_v38 = vpop.permute.xlu0 %4506  ;;  %v9069_v25 = vld [vmem:[#allocation102_spill] sm:$0xff]  ;;  %v4493_v5 = vunpack.i.l.bf16 %v4492_v58 }
 0x2d8   : > { %3966 = vmatprep.mubr.msk.f32.mxu0 %vm9022_vm8, %v9021_v11  ;;  %vm9023_vm10 = vmmov %vm9004_vm1  ;;  %v4508_v35 = vunpack.i.l.bf16 %v4507_v38 }
 0x2d9   : > { %v2993_v19 = vsel %vm9023_vm10, %v2961_v14, %v4473_v7  ;;  %vm9024_vm7 = vmmov %vm9018_vm0  ;;  %3967 = vmatmul.mubr.msk.f32.gmra.mxu0 %vm9003_vm2, %v9031_v20  ;;  %v9052_v7 = vld [vmem:[#allocation7_spill] sm:$0xff] }
 0x2da   : > { %v2962_v53 = vsel %vm9024_vm7, %v2930_v36, %v4478_v6  ;;  %3312 = vmatprep.mubr.f32.mxu1 %v2993_v19  ;;  %vm9025_vm3 = vmmov %vm9004_vm1  ;;  %v4512_v36 = vpop.permute.xlu1 %4511 }
 0x2db   : > { %v2897_v27 = vsel %vm9025_vm3, %v2864_v44, %v4474_v57  ;;  %vm9027_vm9 = vmmov %vm9003_vm2  ;;  %v2994_v17 = vsel %vm9004_vm1, %v2962_v53, %v4393_v30  ;;  %v9064_v57 = vld [vmem:[#allocation89_spill] sm:$0xff]  ;;  %v4514_v11 = vunpack.i.h.bf16 %v4512_v36  ;;  %v4513_v19 = vunpack.i.l.bf16 %v4512_v36  ;;  %v4522_v53 = vpop.permute.xlu0 %4521 }
 0x2dc   : > { %v2832_v50 = vsel %vm9027_vm9, %v9026_v46, %v4278_v1  ;;  %3313 = vmatmul.mubr.f32.gmra.mxu1 %v2897_v27  ;;  %vm9032_vm14 = vmmov %vm9018_vm0  ;;  %vm9043_vm0 = vnez %v9042_v43  ;;  %v9067_v30 = vld [vmem:[#allocation9_spill] sm:$0xff]  ;;  %v4523_v10 = vunpack.i.l.bf16 %v4522_v53  ;;  %v4524_v23 = vunpack.i.h.bf16 %v4522_v53  ;;  %v9094_v43 = vld [vmem:[#allocation27_spill] sm:$0xff] }
 0x2dd   : > { %v2865_v15 = vsel %vm9032_vm14, %v2832_v50, %v4479_v29  ;;  %3317 = vmatprep.mubr.f32.mxu1 %v2994_v17  ;;  %vm9034_vm12 = vmmov %vm9003_vm2  ;;  %v9045_v6 = vsel %vm9043_vm0, %v9044_v41, 0.0  ;;  %v2834_v29 = vsel %vm9003_vm2, %v9056_v26, %v4418_v54  ;;  %v9071_v27 = vld [vmem:[#allocation117_spill] sm:$0xff]  ;;  %v9107_v26 = vld [vmem:[#allocation11_spill] sm:$0xff] }
 0x2de   : > { %3969 = vmatprep.mubr.msk.f32.mxu0 %vm9034_vm12, %v9033_v39  ;;  %vm9036_vm5 = vmmov %vm9003_vm2  ;;  %v7769_v39 = vpop.permute.xlu1 %4516 }
 0x2df   : > { %v2931_v22 = vsel %vm9036_vm5, %v9035_v37, %v4279_v32  ;;  %vm9037_vm15 = vmmov %vm9004_vm1  ;;  %v4527_v37 = vpop.permute.xlu0 %4526 }
 0x2e0   : > { %v2898_v2 = vsel %vm9037_vm15, %v2865_v15, %v4394_v8  ;;  %vm9041_vm4 = vmmov %vm9003_vm2  ;;  %v4468_v8 = vunpack.i.l.bf16 %v7695_v48  ;;  %v4529_v54 = vunpack.i.h.bf16 %v4527_v37 }
 0x2e1   : > { %v2833_v55 = vsel %vm9041_vm4, %v9040_v52, %v4483_v51  ;;  %3318 = vmatmul.mubr.f32.gmra.mxu1 %v2898_v2  ;;  %vm9046_vm6 = vmmov %vm9003_vm2  ;;  %v9087_v2 = vld [vmem:[#allocation114_spill] sm:$0xff] }
 0x2e2   : > { %3970 = vmatmul.mubr.msk.f32.gmra.mxu0 %vm9046_vm6, %v9045_v6  ;;  %vm9047_vm8 = vmmov %vm9024_vm7  ;;  %vm9070_vm6 = vnez %v9069_v25  ;;  %v4537_v52 = vpop.permute.xlu1 %4536  ;;  %v4469_v6 = vunpack.i.h.bf16 %v7695_v48  ;;  %v9105_v48 = vld [vmem:[#allocation95_spill] sm:$0xff] }
 0x2e3   : > { %v2963_v4 = vsel %vm9047_vm8, %v2931_v22, %v4488_v16  ;;  %vm9048_vm10 = vmmov %vm9024_vm7  ;;  %v9072_v46 = vsel %vm9070_vm6, %v9071_v27, 0.0 }
 0x2e4   : > { %v2866_v63 = vsel %vm9048_vm10, %v2833_v55, %v4489_v3  ;;  %vm9050_vm7 = vmmov %vm9003_vm2  ;;  %vm9075_vm10 = vnez %v9074_v0  ;;  %v9081_v3 = vld [vmem:[#allocation93_spill] sm:$0xff]  ;;  %v9090_v55 = vld [vmem:[#allocation10_spill] sm:$0xff] }
 0x2e5   : > { %3972 = vmatprep.mubr.msk.f32.mxu0 %vm9050_vm7, %v9049_v12  ;;  %vm9051_vm13 = vmmov %vm9004_vm1  ;;  %v9077_v20 = vsel %vm9075_vm10, %v9076_v18, 0.0  ;;  %v4532_v12 = vpop.permute.xlu0 %4531 }
 0x2e6   : > { %v2995_v1 = vsel %vm9051_vm13, %v2963_v4, %v4498_v61  ;;  %vm9053_vm3 = vmmov %vm9003_vm2  ;;  %v4528_v61 = vunpack.i.l.bf16 %v4527_v37  ;;  %v4494_v4 = vunpack.i.h.bf16 %v4492_v58  ;;  %v4542_v58 = vpop.permute.xlu1 %4541  ;;  %v9134_v37 = vld [vmem:[#allocation17_spill] sm:$0xff] }
 0x2e7   : > { %v2932_v45 = vsel %vm9053_vm3, %v9052_v7, %v4484_v24  ;;  %3322 = vmatprep.mubr.f32.mxu1 %v2995_v1  ;;  %vm9054_vm9 = vmmov %vm9047_vm8  ;;  %v4509_v24 = vunpack.i.h.bf16 %v4507_v38  ;;  %v4538_v1 = vunpack.i.l.bf16 %v4537_v52  ;;  %v9102_v38 = vld [vmem:[#allocation116_spill] sm:$0xff]  ;;  %v4544_v18 = vunpack.i.h.bf16 %v4542_v58 }
 0x2e8   : > { %v2964_v31 = vsel %vm9054_vm9, %v2932_v45, %v4503_v40  ;;  %vm9055_vm11 = vmmov %vm9004_vm1  ;;  %vm9058_vm1 = vnez %v9057_v13  ;;  %v9092_v40 = vld [vmem:[#allocation96_spill] sm:$0xff]  ;;  %v4533_v45 = vunpack.i.l.bf16 %v4532_v12 }
 0x2e9   : > { %v2899_v56 = vsel %vm9055_vm11, %v2866_v63, %v4499_v34  ;;  %v9060_v14 = vsel %vm9058_vm1, %v9059_v62, 0.0  ;;  %vm9061_vm14 = vmmov %vm9003_vm2  ;;  %vm9086_vm1 = vnez %v9085_v33  ;;  %v9110_v62 = vld [vmem:[#allocation107_spill] sm:$0xff] }
 0x2ea   : > { %3323 = vmatmul.mubr.f32.gmra.mxu1 %v2899_v56  ;;  %3973 = vmatmul.mubr.msk.f32.gmra.mxu0 %vm9061_vm14, %v9060_v14  ;;  %vm9062_vm12 = vmmov %vm9055_vm11  ;;  %v9088_v42 = vsel %vm9086_vm1, %v9087_v2, 0.0  ;;  %v9112_v14 = vld [vmem:[#allocation118_spill] sm:$0xff]  ;;  %v4519_v2 = vunpack.i.h.bf16 %v7769_v39 }
 0x2eb   : > { %v2996_v44 = vsel %vm9062_vm12, %v2964_v31, %v4443_v9  ;;  %vm9063_vm5 = vmmov %vm9047_vm8  ;;  %v4539_v9 = vunpack.i.h.bf16 %v4537_v52 }
 0x2ec   : > { %v2867_v21 = vsel %vm9063_vm5, %v2834_v29, %v4504_v60  ;;  %3327 = vmatprep.mubr.f32.mxu1 %v2996_v44  ;;  %vm9065_vm15 = vmmov %vm9003_vm2 }
 0x2ed   : > { %3975 = vmatprep.mubr.msk.f32.mxu0 %vm9065_vm15, %v9064_v57  ;;  %vm9066_vm4 = vmmov %vm9055_vm11 }
 0x2ee   : > { %v2900_v32 = vsel %vm9066_vm4, %v2867_v21, %v4444_v59  ;;  %vm9068_vm0 = vmmov %vm9003_vm2 }
 0x2ef   : > { %v2933_v51 = vsel %vm9068_vm0, %v9067_v30, %v4419_v47  ;;  %vm9073_vm8 = vmmov %vm9068_vm0  ;;  %3328 = vmatmul.mubr.f32.gmra.mxu1 %v2900_v32  ;;  %v9100_v47 = vld [vmem:[#allocation60_spill] sm:$0xff]  ;;  %v4534_v32 = vunpack.i.h.bf16 %v4532_v12  ;;  %v4518_v30 = vunpack.i.l.bf16 %v7769_v39 }
 0x2f0   : > { %v2835_v50 = vsel %vm9073_vm8, %v9072_v46, %v4508_v35  ;;  %vm9078_vm7 = vmmov %vm9068_vm0  ;;  %vm9101_vm10 = vnez %v9100_v47  ;;  %v4547_v35 = vpop.permute.xlu0 %4546  ;;  %v4543_v46 = vunpack.i.l.bf16 %v4542_v58  ;;  %v9148_v39 = vld [vmem:[#allocation120_spill] sm:$0xff]  ;;  %v9153_v47 = vld [vmem:[#allocation13_spill] sm:$0xff] }
 0x2f1   : > { %3976 = vmatmul.mubr.msk.f32.gmra.mxu0 %vm9078_vm7, %v9077_v20  ;;  %vm9079_vm13 = vmmov %vm9063_vm5  ;;  %v9103_v56 = vsel %vm9101_vm10, %v9102_v38, 0.0  ;;  %v4549_v59 = vunpack.i.h.bf16 %v4547_v35  ;;  %v4548_v36 = vunpack.i.l.bf16 %v4547_v35  ;;  %v4562_v20 = vpop.permute.xlu1 %4561 }
 0x2f2   : > { %v2965_v17 = vsel %vm9079_vm13, %v2933_v51, %v4513_v19  ;;  %vm9080_vm3 = vmmov %vm9063_vm5  ;;  %v9118_v19 = vld [vmem:[#allocation119_spill] sm:$0xff]  ;;  %v9121_v51 = vld [vmem:[#allocation28_spill] sm:$0xff] }
 0x2f3   : > { %v2868_v15 = vsel %vm9080_vm3, %v2835_v50, %v4514_v11  ;;  %vm9082_vm9 = vmmov %vm9068_vm0  ;;  %v9116_v11 = vld [vmem:[#allocation105_spill] sm:$0xff] }
 0x2f4   : > { %3978 = vmatprep.mubr.msk.f32.mxu0 %vm9082_vm9, %v9081_v3  ;;  %vm9083_vm11 = vmmov %vm9066_vm4  ;;  %v4552_v27 = vpop.permute.xlu0 %4551  ;;  %v9132_v3 = vld [vmem:[#allocation30_spill] sm:$0xff] }
 0x2f5   : > { %v2997_v16 = vsel %vm9083_vm11, %v2965_v17, %v4523_v10  ;;  %vm9084_vm2 = vmmov %vm9066_vm4  ;;  %vm9111_vm11 = vnez %v9110_v62  ;;  %v4554_v10 = vunpack.i.h.bf16 %v4552_v27  ;;  %v4553_v0 = vunpack.i.l.bf16 %v4552_v27  ;;  %v9125_v17 = vld [vmem:[#allocation106_spill] sm:$0xff] }
 0x2f6   : > { %3332 = vmatprep.mubr.f32.mxu1 %v2997_v16  ;;  %v2901_v22 = vsel %vm9084_vm2, %v2868_v15, %v4524_v23  ;;  %vm9089_vm14 = vmmov %vm9068_vm0  ;;  %v9113_v44 = vsel %vm9111_vm11, %v9112_v14, 0.0  ;;  %v9127_v15 = vld [vmem:[#allocation121_spill] sm:$0xff] }
 0x2f7   : > { %3333 = vmatmul.mubr.f32.gmra.mxu1 %v2901_v22  ;;  %3979 = vmatmul.mubr.msk.f32.gmra.mxu0 %vm9089_vm14, %v9088_v42  ;;  %vm9091_vm12 = vmmov %vm9068_vm0  ;;  %vm9117_vm14 = vnez %v9116_v11 }
 0x2f8   : > { %v2934_v60 = vsel %vm9091_vm12, %v9090_v55, %v4509_v24  ;;  %vm9093_vm5 = vmmov %vm9068_vm0  ;;  %v9119_v53 = vsel %vm9117_vm14, %v9118_v19, 0.0  ;;  %v9130_v24 = vld [vmem:[#allocation12_spill] sm:$0xff] }
 0x2f9   : > { %3981 = vmatprep.mubr.msk.f32.mxu0 %vm9093_vm5, %v9092_v40  ;;  %vm9095_vm15 = vmmov %vm9068_vm0  ;;  %v9140_v55 = vld [vmem:[#allocation108_spill] sm:$0xff] }
 0x2fa   : > { %v2836_v41 = vsel %vm9095_vm15, %v9094_v43, %v4468_v8  ;;  %vm9096_vm4 = vmmov %vm9080_vm3  ;;  %v4564_v43 = vunpack.i.h.bf16 %v4562_v20 }
 0x2fb   : > { %v2966_v63 = vsel %vm9096_vm4, %v2934_v60, %v4528_v61  ;;  %vm9097_vm0 = vmmov %vm9080_vm3  ;;  %v4557_v61 = vpop.permute.xlu0 %4556  ;;  %v9142_v60 = vld [vmem:[#allocation122_spill] sm:$0xff] }
 0x2fc   : > { %v2869_v34 = vsel %vm9097_vm0, %v2836_v41, %v4529_v54  ;;  %vm9098_vm6 = vmmov %vm9084_vm2  ;;  %v4559_v42 = vunpack.i.h.bf16 %v4557_v61  ;;  %v4563_v41 = vunpack.i.l.bf16 %v4562_v20 }
 0x2fd   : > { %v2998_v7 = vsel %vm9098_vm6, %v2966_v63, %v4493_v5  ;;  %vm9099_vm8 = vmmov %vm9084_vm2  ;;  %v4558_v5 = vunpack.i.l.bf16 %v4557_v61  ;;  %v9146_v63 = vld [vmem:[#allocation109_spill] sm:$0xff] }
 0x2fe   : > { %3337 = vmatprep.mubr.f32.mxu1 %v2998_v7  ;;  %v2902_v31 = vsel %vm9099_vm8, %v2869_v34, %v4494_v4  ;;  %vm9104_vm7 = vmmov %vm9093_vm5  ;;  %v2178_v4 = vpop.permute.xlu1 %2177  ;;  %vm9147_vm14 = vnez %v9146_v63 }
 0x2ff   : > { %3982 = vmatmul.mubr.msk.f32.gmra.mxu0 %vm9104_vm7, %v9103_v56  ;;  %3338 = vmatmul.mubr.f32.gmra.mxu1 %v2902_v31  ;;  %vm9106_vm13 = vmmov %vm9093_vm5  ;;  %v9149_v34 = vsel %vm9147_vm14, %v9148_v39, 0.0 }
 0x300   : > { %3984 = vmatprep.mubr.msk.f32.mxu0 %vm9106_vm13, %v9105_v48  ;;  %vm9108_vm3 = vmmov %vm9093_vm5 }
 0x301   : > { %v2935_v29 = vsel %vm9108_vm3, %v9107_v26, %v4469_v6  ;;  %vm9109_vm9 = vmmov %vm9097_vm0  ;;  %v9145_v6 = vmov 0.0  }
 0x302   : > { %v2967_v13 = vsel %vm9109_vm9, %v2935_v29, %v4538_v1  ;;  %vm9114_vm2 = vmmov %vm9108_vm3  ;;  %v4567_v1 = vpop.permute.xlu0 %4566  ;;  %v9159_v29 = vld [vmem:[#allocation20_spill] sm:$0xff] }
 0x303   : > { %v2837_v21 = vsel %vm9114_vm2, %v9113_v44, %v4533_v45  ;;  %vm9115_vm1 = vmmov %vm9097_vm0  ;;  %vm9126_vm0 = vnez %v9125_v17  ;;  %v4569_v7 = vunpack.i.h.bf16 %v4567_v1  ;;  %v4568_v45 = vunpack.i.l.bf16 %v4567_v1  ;;  %v2432_v44 = vpop.permute.xlu1 %2431 }
 0x304   : > { %v2870_v57 = vsel %vm9115_vm1, %v2837_v21, %v4539_v9  ;;  %vm9120_vm12 = vmmov %vm9114_vm2  ;;  %v9128_v8 = vsel %vm9126_vm0, %v9127_v15, 0.0  ;;  %v9151_v9 = vld [vmem:[#allocation68_spill] sm:$0xff] }
 0x305   : > { %3985 = vmatmul.mubr.msk.f32.gmra.mxu0 %vm9120_vm12, %v9119_v53  ;;  %vm9122_vm5 = vmmov %vm9114_vm2 }
 0x306   : > { %3987 = vmatprep.mubr.msk.f32.mxu0 %vm9122_vm5, %v9121_v51  ;;  %vm9123_vm15 = vmmov %vm9098_vm6 }
 0x307   : > { %v2999_v25 = vsel %vm9123_vm15, %v2967_v13, %v4548_v36  ;;  %vm9124_vm4 = vmmov %vm9098_vm6  ;;  %v2304_v13 = vpop.permute.xlu0 %2303 }
 0x308   : > { %3342 = vmatprep.mubr.f32.mxu1 %v2999_v25  ;;  %v2903_v50 = vsel %vm9124_vm4, %v2870_v57, %v4549_v59  ;;  %vm9129_vm6 = vmmov %vm9114_vm2 }
 0x309   : > { %3343 = vmatmul.mubr.f32.gmra.mxu1 %v2903_v50  ;;  %3988 = vmatmul.mubr.msk.f32.gmra.mxu0 %vm9129_vm6, %v9128_v8  ;;  %vm9131_vm8 = vmmov %vm9114_vm2 }
 0x30a   : > { %v2936_v23 = vsel %vm9131_vm8, %v9130_v24, %v4534_v32  ;;  %vm9133_vm10 = vmmov %vm9114_vm2 }
 0x30b   : > { %v2838_v16 = vsel %vm9133_vm10, %v9132_v3, %v4518_v30  ;;  %vm9135_vm7 = vmmov %vm9114_vm2  ;;  %vm9141_vm2 = vnez %v9140_v55 }
 0x30c   : > { %3990 = vmatprep.mubr.msk.f32.mxu0 %vm9135_vm7, %v9134_v37  ;;  %vm9136_vm13 = vmmov %vm9115_vm1  ;;  %v9143_v40 = vsel %vm9141_vm2, %v9142_v60, 0.0 }
 0x30d   : > { %v2968_v22 = vsel %vm9136_vm13, %v2936_v23, %v4553_v0  ;;  %vm9137_vm3 = vmmov %vm9115_vm1 }
 0x30e   : > { %v2871_v54 = vsel %vm9137_vm3, %v2838_v16, %v4554_v10  ;;  %vm9138_vm9 = vmmov %vm9124_vm4 }
 0x30f   : > { %v3000_v33 = vsel %vm9138_vm9, %v2968_v22, %v4543_v46  ;;  %vm9139_vm11 = vmmov %vm9124_vm4 }
 0x310   : > { %3347 = vmatprep.mubr.f32.mxu1 %v3000_v33  ;;  %v2904_v52 = vsel %vm9139_vm11, %v2871_v54, %v4544_v18  ;;  %vm9144_vm1 = vmmov %vm9122_vm5 }
 0x311   : > { %3991 = vmatmul.mubr.msk.f32.gmra.mxu0 %vm9144_vm1, %v9143_v40  ;;  %3348 = vmatmul.mubr.f32.gmra.mxu1 %v2904_v52  ;;  %vm9150_vm12 = vmmov %vm9144_vm1 }
 0x312   : > { %3993 = vmatprep.mubr.f32.mxu0 %v9145_v6  ;;  %v2839_v12 = vsel %vm9150_vm12, %v9149_v34, %v4558_v5  ;;  %vm9152_vm5 = vmmov %vm9144_vm1 }
 0x313   : > { %v2937_v31 = vsel %vm9152_vm5, %v9151_v9, %v4519_v2  ;;  %vm9154_vm15 = vmmov %vm9144_vm1  ;;  %v7885_v2 = vld [vmem:[%s8029_s7] ss:$0 sm:$0xff] }
 0x314   : > { %v2938_v38 = vsel %vm9154_vm15, %v9153_v47, %v4559_v42  ;;  %vm9155_vm4 = vmmov %vm9137_vm3 }
 0x315   : > { %3994 = vmatmul.mubr.f32.gmra.mxu0 %v9145_v6  ;;  %v2969_v56 = vsel %vm9155_vm4, %v2937_v31, %v4563_v41  ;;  %vm9156_vm0 = vmmov %vm9137_vm3 }
 0x316   : > { %v2872_v48 = vsel %vm9156_vm0, %v2839_v12, %v4564_v43  ;;  %vm9157_vm6 = vmmov %vm9138_vm9 }
 0x317   : > { %v3001_v58 = vsel %vm9157_vm6, %v2969_v56, %v4568_v45  ;;  %vm9158_vm8 = vmmov %vm9157_vm6 }
 0x318   : > { %v2905_v26 = vsel %vm9158_vm8, %v2872_v48, %v4569_v7  ;;  %vm9160_vm10 = vmmov %vm9144_vm1  ;;  %3352 = vmatprep.mubr.f32.mxu1 %v3001_v58 }
 0x319   : > { %v2840_v35 = vsel %vm9160_vm10, %v9159_v29, %v2178_v4  ;;  %vm9161_vm7 = vmmov %vm9156_vm0  ;;  %3353 = vmatmul.mubr.f32.gmra.mxu1 %v2905_v26 }
 0x31a   : > { %v2970_v62 = vsel %vm9161_vm7, %v2938_v38, %v4178_v28  ;;  %vm9162_vm13 = vmmov %vm9156_vm0 }
 0x31b   : > { %v2873_v14 = vsel %vm9162_vm13, %v2840_v35, %v2304_v13  ;;  %vm9163_vm3 = vmmov %vm9157_vm6 }
 0x31c   : > { %v3002_v21 = vsel %vm9163_vm3, %v2970_v62, %v4568_v45  ;;  %vm9164_vm9 = vmmov %vm9163_vm3 }
 0x31d   : > { %3357 = vmatprep.mubr.f32.mxu1 %v3002_v21  ;;  %v2906_v59 = vsel %vm9164_vm9, %v2873_v14, %v2432_v44 }
 0x31e   : > { %3358 = vmatmul.mubr.f32.gmra.mxu1 %v2906_v59 }
 0x337   : > { %v7861_v36 = vpop.f32.mrf.mxu1 }
 0x338   : > { %v3235_v14 = vadd.f32 %v7885_v2, %v7861_v36 }
 0x339   : > { %v3236_v57 = vpop.f32.mrf.mxu1 }
 0x33c   : > { %v3239_v11 = vpop.f32.mrf.mxu1 }
 0x33d   : > { %v3240_v29 = vadd.f32 %v7885_v2, %v3239_v11 }
 0x33e   : > { %v3241_v19 = vpop.f32.mrf.mxu1 }
 0x340   : > { %v7863_v53 = vpop.f32.mrf.mxu1 }
 0x342   : > { %v3246_v49 = vpop.f32.mrf.mxu1 }
 0x347   : > { %v7865_v32 = vpop.f32.mrf.mxu1 }
 0x348   : > { %v3250_v57 = vadd.f32 %v7885_v2, %v7865_v32 }
 0x349   : > { %v3251_v30 = vpop.f32.mrf.mxu1 }
 0x34b   : > { %v3204_v28 = vpop.f32.mrf.mxu0 }
 0x34c   : > { %v3205_v40 = vadd.f32 %v7885_v2, %v3204_v28  ;;  %v3245_v28 = vadd.f32 %v7885_v2, %v7863_v53 }
 0x34d   : > { %v3206_v51 = vpop.f32.mrf.mxu0 }
 0x34f   : > { %v7867_v25 = vpop.f32.mrf.mxu1 }
 0x351   : > { %v3256_v46 = vpop.f32.mrf.mxu1 }
 0x353   : > { %v3209_v27 = vpop.f32.mrf.mxu0 }
 0x354   : > { %v7869_v10 = vpop.f32.mrf.mxu1  ;;  %v3210_v52 = vadd.f32 %v7885_v2, %v3209_v27 }
 0x355   : > { %v3211_v50 = vpop.f32.mrf.mxu0  ;;  %v3260_v27 = vadd.f32 %v7885_v2, %v7869_v10 }
 0x356   : > { %v3261_v0 = vpop.f32.mrf.mxu1 }
 0x357   : > { %v3255_v0 = vadd.f32 %v7885_v2, %v7867_v25 }
 0x35b   : > { %v3214_v18 = vpop.f32.mrf.mxu0 }
 0x35c   : > { %v7871_v20 = vpop.f32.mrf.mxu1  ;;  %v3215_v12 = vadd.f32 %v7885_v2, %v3214_v18 }
 0x35d   : > { %v3216_v17 = vpop.f32.mrf.mxu0 }
 0x35e   : > { %v3266_v15 = vpop.f32.mrf.mxu1 }
 0x365   : > { %v3219_v8 = vpop.f32.mrf.mxu0 }
 0x366   : > { %v7873_v24 = vpop.f32.mrf.mxu1  ;;  %v3220_v4 = vadd.f32 %v7885_v2, %v3219_v8 }
 0x367   : > { %v3221_v23 = vpop.f32.mrf.mxu0  ;;  %v3270_v15 = vadd.f32 %v7885_v2, %v7873_v24 }
 0x368   : > { %v3271_v3 = vpop.f32.mrf.mxu1 }
 0x369   : > { %v3224_v16 = vpop.f32.mrf.mxu0  ;;  %v3265_v3 = vadd.f32 %v7885_v2, %v7871_v20 }
 0x36a   : > { %v7875_v37 = vpop.f32.mrf.mxu1  ;;  %v3225_v56 = vadd.f32 %v7885_v2, %v3224_v16 }
 0x36b   : > { %v3226_v22 = vpop.f32.mrf.mxu0 }
 0x36c   : > { %v3276_v54 = vpop.f32.mrf.mxu1 }
 0x36d   : > { %v3229_v61 = vpop.f32.mrf.mxu0 }
 0x36e   : > { %v7878_v33 = vpop.f32.mrf.mxu1  ;;  %v3230_v9 = vadd.f32 %v7885_v2, %v3229_v61 }
 0x36f   : > { %v3231_v42 = vpop.f32.mrf.mxu0  ;;  %v3280_v54 = vadd.f32 %v7885_v2, %v7878_v33 }
 0x370   : > { %v3281_v5 = vpop.f32.mrf.mxu1 }
 0x371   : > { %v3275_v5 = vadd.f32 %v7885_v2, %v7875_v37 }
 0x374   : > { %v3950_v60 = vpop.f32.mrf.mxu0 }
 0x375   : > { %v3435_v43 = vadd.f32 %v3950_v60, %v3210_v52 }
 0x376   : > { %v7888_v55 = vpop.f32.mrf.mxu1  ;;  %v3429_v6 = vpop.f32.mrf.mxu0 }
 0x377   : > { %3589 = vst [vmem:[%s7892_s19 + $0x8] sm:$0xff] %v3435_v43  ;;  %v3430_v63 = vadd.f32 %v3429_v6, %v3205_v40  ;;  %v3285_v6 = vadd.f32 %v7885_v2, %v7888_v55 }
 0x378   : > { %v3286_v41 = vpop.f32.mrf.mxu1 }
 0x379   : > { %3588 = vst [vmem:[%s7892_s19] sm:$0xff] %v3430_v63 }
 0x37a   : > { %v7895_v39 = vpop.f32.mrf.mxu1 }
 0x37b   : > { %v3953_v34 = vpop.f32.mrf.mxu0  ;;  %v3290_v40 = vadd.f32 %v7885_v2, %v7895_v39 }
 0x37c   : > { %v3445_v1 = vadd.f32 %v3953_v34, %v3220_v4  ;;  %v3291_v7 = vpop.f32.mrf.mxu1 }
 0x37d   : > { %v3439_v45 = vpop.f32.mrf.mxu0 }
 0x37e   : > { %3591 = vst [vmem:[%s7892_s19 + $0x18] sm:$0xff] %v3445_v1  ;;  %v3440_v31 = vadd.f32 %v3439_v45, %v3215_v12 }
 0x380   : > { %3590 = vst [vmem:[%s7892_s19 + $0x10] sm:$0xff] %v3440_v31 }
 0x382   : > { %v7901_v47 = vpop.f32.mrf.mxu1 }
 0x383   : > { %v3956_v38 = vpop.f32.mrf.mxu0  ;;  %v3295_v7 = vadd.f32 %v7885_v2, %v7901_v47 }
 0x384   : > { %v3455_v48 = vadd.f32 %v3956_v38, %v3230_v9  ;;  %v3296_v58 = vpop.f32.mrf.mxu1 }
 0x385   : > { %v3449_v26 = vpop.f32.mrf.mxu0 }
 0x386   : > { %3593 = vst [vmem:[%s7892_s19 + $0x28] sm:$0xff] %v3455_v48  ;;  %v3450_v35 = vadd.f32 %v3449_v26, %v3225_v56  ;;  %v3299_v13 = vpop.f32.mrf.mxu1 }
 0x387   : > { %v3300_v34 = vadd.f32 %v7885_v2, %v3299_v13 }
 0x388   : > { %v3959_v62 = vpop.f32.mrf.mxu0  ;;  %3592 = vst [vmem:[%s7892_s19 + $0x20] sm:$0xff] %v3450_v35  ;;  %v3301_v21 = vpop.f32.mrf.mxu1 }
 0x389   : > { %v3465_v44 = vadd.f32 %v3959_v62, %v3240_v29 }
 0x38a   : > { %v3459_v59 = vpop.f32.mrf.mxu0 }
 0x38b   : > { %3595 = vst [vmem:[%s7892_s19 + $0x38] sm:$0xff] %v3465_v44  ;;  %v3460_v19 = vadd.f32 %v3459_v59, %v3235_v14 }
 0x38d   : > { %3594 = vst [vmem:[%s7892_s19 + $0x30] sm:$0xff] %v3460_v19 }
 0x390   : > { %v3304_v11 = vpop.f32.mrf.mxu1  ;;  %v3962_v49 = vpop.f32.mrf.mxu0 }
 0x391   : > { %v3475_v30 = vadd.f32 %v3962_v49, %v3250_v57  ;;  %v3305_v58 = vadd.f32 %v7885_v2, %v3304_v11 }
 0x392   : > { %v3306_v36 = vpop.f32.mrf.mxu1  ;;  %v3469_v51 = vpop.f32.mrf.mxu0 }
 0x393   : > { %3597 = vst [vmem:[%s7892_s19 + $0x48] sm:$0xff] %v3475_v30  ;;  %v3470_v46 = vadd.f32 %v3469_v51, %v3245_v28 }
 0x394   : > { %v3309_v32 = vpop.f32.mrf.mxu1 }
 0x395   : > { %v3965_v50 = vpop.f32.mrf.mxu0  ;;  %3596 = vst [vmem:[%s7892_s19 + $0x40] sm:$0xff] %v3470_v46  ;;  %v3310_v31 = vadd.f32 %v7885_v2, %v3309_v32 }
 0x396   : > { %v3485_v18 = vadd.f32 %v3965_v50, %v3260_v27  ;;  %v3311_v53 = vpop.f32.mrf.mxu1 }
 0x397   : > { %v3479_v17 = vpop.f32.mrf.mxu0 }
 0x398   : > { %3599 = vst [vmem:[%s7892_s19 + $0x58] sm:$0xff] %v3485_v18  ;;  %v3480_v8 = vadd.f32 %v3479_v17, %v3255_v0 }
 0x399   : > { %v3968_v23 = vpop.f32.mrf.mxu0 }
 0x39a   : > { %3598 = vst [vmem:[%s7892_s19 + $0x50] sm:$0xff] %v3480_v8  ;;  %v3495_v16 = vadd.f32 %v3968_v23, %v3270_v15 }
 0x39b   : > { %v3489_v22 = vpop.f32.mrf.mxu0 }
 0x39c   : > { %v3314_v10 = vpop.f32.mrf.mxu1  ;;  %3601 = vst [vmem:[%s7892_s19 + $0x68] sm:$0xff] %v3495_v16  ;;  %v3490_v61 = vadd.f32 %v3489_v22, %v3265_v3 }
 0x39d   : > { %v3315_v14 = vadd.f32 %v7885_v2, %v3314_v10 }
 0x39e   : > { %v3316_v25 = vpop.f32.mrf.mxu1  ;;  %3600 = vst [vmem:[%s7892_s19 + $0x60] sm:$0xff] %v3490_v61 }
 0x3a1   : > { %v3319_v24 = vpop.f32.mrf.mxu1 }
 0x3a2   : > { %v3971_v42 = vpop.f32.mrf.mxu0  ;;  %v3320_v47 = vadd.f32 %v7885_v2, %v3319_v24 }
 0x3a3   : > { %v3505_v52 = vadd.f32 %v3971_v42, %v3280_v54  ;;  %v3321_v20 = vpop.f32.mrf.mxu1 }
 0x3a4   : > { %v3499_v60 = vpop.f32.mrf.mxu0 }
 0x3a5   : > { %3603 = vst [vmem:[%s7892_s19 + $0x78] sm:$0xff] %v3505_v52  ;;  %v3500_v43 = vadd.f32 %v3499_v60, %v3275_v5 }
 0x3a7   : > { %3602 = vst [vmem:[%s7892_s19 + $0x70] sm:$0xff] %v3500_v43 }
 0x3aa   : > { %v3324_v33 = vpop.f32.mrf.mxu1  ;;  %v3974_v41 = vpop.f32.mrf.mxu0 }
 0x3ab   : > { %v3515_v4 = vadd.f32 %v3974_v41, %v3290_v40  ;;  %v3325_v28 = vadd.f32 %v7885_v2, %v3324_v33 }
 0x3ac   : > { %v3326_v37 = vpop.f32.mrf.mxu1  ;;  %v3509_v63 = vpop.f32.mrf.mxu0 }
 0x3ad   : > { %3605 = vst [vmem:[%s7892_s19 + $0x88] sm:$0xff] %v3515_v4  ;;  %v3510_v12 = vadd.f32 %v3509_v63, %v3285_v6 }
 0x3af   : > { %v3329_v1 = vpop.f32.mrf.mxu1  ;;  %3604 = vst [vmem:[%s7892_s19 + $0x80] sm:$0xff] %v3510_v12 }
 0x3b0   : > { %v3330_v57 = vadd.f32 %v7885_v2, %v3329_v1 }
 0x3b1   : > { %v3977_v39 = vpop.f32.mrf.mxu0  ;;  %v3331_v9 = vpop.f32.mrf.mxu1 }
 0x3b2   : > { %v3525_v45 = vadd.f32 %v3977_v39, %v3300_v34 }
 0x3b3   : > { %v3519_v55 = vpop.f32.mrf.mxu0 }
 0x3b4   : > { %3607 = vst [vmem:[%s7892_s19 + $0x98] sm:$0xff] %v3525_v45  ;;  %v3520_v38 = vadd.f32 %v3519_v55, %v3295_v7 }
 0x3b6   : > { %3606 = vst [vmem:[%s7892_s19 + $0x90] sm:$0xff] %v3520_v38 }
 0x3b7   : > { %v3334_v56 = vpop.f32.mrf.mxu1  ;;  %v3980_v48 = vpop.f32.mrf.mxu0 }
 0x3b8   : > { %v3535_v26 = vadd.f32 %v3980_v48, %v3310_v31  ;;  %v3335_v50 = vadd.f32 %v7885_v2, %v3334_v56 }
 0x3b9   : > { %v3336_v29 = vpop.f32.mrf.mxu1  ;;  %v3529_v35 = vpop.f32.mrf.mxu0 }
 0x3ba   : > { %3609 = vst [vmem:[%s7892_s19 + $0xa8] sm:$0xff] %v3535_v26  ;;  %v3530_v13 = vadd.f32 %v3529_v35, %v3305_v58 }
 0x3bc   : > { %3608 = vst [vmem:[%s7892_s19 + $0xa0] sm:$0xff] %v3530_v13 }
 0x3bf   : > { %v3983_v62 = vpop.f32.mrf.mxu0  ;;  %v3339_v44 = vpop.f32.mrf.mxu1 }
 0x3c0   : > { %v3545_v21 = vadd.f32 %v3983_v62, %v3320_v47  ;;  %v3340_v51 = vadd.f32 %v7885_v2, %v3339_v44 }
 0x3c1   : > { %v3539_v59 = vpop.f32.mrf.mxu0  ;;  %v3341_v19 = vpop.f32.mrf.mxu1 }
 0x3c2   : > { %3611 = vst [vmem:[%s7892_s19 + $0xb8] sm:$0xff] %v3545_v21  ;;  %v3540_v11 = vadd.f32 %v3539_v59, %v3315_v14 }
 0x3c4   : > { %3610 = vst [vmem:[%s7892_s19 + $0xb0] sm:$0xff] %v3540_v11 }
 0x3c5   : > { %v3986_v49 = vpop.f32.mrf.mxu0 }
 0x3c6   : > { %v3555_v30 = vadd.f32 %v3986_v49, %v3330_v57 }
 0x3c7   : > { %v3549_v36 = vpop.f32.mrf.mxu0 }
 0x3c8   : > { %3613 = vst [vmem:[%s7892_s19 + $0xc8] sm:$0xff] %v3555_v30  ;;  %v3550_v27 = vadd.f32 %v3549_v36, %v3325_v28 }
 0x3c9   : > { %v3344_v46 = vpop.f32.mrf.mxu1  ;;  %v3989_v32 = vpop.f32.mrf.mxu0 }
 0x3ca   : > { %3612 = vst [vmem:[%s7892_s19 + $0xc0] sm:$0xff] %v3550_v27  ;;  %v3565_v0 = vadd.f32 %v3989_v32, %v3340_v51  ;;  %v3345_v8 = vadd.f32 %v7885_v2, %v3344_v46 }
 0x3cb   : > { %v3346_v18 = vpop.f32.mrf.mxu1  ;;  %v3559_v53 = vpop.f32.mrf.mxu0 }
 0x3cc   : > { %3615 = vst [vmem:[%s7892_s19 + $0xd8] sm:$0xff] %v3565_v0  ;;  %v3560_v17 = vadd.f32 %v3559_v53, %v3335_v50 }
 0x3ce   : > { %3614 = vst [vmem:[%s7892_s19 + $0xd0] sm:$0xff] %v3560_v17 }
 0x3d1   : > { %v3992_v15 = vpop.f32.mrf.mxu0  ;;  %v3349_v10 = vpop.f32.mrf.mxu1 }
 0x3d2   : > { %v3350_v23 = vadd.f32 %v7885_v2, %v3349_v10 }
 0x3d3   : > { %v3569_v3 = vpop.f32.mrf.mxu0  ;;  %v3351_v16 = vpop.f32.mrf.mxu1 }
 0x3d4   : > { %v3570_v25 = vadd.f32 %v3569_v3, %v3345_v8  ;;  %v3575_v22 = vadd.f32 %v3992_v15, %v3350_v23 }
 0x3d5   : > { %v3995_v54 = vpop.f32.mrf.mxu0 }
 0x3d6   : > { %3616 = vst [vmem:[%s7892_s19 + $0xe0] sm:$0xff] %v3570_v25  ;;  %3617 = vst [vmem:[%s7892_s19 + $0xe8] sm:$0xff] %v3575_v22 }
 0x3d7   : > { %v3579_v24 = vpop.f32.mrf.mxu0 }
 0x3d9   : > { %v3354_v61 = vpop.f32.mrf.mxu1 }
 0x3da   : > { %v3355_v42 = vadd.f32 %v7885_v2, %v3354_v61 }
 0x3db   : > { %v3356_v5 = vpop.f32.mrf.mxu1 }
 0x3dc   : > { %v3580_v52 = vadd.f32 %v3579_v24, %v3355_v42 }
 0x3de   : > { %v3359_v20 = vpop.f32.mrf.mxu1  ;;  %3618 = vst [vmem:[%s7892_s19 + $0xf0] sm:$0xff] %v3580_v52 }
 0x3df   : > { %v3360_v60 = vadd.f32 %v7885_v2, %v3359_v20 }
 0x3e0   : > { %v3361_v40 = vpop.f32.mrf.mxu1 }
 0x3e1   : > { %v3585_v43 = vadd.f32 %v3995_v54, %v3360_v60 }
 0x3e3   : > { %3619 = vst [vmem:[%s7892_s19 + $0xf8] sm:$0xff] %v3585_v43 }
 0x3e4   : > { %4713 = shalt.err (!%p4710_p3)
}
 0x3e5   : > { %s4714_s11 = scalar_lea.hbm %s7975_s24, 4096  ;;  %s4718_s18 = scalar_lea.hbm %s8030_s8, 8192 }
 0x3e6   : > { %p4715_p4 = scmp.ne.s32.totalorder %s7975_s24, %s4714_s11  ;;  %p4719_p9 = scmp.lt.s32.totalorder %s7975_s24, %s8030_s8 }
 0x3e7   : > { %p4720_p10 = scmp.lt.s32.totalorder %s4718_s18, %s4714_s11 }
 0x3e8   : > { %p4716_p7 = pnand %p4715_p4, %p4852_p5 }
 0x3e9   : > { %p4721_p11 = por %p4720_p10, %p4719_p9 }
 0x3ea   : > { %p4717_p8 = pneg %p4716_p7 }
 0x3ec   : > { %p4722_p12 = pnand %p4721_p11, %p4717_p8 }
 0x3ee   : > { %4725 = shalt.err (!%p4722_p12)
}
 0x3ef   : > { %s4767_s22 = smov 128   ;;  %s4768_s23 = smov 8  }
 0x3f0   : > { %4060 = dma.vmem_to_hbm [thread:$0]  (%p4852_p5), %s7977_s21, 4096, %s7975_s24, %s7982_s5, %s4767_s22, %s4767_s22, %s4768_s23  }
 0x3f1 PF: > { %p4066_p13 = scmp.ge.s32.totalorder %s4760_s30, 2  ;;  %s3649_s17 = sand.u32 1, %s4748_s27  }
 0x3f2   : > { %s3650_s25 = scalar_lea.sflag [#allocation3], %s3649_s17 }
 0x3f3   : > { %p4063_p0 = pnand %p4066_p13, %p4856_p6 }
 0x3f5   : > { %p4064_p1 = pneg %p4063_p0 }
 0x3f7   : > { %4743 = dma.done.wait (%p4064_p1), %s3650_s25, 4096  }
 0x3f8   : > { %4745 = vsyncadd (%p4064_p1), %s3650_s25, 4294963200  ;;  %p18_p2 = scmp.ge.s32.totalorder %s4839_s10, 4   ;;  %s9165_s27 = smov %s4752_s28 }
 0x3f9   : > { %s9166_s28 = smov %s4756_s29  ;;  %s9167_s29 = smov %s4850_s13 }
 0x3fa   : > { %s9168_s30 = smov %s4839_s10  ;;  %20 = sbr.rel (!%p18_p2) target bundleno = 3 (0x3), region = 87 }
 0x3ff   :  { %3655 = vsyncpa [#allocation3], 1 }
 0x400   :  { %3657 = vsyncpa [#allocation3 + $0x1], 1 }

</bundles_post_ra>
